<compile_context>
chip_gen: v6e
topology: v6e:2x2x1
jax: 0.10.0
libtpu: 0.0.40
codegen_flags: <defaults>
</compile_context>

<pallas_src>
import jax
import jax.numpy as jnp
import numpy as np
from jax.experimental import pallas as pl
from jax.experimental.pallas import tpu as pltpu


# --------------------------------- kernel -----------------------------------

def make_mfn_kernel(layout, T, N, D, H, mem_dim):
    """layout: dict name -> (row_offset, rows, cols) into the weight slab."""

    def kernel(x_ref, w_ref, out_ref, xg_ref):
        def w(name):
            r0, rows, cols = layout[name]
            return w_ref[r0:r0 + rows, 0:cols]          # static slice: free view

        def dot(a, b):
            if a.dtype != b.dtype:
                a = a.astype(b.dtype)
            return jnp.dot(a, b, preferred_element_type=jnp.float32)

        # ---- hoisted input projection: one matmul for all timesteps --------
        x_all = x_ref[...].reshape(T * N, D)
        xg_ref[...] = (dot(x_all, w("wih")) + w("bg")).reshape(T, N, 4 * H)

        def step(t, carry):
            h_all, c_all, mem = carry

            # packed LSTM, gate columns [i | f | o | g]  -> (N, 4H) one vreg
            gates = xg_ref[t] + dot(h_all, w("whh"))
            sig = jax.nn.sigmoid(gates[:, :3 * H])       # one EUP push (i,f,o)
            g_g = jnp.tanh(gates[:, 3 * H:])             # one EUP push (g)
            i_g = sig[:, :H]
            f_g = sig[:, H:2 * H]
            o_g = sig[:, 2 * H:]
            new_c = f_g * c_all + i_g * g_g
            new_h = o_g * jnp.tanh(new_c)

            # attention net 1 + softmax over the 2H window
            c_star = jnp.concatenate([c_all, new_c], axis=1)          # (N, 2H)
            logits = dot(jax.nn.relu(dot(c_star, w("a1w1")) + w("a1b1")),
                         w("a1w2")) + w("a1b2")
            m = jnp.max(logits, axis=1, keepdims=True)
            e = jnp.exp(logits - m)
            attention = e * pl.reciprocal(jnp.sum(e, axis=1, keepdims=True),
                                          approx=True)
            attended = attention * c_star

            # fused att2 + gamma1 + gamma2 nets (split-dot avoids concat)
            f1 = jax.nn.relu(dot(attended, w("f1w_att")) +
                             dot(mem, w("f1w_mem")) + w("f1b"))       # (N, h_f)
            f2 = dot(f1, w("f2w")) + w("f2b")                         # (N, 3*mem)
            c_hat = jnp.tanh(f2[:, :mem_dim])
            gg = jax.nn.sigmoid(f2[:, mem_dim:])
            new_mem = gg[:, :mem_dim] * mem + gg[:, mem_dim:] * c_hat
            return new_h, new_c, new_mem

        h0 = jnp.zeros((N, H), jnp.float32)
        c0 = jnp.zeros((N, H), jnp.float32)
        m0 = jnp.zeros((N, mem_dim), jnp.float32)
        h_all, c_all, mem = jax.lax.fori_loop(0, T, step, (h0, c0, m0),
                                              unroll=True)

        # output head (runs once)
        last_hs = jnp.concatenate([h_all, mem], axis=1)
        hidden = jax.nn.relu(dot(last_hs, w("ow1")) + w("ob1"))
        out_ref[...] = dot(hidden, w("ow2")) + w("ob2")

    return kernel


# ------------------------------ weight packing --------------------------------

def pack_params(p, d_l, d_a, d_v, dh_l, dh_a, dh_v, dtype=jnp.float32):
    """Pack all weights into one (rows, >=128) slab + a static layout dict.

    - 3 LSTMCells become one block-diagonal matmul pair with gate-major column
      order [i | f | o | g] (sigmoid gates contiguous, tanh gate last).
    - att2 / gamma1 / gamma2 first layers are fused column-wise (mem rows
      zeroed under the att2 columns); second layers are block-diagonal and
      produce [c_hat_pre | g1_pre | g2_pre].
    """
    D = d_l + d_a + d_v
    H = dh_l + dh_a + dh_v
    mem_dim = p["g1_w2"].shape[1]
    assert p["g2_w2"].shape[1] == mem_dim and p["att2_w2"].shape[1] == mem_dim

    d_offs = (0, d_l, d_l + d_a)
    h_offs = (0, dh_l, dh_l + dh_a)
    mods = (("l", d_l, dh_l), ("a", d_a, dh_a), ("v", d_v, dh_v))
    gate_src = (0, 1, 3, 2)   # new slots i,f,o,g <- PyTorch order i,f,g,o

    wih = np.zeros((D, 4 * H), np.float32)
    whh = np.zeros((H, 4 * H), np.float32)
    bg = np.zeros((1, 4 * H), np.float32)
    for m, (mod, d, dh) in enumerate(mods):
        wih_m = np.asarray(p[f"wih_{mod}"])   # (d, 4*dh), gate order i,f,g,o
        whh_m = np.asarray(p[f"whh_{mod}"])
        b_m = np.asarray(p[f"b_{mod}"])
        for s_new, s_old in enumerate(gate_src):
            col = s_new * H + h_offs[m]
            src = slice(s_old * dh, (s_old + 1) * dh)
            wih[d_offs[m]:d_offs[m] + d, col:col + dh] = wih_m[:, src]
            whh[h_offs[m]:h_offs[m] + dh, col:col + dh] = whh_m[:, src]
            bg[:, col:col + dh] = b_m[:, src]

    two_h = 2 * H
    a2w1 = np.asarray(p["att2_w1"])
    g1w1 = np.asarray(p["g1_w1"])
    g2w1 = np.asarray(p["g2_w1"])
    h_a2, h_g1, h_g2 = a2w1.shape[1], g1w1.shape[1], g2w1.shape[1]
    f1w_att = np.concatenate([a2w1, g1w1[:two_h], g2w1[:two_h]], axis=1)
    f1w_mem = np.concatenate([np.zeros((mem_dim, h_a2), np.float32),
                              g1w1[two_h:], g2w1[two_h:]], axis=1)
    f1b = np.concatenate([np.asarray(p["att2_b1"]), np.asarray(p["g1_b1"]),
                          np.asarray(p["g2_b1"])], axis=1)
    h_f = h_a2 + h_g1 + h_g2
    f2w = np.zeros((h_f, 3 * mem_dim), np.float32)
    f2w[:h_a2, :mem_dim] = np.asarray(p["att2_w2"])
    f2w[h_a2:h_a2 + h_g1, mem_dim:2 * mem_dim] = np.asarray(p["g1_w2"])
    f2w[h_a2 + h_g1:, 2 * mem_dim:] = np.asarray(p["g2_w2"])
    f2b = np.concatenate([np.asarray(p["att2_b2"]), np.asarray(p["g1_b2"]),
                          np.asarray(p["g2_b2"])], axis=1)

    tensors = [
        ("wih", wih), ("whh", whh), ("bg", bg),
        ("a1w1", np.asarray(p["att1_w1"])), ("a1b1", np.asarray(p["att1_b1"])),
        ("a1w2", np.asarray(p["att1_w2"])), ("a1b2", np.asarray(p["att1_b2"])),
        ("f1w_att", f1w_att), ("f1w_mem", f1w_mem), ("f1b", f1b),
        ("f2w", f2w), ("f2b", f2b),
        ("ow1", np.asarray(p["out_w1"])), ("ob1", np.asarray(p["out_b1"])),
        ("ow2", np.asarray(p["out_w2"])), ("ob2", np.asarray(p["out_b2"])),
    ]

    max_cols = max(a.shape[1] for _, a in tensors)
    slab_cols = max(128, ((max_cols + 127) // 128) * 128)
    layout, blocks, r = {}, [], 0
    for name, arr in tensors:
        arr = np.asarray(arr, np.float32)
        rows, cols = arr.shape
        pad_rows = ((rows + 7) // 8) * 8            # sublane-aligned start
        blk = np.zeros((pad_rows, slab_cols), np.float32)
        blk[:rows, :cols] = arr
        blocks.append(blk)
        layout[name] = (r, rows, cols)
        r += pad_rows
    slab = jnp.asarray(np.concatenate(blocks, axis=0), dtype=dtype)
    return slab, layout


# ------------------------------- wrapper -------------------------------------

def mfn_forward(x_l, x_a, x_v, params, *, use_bf16_matmul=False):
    T, N, d_l = x_l.shape
    d_a = x_a.shape[2]
    d_v = x_v.shape[2]
    dh_l = params["whh_l"].shape[0]
    dh_a = params["whh_a"].shape[0]
    dh_v = params["whh_v"].shape[0]
    D = d_l + d_a + d_v
    H = dh_l + dh_a + dh_v
    mem_dim = params["g1_w2"].shape[1]

    w_dtype = jnp.bfloat16 if use_bf16_matmul else jnp.float32
    slab, layout = pack_params(params, d_l, d_a, d_v, dh_l, dh_a, dh_v,
                               dtype=w_dtype)
    x_cat = jnp.concatenate([x_l, x_a, x_v], axis=-1).astype(jnp.float32)

    kernel = make_mfn_kernel(layout, T, N, D, H, mem_dim)

    # Single grid-less invocation: inputs (one array) + weights (one slab)
    # fully resident in VMEM (total footprint < 0.5 MiB on all generations).
    return pl.pallas_call(
        kernel,
        out_shape=jax.ShapeDtypeStruct((N, 1), jnp.float32),
        in_specs=[pl.BlockSpec(memory_space=pltpu.MemorySpace.VMEM),
                  pl.BlockSpec(memory_space=pltpu.MemorySpace.VMEM)],
        out_specs=pl.BlockSpec(memory_space=pltpu.MemorySpace.VMEM),
        scratch_shapes=[pltpu.VMEM((T, N, 4 * H), jnp.float32)],
    )(x_cat, slab)


# --------------------------- pure-JAX reference ------------------------------

def mfn_reference(x_l, x_a, x_v, p):
    T, N, _ = x_l.shape
    dh_l = p["whh_l"].shape[0]
    dh_a = p["whh_a"].shape[0]
    dh_v = p["whh_v"].shape[0]
    mem_dim = p["att2_w2"].shape[1]

    def lin(x, w, b):
        return x @ w + b

    def lstm(x, h, c, wih, whh, b):
        H = whh.shape[0]
        gates = x @ wih + h @ whh + b
        i = jax.nn.sigmoid(gates[:, :H])
        f = jax.nn.sigmoid(gates[:, H:2 * H])
        g = jnp.tanh(gates[:, 2 * H:3 * H])
        o = jax.nn.sigmoid(gates[:, 3 * H:])
        c_new = f * c + i * g
        return o * jnp.tanh(c_new), c_new

    h_l = jnp.zeros((N, dh_l)); h_a = jnp.zeros((N, dh_a)); h_v = jnp.zeros((N, dh_v))
    c_l = jnp.zeros((N, dh_l)); c_a = jnp.zeros((N, dh_a)); c_v = jnp.zeros((N, dh_v))
    mem = jnp.zeros((N, mem_dim))
    for t in range(T):
        prev_cs = jnp.concatenate([c_l, c_a, c_v], axis=1)
        nh_l, nc_l = lstm(x_l[t], h_l, c_l, p["wih_l"], p["whh_l"], p["b_l"])
        nh_a, nc_a = lstm(x_a[t], h_a, c_a, p["wih_a"], p["whh_a"], p["b_a"])
        nh_v, nc_v = lstm(x_v[t], h_v, c_v, p["wih_v"], p["whh_v"], p["b_v"])
        new_cs = jnp.concatenate([nc_l, nc_a, nc_v], axis=1)
        c_star = jnp.concatenate([prev_cs, new_cs], axis=1)
        attention = jax.nn.softmax(
            lin(jax.nn.relu(lin(c_star, p["att1_w1"], p["att1_b1"])),
                p["att1_w2"], p["att1_b2"]), axis=1)
        attended = attention * c_star
        c_hat = jnp.tanh(
            lin(jax.nn.relu(lin(attended, p["att2_w1"], p["att2_b1"])),
                p["att2_w2"], p["att2_b2"]))
        both = jnp.concatenate([attended, mem], axis=1)
        g1 = jax.nn.sigmoid(
            lin(jax.nn.relu(lin(both, p["g1_w1"], p["g1_b1"])), p["g1_w2"], p["g1_b2"]))
        g2 = jax.nn.sigmoid(
            lin(jax.nn.relu(lin(both, p["g2_w1"], p["g2_b1"])), p["g2_w2"], p["g2_b2"]))
        mem = g1 * mem + g2 * c_hat
        h_l, c_l, h_a, c_a, h_v, c_v = nh_l, nc_l, nh_a, nc_a, nh_v, nc_v
    last_hs = jnp.concatenate([h_l, h_a, h_v, mem], axis=1)
    return lin(jax.nn.relu(lin(last_hs, p["out_w1"], p["out_b1"])),
               p["out_w2"], p["out_b2"])


# ------------------------------- params --------------------------------------

def init_params(key, d_l, d_a, d_v, dh_l, dh_a, dh_v, mem_dim, window,
                h_att1, h_att2, h_g1, h_g2, h_out):
    total_h = dh_l + dh_a + dh_v
    att_in = total_h * window
    gamma_in = att_in + mem_dim
    final_out = total_h + mem_dim

    state = {"key": key}

    def nxt():
        state["key"], sub = jax.random.split(state["key"])
        return sub

    def mat(din, dout, scale=0.1):
        return (scale * jax.random.normal(nxt(), (din, dout))).astype(jnp.float32)

    def vec(dout, scale=0.1):
        return (scale * jax.random.normal(nxt(), (1, dout))).astype(jnp.float32)

    p = {}
    for mod, d, dh in (("l", d_l, dh_l), ("a", d_a, dh_a), ("v", d_v, dh_v)):
        p[f"wih_{mod}"] = mat(d, 4 * dh)
        p[f"whh_{mod}"] = mat(dh, 4 * dh)
        p[f"b_{mod}"] = vec(4 * dh)          # b_ih + b_hh folded together
    p["att1_w1"] = mat(att_in, h_att1); p["att1_b1"] = vec(h_att1)
    p["att1_w2"] = mat(h_att1, att_in); p["att1_b2"] = vec(att_in)
    p["att2_w1"] = mat(att_in, h_att2); p["att2_b1"] = vec(h_att2)
    p["att2_w2"] = mat(h_att2, mem_dim); p["att2_b2"] = vec(mem_dim)
    p["g1_w1"] = mat(gamma_in, h_g1); p["g1_b1"] = vec(h_g1)
    p["g1_w2"] = mat(h_g1, mem_dim); p["g1_b2"] = vec(mem_dim)
    p["g2_w1"] = mat(gamma_in, h_g2); p["g2_b1"] = vec(h_g2)
    p["g2_w2"] = mat(h_g2, mem_dim); p["g2_b2"] = vec(mem_dim)
    p["out_w1"] = mat(final_out, h_out); p["out_b1"] = vec(h_out)
    p["out_w2"] = mat(h_out, 1); p["out_b2"] = vec(1)
    return p


# --------------------------------- main ---------------------------------------

if __name__ == "__main__":
    T, N = 8, 8                       # seq length, batch
    d_l, d_a, d_v = 32, 16, 16        # config['input_dims'] (d_l = encoded text dim)
    dh_l, dh_a, dh_v = 16, 8, 8       # config['h_dims']  -> H = 32, 4H = 128 lanes
    mem_dim, window = 16, 2           # config['memsize'], config['windowsize']
    h_att1 = h_att2 = h_g1 = h_g2 = h_out = 32

    key = jax.random.PRNGKey(0)
    kx, kp = jax.random.split(key)
    k1, k2, k3 = jax.random.split(kx, 3)
    x_l = jax.random.normal(k1, (T, N, d_l), dtype=jnp.float32)
    x_a = jax.random.normal(k2, (T, N, d_a), dtype=jnp.float32)
    x_v = jax.random.normal(k3, (T, N, d_v), dtype=jnp.float32)
    params = init_params(kp, d_l, d_a, d_v, dh_l, dh_a, dh_v, mem_dim, window,
                         h_att1, h_att2, h_g1, h_g2, h_out)

    out = jax.block_until_ready(mfn_forward(x_l, x_a, x_v, params))
    ref = jax.block_until_ready(mfn_reference(x_l, x_a, x_v, params))
    # tolerance covers the EUP approx-reciprocal used in the in-kernel softmax
    np.testing.assert_allclose(np.asarray(out), np.asarray(ref), rtol=5e-3, atol=5e-3)
    print("KERNEL_OK")
</pallas_src>

<mosaic_0001>
module attributes {stable_mosaic.version = 11 : i64} {
  func.func @kernel(%arg0: memref<8x8x64xf32, #tpu.memory_space<vmem>>, %arg1: memref<504x128xf32, #tpu.memory_space<vmem>>, %arg2: memref<8x1xf32, #tpu.memory_space<vmem>>, %arg3: memref<8x8x128xf32, #tpu.memory_space<vmem>>) attributes {dimension_semantics = [], scalar_prefetch = 0 : i64, scratch_operands = 1 : i64, tpu.core_type = #tpu.core_type<tc>} {
    %c0 = arith.constant 0 : index
    %c0_0 = arith.constant 0 : index
    %c0_1 = arith.constant 0 : index
    %0 = vector.load %arg0[%c0, %c0_0, %c0_1] : memref<8x8x64xf32, #tpu.memory_space<vmem>>, vector<8x8x64xf32>
    %1 = vector.shape_cast %0 : vector<8x8x64xf32> to vector<64x64xf32>
    %c0_2 = arith.constant 0 : index
    %c0_3 = arith.constant 0 : index
    %2 = vector.load %arg1[%c0_2, %c0_3] : memref<504x128xf32, #tpu.memory_space<vmem>>, vector<64x128xf32>
    %cst = arith.constant dense<0.000000e+00> : vector<64x128xf32>
    %3 = tpu.matmul %1, %2, %cst {dimension_numbers = #tpu.dot_dimension_numbers<[1], [0], [0], [1], [0, 0, 1, 1], [], []>} : vector<64x64xf32>, vector<64x128xf32>, vector<64x128xf32> -> vector<64x128xf32>
    %c96 = arith.constant 96 : index
    %c0_4 = arith.constant 0 : index
    %4 = vector.load %arg1[%c96, %c0_4] : memref<504x128xf32, #tpu.memory_space<vmem>>, vector<1x128xf32>
    %5 = vector.broadcast %4 : vector<1x128xf32> to vector<64x128xf32>
    %6 = arith.addf %3, %5 : vector<64x128xf32>
    %7 = vector.shape_cast %6 : vector<64x128xf32> to vector<8x8x128xf32>
    %c0_5 = arith.constant 0 : index
    %c0_6 = arith.constant 0 : index
    %c0_7 = arith.constant 0 : index
    %8 = vector.load %arg3[%c0_5, %c0_6, %c0_7] : memref<8x8x128xf32, #tpu.memory_space<vmem>>, vector<8x8x128xf32>
    tpu.vector_store %arg3[%c0_5, %c0_6, %c0_7], %7 {strides = array<i32>} : memref<8x8x128xf32, #tpu.memory_space<vmem>>, vector<8x8x128xf32>,
    %cst_8 = arith.constant 0.000000e+00 : f32
    %9 = vector.broadcast %cst_8 : f32 to vector<8x32xf32>
    %cst_9 = arith.constant 0.000000e+00 : f32
    %10 = vector.broadcast %cst_9 : f32 to vector<8x32xf32>
    %cst_10 = arith.constant 0.000000e+00 : f32
    %11 = vector.broadcast %cst_10 : f32 to vector<8x16xf32>
    %c0_i32 = arith.constant 0 : i32
    %12 = arith.index_cast %c0_i32 : i32 to index
    %c0_11 = arith.constant 0 : index
    %c0_12 = arith.constant 0 : index
    %13 = vector.load %arg3[%12, %c0_11, %c0_12] : memref<8x8x128xf32, #tpu.memory_space<vmem>>, vector<1x8x128xf32>
    %14 = vector.shape_cast %13 : vector<1x8x128xf32> to vector<8x128xf32>
    %c64 = arith.constant 64 : index
    %c0_13 = arith.constant 0 : index
    %15 = vector.load %arg1[%c64, %c0_13] : memref<504x128xf32, #tpu.memory_space<vmem>>, vector<32x128xf32>
    %cst_14 = arith.constant dense<0.000000e+00> : vector<8x128xf32>
    %16 = tpu.matmul %9, %15, %cst_14 {dimension_numbers = #tpu.dot_dimension_numbers<[1], [0], [0], [1], [0, 0, 1, 1], [], []>} : vector<8x32xf32>, vector<32x128xf32>, vector<8x128xf32> -> vector<8x128xf32>
    %17 = arith.addf %14, %16 : vector<8x128xf32>
    %18 = vector.extract_strided_slice %17 {offsets = [0, 0], sizes = [8, 96], strides = [1, 1]} : vector<8x128xf32> to vector<8x96xf32>
    %19 = arith.negf %18 : vector<8x96xf32>
    %20 = math.exp %19 : vector<8x96xf32>
    %cst_15 = arith.constant 1.000000e+00 : f32
    %21 = vector.broadcast %cst_15 : f32 to vector<8x96xf32>
    %22 = arith.addf %21, %20 : vector<8x96xf32>
    %23 = arith.divf %21, %22 : vector<8x96xf32>
    %24 = vector.extract_strided_slice %17 {offsets = [0, 96], sizes = [8, 32], strides = [1, 1]} : vector<8x128xf32> to vector<8x32xf32>
    %25 = math.tanh %24 : vector<8x32xf32>
    %26 = vector.extract_strided_slice %23 {offsets = [0, 0], sizes = [8, 32], strides = [1, 1]} : vector<8x96xf32> to vector<8x32xf32>
    %27 = vector.extract_strided_slice %23 {offsets = [0, 32], sizes = [8, 32], strides = [1, 1]} : vector<8x96xf32> to vector<8x32xf32>
    %28 = vector.extract_strided_slice %23 {offsets = [0, 64], sizes = [8, 32], strides = [1, 1]} : vector<8x96xf32> to vector<8x32xf32>
    %29 = arith.mulf %27, %10 : vector<8x32xf32>
    %30 = arith.mulf %26, %25 : vector<8x32xf32>
    %31 = arith.addf %29, %30 : vector<8x32xf32>
    %32 = math.tanh %31 : vector<8x32xf32>
    %33 = arith.mulf %28, %32 : vector<8x32xf32>
    %34 = tpu.concatenate %10, %31 in 1 : vector<8x32xf32>, vector<8x32xf32> -> vector<8x64xf32>
    %c104 = arith.constant 104 : index
    %c0_16 = arith.constant 0 : index
    %35 = vector.load %arg1[%c104, %c0_16] : memref<504x128xf32, #tpu.memory_space<vmem>>, vector<64x32xf32>
    %cst_17 = arith.constant dense<0.000000e+00> : vector<8x32xf32>
    %36 = tpu.matmul %34, %35, %cst_17 {dimension_numbers = #tpu.dot_dimension_numbers<[1], [0], [0], [1], [0, 0, 1, 1], [], []>} : vector<8x64xf32>, vector<64x32xf32>, vector<8x32xf32> -> vector<8x32xf32>
    %c168 = arith.constant 168 : index
    %c0_18 = arith.constant 0 : index
    %37 = vector.load %arg1[%c168, %c0_18] : memref<504x128xf32, #tpu.memory_space<vmem>>, vector<1x32xf32>
    %38 = vector.broadcast %37 : vector<1x32xf32> to vector<8x32xf32>
    %39 = arith.addf %36, %38 : vector<8x32xf32>
    %cst_19 = arith.constant 0.000000e+00 : f32
    %40 = vector.broadcast %cst_19 : f32 to vector<8x32xf32>
    %41 = arith.maximumf %39, %40 : vector<8x32xf32>
    %c176 = arith.constant 176 : index
    %c0_20 = arith.constant 0 : index
    %42 = vector.load %arg1[%c176, %c0_20] : memref<504x128xf32, #tpu.memory_space<vmem>>, vector<32x64xf32>
    %cst_21 = arith.constant dense<0.000000e+00> : vector<8x64xf32>
    %43 = tpu.matmul %41, %42, %cst_21 {dimension_numbers = #tpu.dot_dimension_numbers<[1], [0], [0], [1], [0, 0, 1, 1], [], []>} : vector<8x32xf32>, vector<32x64xf32>, vector<8x64xf32> -> vector<8x64xf32>
    %c208 = arith.constant 208 : index
    %c0_22 = arith.constant 0 : index
    %44 = vector.load %arg1[%c208, %c0_22] : memref<504x128xf32, #tpu.memory_space<vmem>>, vector<1x64xf32>
    %45 = vector.broadcast %44 : vector<1x64xf32> to vector<8x64xf32>
    %46 = arith.addf %43, %45 : vector<8x64xf32>
    %cst_23 = arith.constant dense<0xFF800000> : vector<8xf32>
    %47 = vector.multi_reduction <maximumf>, %46, %cst_23 [1] : vector<8x64xf32> to vector<8xf32>
    %48 = vector.shape_cast %47 : vector<8xf32> to vector<8x1xf32>
    %49 = vector.broadcast %48 : vector<8x1xf32> to vector<8x64xf32>
    %50 = arith.subf %46, %49 : vector<8x64xf32>
    %51 = math.exp %50 : vector<8x64xf32>
    %cst_24 = arith.constant dense<0.000000e+00> : vector<8xf32>
    %52 = vector.multi_reduction <add>, %51, %cst_24 [1] : vector<8x64xf32> to vector<8xf32>
    %53 = vector.shape_cast %52 : vector<8xf32> to vector<8x1xf32>
    %54 = tpu.reciprocal %53 {approx = true} : vector<8x1xf32> -> vector<8x1xf32>
    %55 = vector.broadcast %54 : vector<8x1xf32> to vector<8x64xf32>
    %56 = arith.mulf %51, %55 : vector<8x64xf32>
    %57 = arith.mulf %56, %34 : vector<8x64xf32>
    %c216 = arith.constant 216 : index
    %c0_25 = arith.constant 0 : index
    %58 = vector.load %arg1[%c216, %c0_25] : memref<504x128xf32, #tpu.memory_space<vmem>>, vector<64x96xf32>
    %cst_26 = arith.constant dense<0.000000e+00> : vector<8x96xf32>
    %59 = tpu.matmul %57, %58, %cst_26 {dimension_numbers = #tpu.dot_dimension_numbers<[1], [0], [0], [1], [0, 0, 1, 1], [], []>} : vector<8x64xf32>, vector<64x96xf32>, vector<8x96xf32> -> vector<8x96xf32>
    %c280 = arith.constant 280 : index
    %c0_27 = arith.constant 0 : index
    %60 = vector.load %arg1[%c280, %c0_27] : memref<504x128xf32, #tpu.memory_space<vmem>>, vector<16x96xf32>
    %cst_28 = arith.constant dense<0.000000e+00> : vector<8x96xf32>
    %61 = tpu.matmul %11, %60, %cst_28 {dimension_numbers = #tpu.dot_dimension_numbers<[1], [0], [0], [1], [0, 0, 1, 1], [], []>} : vector<8x16xf32>, vector<16x96xf32>, vector<8x96xf32> -> vector<8x96xf32>
    %62 = arith.addf %59, %61 : vector<8x96xf32>
    %c296 = arith.constant 296 : index
    %c0_29 = arith.constant 0 : index
    %63 = vector.load %arg1[%c296, %c0_29] : memref<504x128xf32, #tpu.memory_space<vmem>>, vector<1x96xf32>
    %64 = vector.broadcast %63 : vector<1x96xf32> to vector<8x96xf32>
    %65 = arith.addf %62, %64 : vector<8x96xf32>
    %cst_30 = arith.constant 0.000000e+00 : f32
    %66 = vector.broadcast %cst_30 : f32 to vector<8x96xf32>
    %67 = arith.maximumf %65, %66 : vector<8x96xf32>
    %c304 = arith.constant 304 : index
    %c0_31 = arith.constant 0 : index
    %68 = vector.load %arg1[%c304, %c0_31] : memref<504x128xf32, #tpu.memory_space<vmem>>, vector<96x48xf32>
    %cst_32 = arith.constant dense<0.000000e+00> : vector<8x48xf32>
    %69 = tpu.matmul %67, %68, %cst_32 {dimension_numbers = #tpu.dot_dimension_numbers<[1], [0], [0], [1], [0, 0, 1, 1], [], []>} : vector<8x96xf32>, vector<96x48xf32>, vector<8x48xf32> -> vector<8x48xf32>
    %c400 = arith.constant 400 : index
    %c0_33 = arith.constant 0 : index
    %70 = vector.load %arg1[%c400, %c0_33] : memref<504x128xf32, #tpu.memory_space<vmem>>, vector<1x48xf32>
    %71 = vector.broadcast %70 : vector<1x48xf32> to vector<8x48xf32>
    %72 = arith.addf %69, %71 : vector<8x48xf32>
    %73 = vector.extract_strided_slice %72 {offsets = [0, 0], sizes = [8, 16], strides = [1, 1]} : vector<8x48xf32> to vector<8x16xf32>
    %74 = math.tanh %73 : vector<8x16xf32>
    %75 = vector.extract_strided_slice %72 {offsets = [0, 16], sizes = [8, 32], strides = [1, 1]} : vector<8x48xf32> to vector<8x32xf32>
    %76 = arith.negf %75 : vector<8x32xf32>
    %77 = math.exp %76 : vector<8x32xf32>
    %cst_34 = arith.constant 1.000000e+00 : f32
    %78 = vector.broadcast %cst_34 : f32 to vector<8x32xf32>
    %79 = arith.addf %78, %77 : vector<8x32xf32>
    %80 = arith.divf %78, %79 : vector<8x32xf32>
    %81 = vector.extract_strided_slice %80 {offsets = [0, 0], sizes = [8, 16], strides = [1, 1]} : vector<8x32xf32> to vector<8x16xf32>
    %82 = arith.mulf %81, %11 : vector<8x16xf32>
    %83 = vector.extract_strided_slice %80 {offsets = [0, 16], sizes = [8, 16], strides = [1, 1]} : vector<8x32xf32> to vector<8x16xf32>
    %84 = arith.mulf %83, %74 : vector<8x16xf32>
    %85 = arith.addf %82, %84 : vector<8x16xf32>
    %c1_i32 = arith.constant 1 : i32
    %86 = arith.index_cast %c1_i32 : i32 to index
    %c0_35 = arith.constant 0 : index
    %c0_36 = arith.constant 0 : index
    %87 = vector.load %arg3[%86, %c0_35, %c0_36] : memref<8x8x128xf32, #tpu.memory_space<vmem>>, vector<1x8x128xf32>
    %88 = vector.shape_cast %87 : vector<1x8x128xf32> to vector<8x128xf32>
    %c64_37 = arith.constant 64 : index
    %c0_38 = arith.constant 0 : index
    %89 = vector.load %arg1[%c64_37, %c0_38] : memref<504x128xf32, #tpu.memory_space<vmem>>, vector<32x128xf32>
    %cst_39 = arith.constant dense<0.000000e+00> : vector<8x128xf32>
    %90 = tpu.matmul %33, %89, %cst_39 {dimension_numbers = #tpu.dot_dimension_numbers<[1], [0], [0], [1], [0, 0, 1, 1], [], []>} : vector<8x32xf32>, vector<32x128xf32>, vector<8x128xf32> -> vector<8x128xf32>
    %91 = arith.addf %88, %90 : vector<8x128xf32>
    %92 = vector.extract_strided_slice %91 {offsets = [0, 0], sizes = [8, 96], strides = [1, 1]} : vector<8x128xf32> to vector<8x96xf32>
    %93 = arith.negf %92 : vector<8x96xf32>
    %94 = math.exp %93 : vector<8x96xf32>
    %cst_40 = arith.constant 1.000000e+00 : f32
    %95 = vector.broadcast %cst_40 : f32 to vector<8x96xf32>
    %96 = arith.addf %95, %94 : vector<8x96xf32>
    %97 = arith.divf %95, %96 : vector<8x96xf32>
    %98 = vector.extract_strided_slice %91 {offsets = [0, 96], sizes = [8, 32], strides = [1, 1]} : vector<8x128xf32> to vector<8x32xf32>
    %99 = math.tanh %98 : vector<8x32xf32>
    %100 = vector.extract_strided_slice %97 {offsets = [0, 0], sizes = [8, 32], strides = [1, 1]} : vector<8x96xf32> to vector<8x32xf32>
    %101 = vector.extract_strided_slice %97 {offsets = [0, 32], sizes = [8, 32], strides = [1, 1]} : vector<8x96xf32> to vector<8x32xf32>
    %102 = vector.extract_strided_slice %97 {offsets = [0, 64], sizes = [8, 32], strides = [1, 1]} : vector<8x96xf32> to vector<8x32xf32>
    %103 = arith.mulf %101, %31 : vector<8x32xf32>
    %104 = arith.mulf %100, %99 : vector<8x32xf32>
    %105 = arith.addf %103, %104 : vector<8x32xf32>
    %106 = math.tanh %105 : vector<8x32xf32>
    %107 = arith.mulf %102, %106 : vector<8x32xf32>
    %108 = tpu.concatenate %31, %105 in 1 : vector<8x32xf32>, vector<8x32xf32> -> vector<8x64xf32>
    %c104_41 = arith.constant 104 : index
    %c0_42 = arith.constant 0 : index
    %109 = vector.load %arg1[%c104_41, %c0_42] : memref<504x128xf32, #tpu.memory_space<vmem>>, vector<64x32xf32>
    %cst_43 = arith.constant dense<0.000000e+00> : vector<8x32xf32>
    %110 = tpu.matmul %108, %109, %cst_43 {dimension_numbers = #tpu.dot_dimension_numbers<[1], [0], [0], [1], [0, 0, 1, 1], [], []>} : vector<8x64xf32>, vector<64x32xf32>, vector<8x32xf32> -> vector<8x32xf32>
    %c168_44 = arith.constant 168 : index
    %c0_45 = arith.constant 0 : index
    %111 = vector.load %arg1[%c168_44, %c0_45] : memref<504x128xf32, #tpu.memory_space<vmem>>, vector<1x32xf32>
    %112 = vector.broadcast %111 : vector<1x32xf32> to vector<8x32xf32>
    %113 = arith.addf %110, %112 : vector<8x32xf32>
    %cst_46 = arith.constant 0.000000e+00 : f32
    %114 = vector.broadcast %cst_46 : f32 to vector<8x32xf32>
    %115 = arith.maximumf %113, %114 : vector<8x32xf32>
    %c176_47 = arith.constant 176 : index
    %c0_48 = arith.constant 0 : index
    %116 = vector.load %arg1[%c176_47, %c0_48] : memref<504x128xf32, #tpu.memory_space<vmem>>, vector<32x64xf32>
    %cst_49 = arith.constant dense<0.000000e+00> : vector<8x64xf32>
    %117 = tpu.matmul %115, %116, %cst_49 {dimension_numbers = #tpu.dot_dimension_numbers<[1], [0], [0], [1], [0, 0, 1, 1], [], []>} : vector<8x32xf32>, vector<32x64xf32>, vector<8x64xf32> -> vector<8x64xf32>
    %c208_50 = arith.constant 208 : index
    %c0_51 = arith.constant 0 : index
    %118 = vector.load %arg1[%c208_50, %c0_51] : memref<504x128xf32, #tpu.memory_space<vmem>>, vector<1x64xf32>
    %119 = vector.broadcast %118 : vector<1x64xf32> to vector<8x64xf32>
    %120 = arith.addf %117, %119 : vector<8x64xf32>
    %cst_52 = arith.constant dense<0xFF800000> : vector<8xf32>
    %121 = vector.multi_reduction <maximumf>, %120, %cst_52 [1] : vector<8x64xf32> to vector<8xf32>
    %122 = vector.shape_cast %121 : vector<8xf32> to vector<8x1xf32>
    %123 = vector.broadcast %122 : vector<8x1xf32> to vector<8x64xf32>
    %124 = arith.subf %120, %123 : vector<8x64xf32>
    %125 = math.exp %124 : vector<8x64xf32>
    %cst_53 = arith.constant dense<0.000000e+00> : vector<8xf32>
    %126 = vector.multi_reduction <add>, %125, %cst_53 [1] : vector<8x64xf32> to vector<8xf32>
    %127 = vector.shape_cast %126 : vector<8xf32> to vector<8x1xf32>
    %128 = tpu.reciprocal %127 {approx = true} : vector<8x1xf32> -> vector<8x1xf32>
    %129 = vector.broadcast %128 : vector<8x1xf32> to vector<8x64xf32>
    %130 = arith.mulf %125, %129 : vector<8x64xf32>
    %131 = arith.mulf %130, %108 : vector<8x64xf32>
    %c216_54 = arith.constant 216 : index
    %c0_55 = arith.constant 0 : index
    %132 = vector.load %arg1[%c216_54, %c0_55] : memref<504x128xf32, #tpu.memory_space<vmem>>, vector<64x96xf32>
    %cst_56 = arith.constant dense<0.000000e+00> : vector<8x96xf32>
    %133 = tpu.matmul %131, %132, %cst_56 {dimension_numbers = #tpu.dot_dimension_numbers<[1], [0], [0], [1], [0, 0, 1, 1], [], []>} : vector<8x64xf32>, vector<64x96xf32>, vector<8x96xf32> -> vector<8x96xf32>
    %c280_57 = arith.constant 280 : index
    %c0_58 = arith.constant 0 : index
    %134 = vector.load %arg1[%c280_57, %c0_58] : memref<504x128xf32, #tpu.memory_space<vmem>>, vector<16x96xf32>
    %cst_59 = arith.constant dense<0.000000e+00> : vector<8x96xf32>
    %135 = tpu.matmul %85, %134, %cst_59 {dimension_numbers = #tpu.dot_dimension_numbers<[1], [0], [0], [1], [0, 0, 1, 1], [], []>} : vector<8x16xf32>, vector<16x96xf32>, vector<8x96xf32> -> vector<8x96xf32>
    %136 = arith.addf %133, %135 : vector<8x96xf32>
    %c296_60 = arith.constant 296 : index
    %c0_61 = arith.constant 0 : index
    %137 = vector.load %arg1[%c296_60, %c0_61] : memref<504x128xf32, #tpu.memory_space<vmem>>, vector<1x96xf32>
    %138 = vector.broadcast %137 : vector<1x96xf32> to vector<8x96xf32>
    %139 = arith.addf %136, %138 : vector<8x96xf32>
    %cst_62 = arith.constant 0.000000e+00 : f32
    %140 = vector.broadcast %cst_62 : f32 to vector<8x96xf32>
    %141 = arith.maximumf %139, %140 : vector<8x96xf32>
    %c304_63 = arith.constant 304 : index
    %c0_64 = arith.constant 0 : index
    %142 = vector.load %arg1[%c304_63, %c0_64] : memref<504x128xf32, #tpu.memory_space<vmem>>, vector<96x48xf32>
    %cst_65 = arith.constant dense<0.000000e+00> : vector<8x48xf32>
    %143 = tpu.matmul %141, %142, %cst_65 {dimension_numbers = #tpu.dot_dimension_numbers<[1], [0], [0], [1], [0, 0, 1, 1], [], []>} : vector<8x96xf32>, vector<96x48xf32>, vector<8x48xf32> -> vector<8x48xf32>
    %c400_66 = arith.constant 400 : index
    %c0_67 = arith.constant 0 : index
    %144 = vector.load %arg1[%c400_66, %c0_67] : memref<504x128xf32, #tpu.memory_space<vmem>>, vector<1x48xf32>
    %145 = vector.broadcast %144 : vector<1x48xf32> to vector<8x48xf32>
    %146 = arith.addf %143, %145 : vector<8x48xf32>
    %147 = vector.extract_strided_slice %146 {offsets = [0, 0], sizes = [8, 16], strides = [1, 1]} : vector<8x48xf32> to vector<8x16xf32>
    %148 = math.tanh %147 : vector<8x16xf32>
    %149 = vector.extract_strided_slice %146 {offsets = [0, 16], sizes = [8, 32], strides = [1, 1]} : vector<8x48xf32> to vector<8x32xf32>
    %150 = arith.negf %149 : vector<8x32xf32>
    %151 = math.exp %150 : vector<8x32xf32>
    %cst_68 = arith.constant 1.000000e+00 : f32
    %152 = vector.broadcast %cst_68 : f32 to vector<8x32xf32>
    %153 = arith.addf %152, %151 : vector<8x32xf32>
    %154 = arith.divf %152, %153 : vector<8x32xf32>
    %155 = vector.extract_strided_slice %154 {offsets = [0, 0], sizes = [8, 16], strides = [1, 1]} : vector<8x32xf32> to vector<8x16xf32>
    %156 = arith.mulf %155, %85 : vector<8x16xf32>
    %157 = vector.extract_strided_slice %154 {offsets = [0, 16], sizes = [8, 16], strides = [1, 1]} : vector<8x32xf32> to vector<8x16xf32>
    %158 = arith.mulf %157, %148 : vector<8x16xf32>
    %159 = arith.addf %156, %158 : vector<8x16xf32>
    %c2_i32 = arith.constant 2 : i32
    %160 = arith.index_cast %c2_i32 : i32 to index
    %c0_69 = arith.constant 0 : index
    %c0_70 = arith.constant 0 : index
    %161 = vector.load %arg3[%160, %c0_69, %c0_70] : memref<8x8x128xf32, #tpu.memory_space<vmem>>, vector<1x8x128xf32>
    %162 = vector.shape_cast %161 : vector<1x8x128xf32> to vector<8x128xf32>
    %c64_71 = arith.constant 64 : index
    %c0_72 = arith.constant 0 : index
    %163 = vector.load %arg1[%c64_71, %c0_72] : memref<504x128xf32, #tpu.memory_space<vmem>>, vector<32x128xf32>
    %cst_73 = arith.constant dense<0.000000e+00> : vector<8x128xf32>
    %164 = tpu.matmul %107, %163, %cst_73 {dimension_numbers = #tpu.dot_dimension_numbers<[1], [0], [0], [1], [0, 0, 1, 1], [], []>} : vector<8x32xf32>, vector<32x128xf32>, vector<8x128xf32> -> vector<8x128xf32>
    %165 = arith.addf %162, %164 : vector<8x128xf32>
    %166 = vector.extract_strided_slice %165 {offsets = [0, 0], sizes = [8, 96], strides = [1, 1]} : vector<8x128xf32> to vector<8x96xf32>
    %167 = arith.negf %166 : vector<8x96xf32>
    %168 = math.exp %167 : vector<8x96xf32>
    %cst_74 = arith.constant 1.000000e+00 : f32
    %169 = vector.broadcast %cst_74 : f32 to vector<8x96xf32>
    %170 = arith.addf %169, %168 : vector<8x96xf32>
    %171 = arith.divf %169, %170 : vector<8x96xf32>
    %172 = vector.extract_strided_slice %165 {offsets = [0, 96], sizes = [8, 32], strides = [1, 1]} : vector<8x128xf32> to vector<8x32xf32>
    %173 = math.tanh %172 : vector<8x32xf32>
    %174 = vector.extract_strided_slice %171 {offsets = [0, 0], sizes = [8, 32], strides = [1, 1]} : vector<8x96xf32> to vector<8x32xf32>
    %175 = vector.extract_strided_slice %171 {offsets = [0, 32], sizes = [8, 32], strides = [1, 1]} : vector<8x96xf32> to vector<8x32xf32>
    %176 = vector.extract_strided_slice %171 {offsets = [0, 64], sizes = [8, 32], strides = [1, 1]} : vector<8x96xf32> to vector<8x32xf32>
    %177 = arith.mulf %175, %105 : vector<8x32xf32>
    %178 = arith.mulf %174, %173 : vector<8x32xf32>
    %179 = arith.addf %177, %178 : vector<8x32xf32>
    %180 = math.tanh %179 : vector<8x32xf32>
    %181 = arith.mulf %176, %180 : vector<8x32xf32>
    %182 = tpu.concatenate %105, %179 in 1 : vector<8x32xf32>, vector<8x32xf32> -> vector<8x64xf32>
    %c104_75 = arith.constant 104 : index
    %c0_76 = arith.constant 0 : index
    %183 = vector.load %arg1[%c104_75, %c0_76] : memref<504x128xf32, #tpu.memory_space<vmem>>, vector<64x32xf32>
    %cst_77 = arith.constant dense<0.000000e+00> : vector<8x32xf32>
    %184 = tpu.matmul %182, %183, %cst_77 {dimension_numbers = #tpu.dot_dimension_numbers<[1], [0], [0], [1], [0, 0, 1, 1], [], []>} : vector<8x64xf32>, vector<64x32xf32>, vector<8x32xf32> -> vector<8x32xf32>
    %c168_78 = arith.constant 168 : index
    %c0_79 = arith.constant 0 : index
    %185 = vector.load %arg1[%c168_78, %c0_79] : memref<504x128xf32, #tpu.memory_space<vmem>>, vector<1x32xf32>
    %186 = vector.broadcast %185 : vector<1x32xf32> to vector<8x32xf32>
    %187 = arith.addf %184, %186 : vector<8x32xf32>
    %cst_80 = arith.constant 0.000000e+00 : f32
    %188 = vector.broadcast %cst_80 : f32 to vector<8x32xf32>
    %189 = arith.maximumf %187, %188 : vector<8x32xf32>
    %c176_81 = arith.constant 176 : index
    %c0_82 = arith.constant 0 : index
    %190 = vector.load %arg1[%c176_81, %c0_82] : memref<504x128xf32, #tpu.memory_space<vmem>>, vector<32x64xf32>
    %cst_83 = arith.constant dense<0.000000e+00> : vector<8x64xf32>
    %191 = tpu.matmul %189, %190, %cst_83 {dimension_numbers = #tpu.dot_dimension_numbers<[1], [0], [0], [1], [0, 0, 1, 1], [], []>} : vector<8x32xf32>, vector<32x64xf32>, vector<8x64xf32> -> vector<8x64xf32>
    %c208_84 = arith.constant 208 : index
    %c0_85 = arith.constant 0 : index
    %192 = vector.load %arg1[%c208_84, %c0_85] : memref<504x128xf32, #tpu.memory_space<vmem>>, vector<1x64xf32>
    %193 = vector.broadcast %192 : vector<1x64xf32> to vector<8x64xf32>
    %194 = arith.addf %191, %193 : vector<8x64xf32>
    %cst_86 = arith.constant dense<0xFF800000> : vector<8xf32>
    %195 = vector.multi_reduction <maximumf>, %194, %cst_86 [1] : vector<8x64xf32> to vector<8xf32>
    %196 = vector.shape_cast %195 : vector<8xf32> to vector<8x1xf32>
    %197 = vector.broadcast %196 : vector<8x1xf32> to vector<8x64xf32>
    %198 = arith.subf %194, %197 : vector<8x64xf32>
    %199 = math.exp %198 : vector<8x64xf32>
    %cst_87 = arith.constant dense<0.000000e+00> : vector<8xf32>
    %200 = vector.multi_reduction <add>, %199, %cst_87 [1] : vector<8x64xf32> to vector<8xf32>
    %201 = vector.shape_cast %200 : vector<8xf32> to vector<8x1xf32>
    %202 = tpu.reciprocal %201 {approx = true} : vector<8x1xf32> -> vector<8x1xf32>
    %203 = vector.broadcast %202 : vector<8x1xf32> to vector<8x64xf32>
    %204 = arith.mulf %199, %203 : vector<8x64xf32>
    %205 = arith.mulf %204, %182 : vector<8x64xf32>
    %c216_88 = arith.constant 216 : index
    %c0_89 = arith.constant 0 : index
    %206 = vector.load %arg1[%c216_88, %c0_89] : memref<504x128xf32, #tpu.memory_space<vmem>>, vector<64x96xf32>
    %cst_90 = arith.constant dense<0.000000e+00> : vector<8x96xf32>
    %207 = tpu.matmul %205, %206, %cst_90 {dimension_numbers = #tpu.dot_dimension_numbers<[1], [0], [0], [1], [0, 0, 1, 1], [], []>} : vector<8x64xf32>, vector<64x96xf32>, vector<8x96xf32> -> vector<8x96xf32>
    %c280_91 = arith.constant 280 : index
    %c0_92 = arith.constant 0 : index
    %208 = vector.load %arg1[%c280_91, %c0_92] : memref<504x128xf32, #tpu.memory_space<vmem>>, vector<16x96xf32>
    %cst_93 = arith.constant dense<0.000000e+00> : vector<8x96xf32>
    %209 = tpu.matmul %159, %208, %cst_93 {dimension_numbers = #tpu.dot_dimension_numbers<[1], [0], [0], [1], [0, 0, 1, 1], [], []>} : vector<8x16xf32>, vector<16x96xf32>, vector<8x96xf32> -> vector<8x96xf32>
    %210 = arith.addf %207, %209 : vector<8x96xf32>
    %c296_94 = arith.constant 296 : index
    %c0_95 = arith.constant 0 : index
    %211 = vector.load %arg1[%c296_94, %c0_95] : memref<504x128xf32, #tpu.memory_space<vmem>>, vector<1x96xf32>
    %212 = vector.broadcast %211 : vector<1x96xf32> to vector<8x96xf32>
    %213 = arith.addf %210, %212 : vector<8x96xf32>
    %cst_96 = arith.constant 0.000000e+00 : f32
    %214 = vector.broadcast %cst_96 : f32 to vector<8x96xf32>
    %215 = arith.maximumf %213, %214 : vector<8x96xf32>
    %c304_97 = arith.constant 304 : index
    %c0_98 = arith.constant 0 : index
    %216 = vector.load %arg1[%c304_97, %c0_98] : memref<504x128xf32, #tpu.memory_space<vmem>>, vector<96x48xf32>
    %cst_99 = arith.constant dense<0.000000e+00> : vector<8x48xf32>
    %217 = tpu.matmul %215, %216, %cst_99 {dimension_numbers = #tpu.dot_dimension_numbers<[1], [0], [0], [1], [0, 0, 1, 1], [], []>} : vector<8x96xf32>, vector<96x48xf32>, vector<8x48xf32> -> vector<8x48xf32>
    %c400_100 = arith.constant 400 : index
    %c0_101 = arith.constant 0 : index
    %218 = vector.load %arg1[%c400_100, %c0_101] : memref<504x128xf32, #tpu.memory_space<vmem>>, vector<1x48xf32>
    %219 = vector.broadcast %218 : vector<1x48xf32> to vector<8x48xf32>
    %220 = arith.addf %217, %219 : vector<8x48xf32>
    %221 = vector.extract_strided_slice %220 {offsets = [0, 0], sizes = [8, 16], strides = [1, 1]} : vector<8x48xf32> to vector<8x16xf32>
    %222 = math.tanh %221 : vector<8x16xf32>
    %223 = vector.extract_strided_slice %220 {offsets = [0, 16], sizes = [8, 32], strides = [1, 1]} : vector<8x48xf32> to vector<8x32xf32>
    %224 = arith.negf %223 : vector<8x32xf32>
    %225 = math.exp %224 : vector<8x32xf32>
    %cst_102 = arith.constant 1.000000e+00 : f32
    %226 = vector.broadcast %cst_102 : f32 to vector<8x32xf32>
    %227 = arith.addf %226, %225 : vector<8x32xf32>
    %228 = arith.divf %226, %227 : vector<8x32xf32>
    %229 = vector.extract_strided_slice %228 {offsets = [0, 0], sizes = [8, 16], strides = [1, 1]} : vector<8x32xf32> to vector<8x16xf32>
    %230 = arith.mulf %229, %159 : vector<8x16xf32>
    %231 = vector.extract_strided_slice %228 {offsets = [0, 16], sizes = [8, 16], strides = [1, 1]} : vector<8x32xf32> to vector<8x16xf32>
    %232 = arith.mulf %231, %222 : vector<8x16xf32>
    %233 = arith.addf %230, %232 : vector<8x16xf32>
    %c3_i32 = arith.constant 3 : i32
    %234 = arith.index_cast %c3_i32 : i32 to index
    %c0_103 = arith.constant 0 : index
    %c0_104 = arith.constant 0 : index
    %235 = vector.load %arg3[%234, %c0_103, %c0_104] : memref<8x8x128xf32, #tpu.memory_space<vmem>>, vector<1x8x128xf32>
    %236 = vector.shape_cast %235 : vector<1x8x128xf32> to vector<8x128xf32>
    %c64_105 = arith.constant 64 : index
    %c0_106 = arith.constant 0 : index
    %237 = vector.load %arg1[%c64_105, %c0_106] : memref<504x128xf32, #tpu.memory_space<vmem>>, vector<32x128xf32>
    %cst_107 = arith.constant dense<0.000000e+00> : vector<8x128xf32>
    %238 = tpu.matmul %181, %237, %cst_107 {dimension_numbers = #tpu.dot_dimension_numbers<[1], [0], [0], [1], [0, 0, 1, 1], [], []>} : vector<8x32xf32>, vector<32x128xf32>, vector<8x128xf32> -> vector<8x128xf32>
    %239 = arith.addf %236, %238 : vector<8x128xf32>
    %240 = vector.extract_strided_slice %239 {offsets = [0, 0], sizes = [8, 96], strides = [1, 1]} : vector<8x128xf32> to vector<8x96xf32>
    %241 = arith.negf %240 : vector<8x96xf32>
    %242 = math.exp %241 : vector<8x96xf32>
    %cst_108 = arith.constant 1.000000e+00 : f32
    %243 = vector.broadcast %cst_108 : f32 to vector<8x96xf32>
    %244 = arith.addf %243, %242 : vector<8x96xf32>
    %245 = arith.divf %243, %244 : vector<8x96xf32>
    %246 = vector.extract_strided_slice %239 {offsets = [0, 96], sizes = [8, 32], strides = [1, 1]} : vector<8x128xf32> to vector<8x32xf32>
    %247 = math.tanh %246 : vector<8x32xf32>
    %248 = vector.extract_strided_slice %245 {offsets = [0, 0], sizes = [8, 32], strides = [1, 1]} : vector<8x96xf32> to vector<8x32xf32>
    %249 = vector.extract_strided_slice %245 {offsets = [0, 32], sizes = [8, 32], strides = [1, 1]} : vector<8x96xf32> to vector<8x32xf32>
    %250 = vector.extract_strided_slice %245 {offsets = [0, 64], sizes = [8, 32], strides = [1, 1]} : vector<8x96xf32> to vector<8x32xf32>
    %251 = arith.mulf %249, %179 : vector<8x32xf32>
    %252 = arith.mulf %248, %247 : vector<8x32xf32>
    %253 = arith.addf %251, %252 : vector<8x32xf32>
    %254 = math.tanh %253 : vector<8x32xf32>
    %255 = arith.mulf %250, %254 : vector<8x32xf32>
    %256 = tpu.concatenate %179, %253 in 1 : vector<8x32xf32>, vector<8x32xf32> -> vector<8x64xf32>
    %c104_109 = arith.constant 104 : index
    %c0_110 = arith.constant 0 : index
    %257 = vector.load %arg1[%c104_109, %c0_110] : memref<504x128xf32, #tpu.memory_space<vmem>>, vector<64x32xf32>
    %cst_111 = arith.constant dense<0.000000e+00> : vector<8x32xf32>
    %258 = tpu.matmul %256, %257, %cst_111 {dimension_numbers = #tpu.dot_dimension_numbers<[1], [0], [0], [1], [0, 0, 1, 1], [], []>} : vector<8x64xf32>, vector<64x32xf32>, vector<8x32xf32> -> vector<8x32xf32>
    %c168_112 = arith.constant 168 : index
    %c0_113 = arith.constant 0 : index
    %259 = vector.load %arg1[%c168_112, %c0_113] : memref<504x128xf32, #tpu.memory_space<vmem>>, vector<1x32xf32>
    %260 = vector.broadcast %259 : vector<1x32xf32> to vector<8x32xf32>
    %261 = arith.addf %258, %260 : vector<8x32xf32>
    %cst_114 = arith.constant 0.000000e+00 : f32
    %262 = vector.broadcast %cst_114 : f32 to vector<8x32xf32>
    %263 = arith.maximumf %261, %262 : vector<8x32xf32>
    %c176_115 = arith.constant 176 : index
    %c0_116 = arith.constant 0 : index
    %264 = vector.load %arg1[%c176_115, %c0_116] : memref<504x128xf32, #tpu.memory_space<vmem>>, vector<32x64xf32>
    %cst_117 = arith.constant dense<0.000000e+00> : vector<8x64xf32>
    %265 = tpu.matmul %263, %264, %cst_117 {dimension_numbers = #tpu.dot_dimension_numbers<[1], [0], [0], [1], [0, 0, 1, 1], [], []>} : vector<8x32xf32>, vector<32x64xf32>, vector<8x64xf32> -> vector<8x64xf32>
    %c208_118 = arith.constant 208 : index
    %c0_119 = arith.constant 0 : index
    %266 = vector.load %arg1[%c208_118, %c0_119] : memref<504x128xf32, #tpu.memory_space<vmem>>, vector<1x64xf32>
    %267 = vector.broadcast %266 : vector<1x64xf32> to vector<8x64xf32>
    %268 = arith.addf %265, %267 : vector<8x64xf32>
    %cst_120 = arith.constant dense<0xFF800000> : vector<8xf32>
    %269 = vector.multi_reduction <maximumf>, %268, %cst_120 [1] : vector<8x64xf32> to vector<8xf32>
    %270 = vector.shape_cast %269 : vector<8xf32> to vector<8x1xf32>
    %271 = vector.broadcast %270 : vector<8x1xf32> to vector<8x64xf32>
    %272 = arith.subf %268, %271 : vector<8x64xf32>
    %273 = math.exp %272 : vector<8x64xf32>
    %cst_121 = arith.constant dense<0.000000e+00> : vector<8xf32>
    %274 = vector.multi_reduction <add>, %273, %cst_121 [1] : vector<8x64xf32> to vector<8xf32>
    %275 = vector.shape_cast %274 : vector<8xf32> to vector<8x1xf32>
    %276 = tpu.reciprocal %275 {approx = true} : vector<8x1xf32> -> vector<8x1xf32>
    %277 = vector.broadcast %276 : vector<8x1xf32> to vector<8x64xf32>
    %278 = arith.mulf %273, %277 : vector<8x64xf32>
    %279 = arith.mulf %278, %256 : vector<8x64xf32>
    %c216_122 = arith.constant 216 : index
    %c0_123 = arith.constant 0 : index
    %280 = vector.load %arg1[%c216_122, %c0_123] : memref<504x128xf32, #tpu.memory_space<vmem>>, vector<64x96xf32>
    %cst_124 = arith.constant dense<0.000000e+00> : vector<8x96xf32>
    %281 = tpu.matmul %279, %280, %cst_124 {dimension_numbers = #tpu.dot_dimension_numbers<[1], [0], [0], [1], [0, 0, 1, 1], [], []>} : vector<8x64xf32>, vector<64x96xf32>, vector<8x96xf32> -> vector<8x96xf32>
    %c280_125 = arith.constant 280 : index
    %c0_126 = arith.constant 0 : index
    %282 = vector.load %arg1[%c280_125, %c0_126] : memref<504x128xf32, #tpu.memory_space<vmem>>, vector<16x96xf32>
    %cst_127 = arith.constant dense<0.000000e+00> : vector<8x96xf32>
    %283 = tpu.matmul %233, %282, %cst_127 {dimension_numbers = #tpu.dot_dimension_numbers<[1], [0], [0], [1], [0, 0, 1, 1], [], []>} : vector<8x16xf32>, vector<16x96xf32>, vector<8x96xf32> -> vector<8x96xf32>
    %284 = arith.addf %281, %283 : vector<8x96xf32>
    %c296_128 = arith.constant 296 : index
    %c0_129 = arith.constant 0 : index
    %285 = vector.load %arg1[%c296_128, %c0_129] : memref<504x128xf32, #tpu.memory_space<vmem>>, vector<1x96xf32>
    %286 = vector.broadcast %285 : vector<1x96xf32> to vector<8x96xf32>
    %287 = arith.addf %284, %286 : vector<8x96xf32>
    %cst_130 = arith.constant 0.000000e+00 : f32
    %288 = vector.broadcast %cst_130 : f32 to vector<8x96xf32>
    %289 = arith.maximumf %287, %288 : vector<8x96xf32>
    %c304_131 = arith.constant 304 : index
    %c0_132 = arith.constant 0 : index
    %290 = vector.load %arg1[%c304_131, %c0_132] : memref<504x128xf32, #tpu.memory_space<vmem>>, vector<96x48xf32>
    %cst_133 = arith.constant dense<0.000000e+00> : vector<8x48xf32>
    %291 = tpu.matmul %289, %290, %cst_133 {dimension_numbers = #tpu.dot_dimension_numbers<[1], [0], [0], [1], [0, 0, 1, 1], [], []>} : vector<8x96xf32>, vector<96x48xf32>, vector<8x48xf32> -> vector<8x48xf32>
    %c400_134 = arith.constant 400 : index
    %c0_135 = arith.constant 0 : index
    %292 = vector.load %arg1[%c400_134, %c0_135] : memref<504x128xf32, #tpu.memory_space<vmem>>, vector<1x48xf32>
    %293 = vector.broadcast %292 : vector<1x48xf32> to vector<8x48xf32>
    %294 = arith.addf %291, %293 : vector<8x48xf32>
    %295 = vector.extract_strided_slice %294 {offsets = [0, 0], sizes = [8, 16], strides = [1, 1]} : vector<8x48xf32> to vector<8x16xf32>
    %296 = math.tanh %295 : vector<8x16xf32>
    %297 = vector.extract_strided_slice %294 {offsets = [0, 16], sizes = [8, 32], strides = [1, 1]} : vector<8x48xf32> to vector<8x32xf32>
    %298 = arith.negf %297 : vector<8x32xf32>
    %299 = math.exp %298 : vector<8x32xf32>
    %cst_136 = arith.constant 1.000000e+00 : f32
    %300 = vector.broadcast %cst_136 : f32 to vector<8x32xf32>
    %301 = arith.addf %300, %299 : vector<8x32xf32>
    %302 = arith.divf %300, %301 : vector<8x32xf32>
    %303 = vector.extract_strided_slice %302 {offsets = [0, 0], sizes = [8, 16], strides = [1, 1]} : vector<8x32xf32> to vector<8x16xf32>
    %304 = arith.mulf %303, %233 : vector<8x16xf32>
    %305 = vector.extract_strided_slice %302 {offsets = [0, 16], sizes = [8, 16], strides = [1, 1]} : vector<8x32xf32> to vector<8x16xf32>
    %306 = arith.mulf %305, %296 : vector<8x16xf32>
    %307 = arith.addf %304, %306 : vector<8x16xf32>
    %c4_i32 = arith.constant 4 : i32
    %308 = arith.index_cast %c4_i32 : i32 to index
    %c0_137 = arith.constant 0 : index
    %c0_138 = arith.constant 0 : index
    %309 = vector.load %arg3[%308, %c0_137, %c0_138] : memref<8x8x128xf32, #tpu.memory_space<vmem>>, vector<1x8x128xf32>
    %310 = vector.shape_cast %309 : vector<1x8x128xf32> to vector<8x128xf32>
    %c64_139 = arith.constant 64 : index
    %c0_140 = arith.constant 0 : index
    %311 = vector.load %arg1[%c64_139, %c0_140] : memref<504x128xf32, #tpu.memory_space<vmem>>, vector<32x128xf32>
    %cst_141 = arith.constant dense<0.000000e+00> : vector<8x128xf32>
    %312 = tpu.matmul %255, %311, %cst_141 {dimension_numbers = #tpu.dot_dimension_numbers<[1], [0], [0], [1], [0, 0, 1, 1], [], []>} : vector<8x32xf32>, vector<32x128xf32>, vector<8x128xf32> -> vector<8x128xf32>
    %313 = arith.addf %310, %312 : vector<8x128xf32>
    %314 = vector.extract_strided_slice %313 {offsets = [0, 0], sizes = [8, 96], strides = [1, 1]} : vector<8x128xf32> to vector<8x96xf32>
    %315 = arith.negf %314 : vector<8x96xf32>
    %316 = math.exp %315 : vector<8x96xf32>
    %cst_142 = arith.constant 1.000000e+00 : f32
    %317 = vector.broadcast %cst_142 : f32 to vector<8x96xf32>
    %318 = arith.addf %317, %316 : vector<8x96xf32>
    %319 = arith.divf %317, %318 : vector<8x96xf32>
    %320 = vector.extract_strided_slice %313 {offsets = [0, 96], sizes = [8, 32], strides = [1, 1]} : vector<8x128xf32> to vector<8x32xf32>
    %321 = math.tanh %320 : vector<8x32xf32>
    %322 = vector.extract_strided_slice %319 {offsets = [0, 0], sizes = [8, 32], strides = [1, 1]} : vector<8x96xf32> to vector<8x32xf32>
    %323 = vector.extract_strided_slice %319 {offsets = [0, 32], sizes = [8, 32], strides = [1, 1]} : vector<8x96xf32> to vector<8x32xf32>
    %324 = vector.extract_strided_slice %319 {offsets = [0, 64], sizes = [8, 32], strides = [1, 1]} : vector<8x96xf32> to vector<8x32xf32>
    %325 = arith.mulf %323, %253 : vector<8x32xf32>
    %326 = arith.mulf %322, %321 : vector<8x32xf32>
    %327 = arith.addf %325, %326 : vector<8x32xf32>
    %328 = math.tanh %327 : vector<8x32xf32>
    %329 = arith.mulf %324, %328 : vector<8x32xf32>
    %330 = tpu.concatenate %253, %327 in 1 : vector<8x32xf32>, vector<8x32xf32> -> vector<8x64xf32>
    %c104_143 = arith.constant 104 : index
    %c0_144 = arith.constant 0 : index
    %331 = vector.load %arg1[%c104_143, %c0_144] : memref<504x128xf32, #tpu.memory_space<vmem>>, vector<64x32xf32>
    %cst_145 = arith.constant dense<0.000000e+00> : vector<8x32xf32>
    %332 = tpu.matmul %330, %331, %cst_145 {dimension_numbers = #tpu.dot_dimension_numbers<[1], [0], [0], [1], [0, 0, 1, 1], [], []>} : vector<8x64xf32>, vector<64x32xf32>, vector<8x32xf32> -> vector<8x32xf32>
    %c168_146 = arith.constant 168 : index
    %c0_147 = arith.constant 0 : index
    %333 = vector.load %arg1[%c168_146, %c0_147] : memref<504x128xf32, #tpu.memory_space<vmem>>, vector<1x32xf32>
    %334 = vector.broadcast %333 : vector<1x32xf32> to vector<8x32xf32>
    %335 = arith.addf %332, %334 : vector<8x32xf32>
    %cst_148 = arith.constant 0.000000e+00 : f32
    %336 = vector.broadcast %cst_148 : f32 to vector<8x32xf32>
    %337 = arith.maximumf %335, %336 : vector<8x32xf32>
    %c176_149 = arith.constant 176 : index
    %c0_150 = arith.constant 0 : index
    %338 = vector.load %arg1[%c176_149, %c0_150] : memref<504x128xf32, #tpu.memory_space<vmem>>, vector<32x64xf32>
    %cst_151 = arith.constant dense<0.000000e+00> : vector<8x64xf32>
    %339 = tpu.matmul %337, %338, %cst_151 {dimension_numbers = #tpu.dot_dimension_numbers<[1], [0], [0], [1], [0, 0, 1, 1], [], []>} : vector<8x32xf32>, vector<32x64xf32>, vector<8x64xf32> -> vector<8x64xf32>
    %c208_152 = arith.constant 208 : index
    %c0_153 = arith.constant 0 : index
    %340 = vector.load %arg1[%c208_152, %c0_153] : memref<504x128xf32, #tpu.memory_space<vmem>>, vector<1x64xf32>
    %341 = vector.broadcast %340 : vector<1x64xf32> to vector<8x64xf32>
    %342 = arith.addf %339, %341 : vector<8x64xf32>
    %cst_154 = arith.constant dense<0xFF800000> : vector<8xf32>
    %343 = vector.multi_reduction <maximumf>, %342, %cst_154 [1] : vector<8x64xf32> to vector<8xf32>
    %344 = vector.shape_cast %343 : vector<8xf32> to vector<8x1xf32>
    %345 = vector.broadcast %344 : vector<8x1xf32> to vector<8x64xf32>
    %346 = arith.subf %342, %345 : vector<8x64xf32>
    %347 = math.exp %346 : vector<8x64xf32>
    %cst_155 = arith.constant dense<0.000000e+00> : vector<8xf32>
    %348 = vector.multi_reduction <add>, %347, %cst_155 [1] : vector<8x64xf32> to vector<8xf32>
    %349 = vector.shape_cast %348 : vector<8xf32> to vector<8x1xf32>
    %350 = tpu.reciprocal %349 {approx = true} : vector<8x1xf32> -> vector<8x1xf32>
    %351 = vector.broadcast %350 : vector<8x1xf32> to vector<8x64xf32>
    %352 = arith.mulf %347, %351 : vector<8x64xf32>
    %353 = arith.mulf %352, %330 : vector<8x64xf32>
    %c216_156 = arith.constant 216 : index
    %c0_157 = arith.constant 0 : index
    %354 = vector.load %arg1[%c216_156, %c0_157] : memref<504x128xf32, #tpu.memory_space<vmem>>, vector<64x96xf32>
    %cst_158 = arith.constant dense<0.000000e+00> : vector<8x96xf32>
    %355 = tpu.matmul %353, %354, %cst_158 {dimension_numbers = #tpu.dot_dimension_numbers<[1], [0], [0], [1], [0, 0, 1, 1], [], []>} : vector<8x64xf32>, vector<64x96xf32>, vector<8x96xf32> -> vector<8x96xf32>
    %c280_159 = arith.constant 280 : index
    %c0_160 = arith.constant 0 : index
    %356 = vector.load %arg1[%c280_159, %c0_160] : memref<504x128xf32, #tpu.memory_space<vmem>>, vector<16x96xf32>
    %cst_161 = arith.constant dense<0.000000e+00> : vector<8x96xf32>
    %357 = tpu.matmul %307, %356, %cst_161 {dimension_numbers = #tpu.dot_dimension_numbers<[1], [0], [0], [1], [0, 0, 1, 1], [], []>} : vector<8x16xf32>, vector<16x96xf32>, vector<8x96xf32> -> vector<8x96xf32>
    %358 = arith.addf %355, %357 : vector<8x96xf32>
    %c296_162 = arith.constant 296 : index
    %c0_163 = arith.constant 0 : index
    %359 = vector.load %arg1[%c296_162, %c0_163] : memref<504x128xf32, #tpu.memory_space<vmem>>, vector<1x96xf32>
    %360 = vector.broadcast %359 : vector<1x96xf32> to vector<8x96xf32>
    %361 = arith.addf %358, %360 : vector<8x96xf32>
    %cst_164 = arith.constant 0.000000e+00 : f32
    %362 = vector.broadcast %cst_164 : f32 to vector<8x96xf32>
    %363 = arith.maximumf %361, %362 : vector<8x96xf32>
    %c304_165 = arith.constant 304 : index
    %c0_166 = arith.constant 0 : index
    %364 = vector.load %arg1[%c304_165, %c0_166] : memref<504x128xf32, #tpu.memory_space<vmem>>, vector<96x48xf32>
    %cst_167 = arith.constant dense<0.000000e+00> : vector<8x48xf32>
    %365 = tpu.matmul %363, %364, %cst_167 {dimension_numbers = #tpu.dot_dimension_numbers<[1], [0], [0], [1], [0, 0, 1, 1], [], []>} : vector<8x96xf32>, vector<96x48xf32>, vector<8x48xf32> -> vector<8x48xf32>
    %c400_168 = arith.constant 400 : index
    %c0_169 = arith.constant 0 : index
    %366 = vector.load %arg1[%c400_168, %c0_169] : memref<504x128xf32, #tpu.memory_space<vmem>>, vector<1x48xf32>
    %367 = vector.broadcast %366 : vector<1x48xf32> to vector<8x48xf32>
    %368 = arith.addf %365, %367 : vector<8x48xf32>
    %369 = vector.extract_strided_slice %368 {offsets = [0, 0], sizes = [8, 16], strides = [1, 1]} : vector<8x48xf32> to vector<8x16xf32>
    %370 = math.tanh %369 : vector<8x16xf32>
    %371 = vector.extract_strided_slice %368 {offsets = [0, 16], sizes = [8, 32], strides = [1, 1]} : vector<8x48xf32> to vector<8x32xf32>
    %372 = arith.negf %371 : vector<8x32xf32>
    %373 = math.exp %372 : vector<8x32xf32>
    %cst_170 = arith.constant 1.000000e+00 : f32
    %374 = vector.broadcast %cst_170 : f32 to vector<8x32xf32>
    %375 = arith.addf %374, %373 : vector<8x32xf32>
    %376 = arith.divf %374, %375 : vector<8x32xf32>
    %377 = vector.extract_strided_slice %376 {offsets = [0, 0], sizes = [8, 16], strides = [1, 1]} : vector<8x32xf32> to vector<8x16xf32>
    %378 = arith.mulf %377, %307 : vector<8x16xf32>
    %379 = vector.extract_strided_slice %376 {offsets = [0, 16], sizes = [8, 16], strides = [1, 1]} : vector<8x32xf32> to vector<8x16xf32>
    %380 = arith.mulf %379, %370 : vector<8x16xf32>
    %381 = arith.addf %378, %380 : vector<8x16xf32>
    %c5_i32 = arith.constant 5 : i32
    %382 = arith.index_cast %c5_i32 : i32 to index
    %c0_171 = arith.constant 0 : index
    %c0_172 = arith.constant 0 : index
    %383 = vector.load %arg3[%382, %c0_171, %c0_172] : memref<8x8x128xf32, #tpu.memory_space<vmem>>, vector<1x8x128xf32>
    %384 = vector.shape_cast %383 : vector<1x8x128xf32> to vector<8x128xf32>
    %c64_173 = arith.constant 64 : index
    %c0_174 = arith.constant 0 : index
    %385 = vector.load %arg1[%c64_173, %c0_174] : memref<504x128xf32, #tpu.memory_space<vmem>>, vector<32x128xf32>
    %cst_175 = arith.constant dense<0.000000e+00> : vector<8x128xf32>
    %386 = tpu.matmul %329, %385, %cst_175 {dimension_numbers = #tpu.dot_dimension_numbers<[1], [0], [0], [1], [0, 0, 1, 1], [], []>} : vector<8x32xf32>, vector<32x128xf32>, vector<8x128xf32> -> vector<8x128xf32>
    %387 = arith.addf %384, %386 : vector<8x128xf32>
    %388 = vector.extract_strided_slice %387 {offsets = [0, 0], sizes = [8, 96], strides = [1, 1]} : vector<8x128xf32> to vector<8x96xf32>
    %389 = arith.negf %388 : vector<8x96xf32>
    %390 = math.exp %389 : vector<8x96xf32>
    %cst_176 = arith.constant 1.000000e+00 : f32
    %391 = vector.broadcast %cst_176 : f32 to vector<8x96xf32>
    %392 = arith.addf %391, %390 : vector<8x96xf32>
    %393 = arith.divf %391, %392 : vector<8x96xf32>
    %394 = vector.extract_strided_slice %387 {offsets = [0, 96], sizes = [8, 32], strides = [1, 1]} : vector<8x128xf32> to vector<8x32xf32>
    %395 = math.tanh %394 : vector<8x32xf32>
    %396 = vector.extract_strided_slice %393 {offsets = [0, 0], sizes = [8, 32], strides = [1, 1]} : vector<8x96xf32> to vector<8x32xf32>
    %397 = vector.extract_strided_slice %393 {offsets = [0, 32], sizes = [8, 32], strides = [1, 1]} : vector<8x96xf32> to vector<8x32xf32>
    %398 = vector.extract_strided_slice %393 {offsets = [0, 64], sizes = [8, 32], strides = [1, 1]} : vector<8x96xf32> to vector<8x32xf32>
    %399 = arith.mulf %397, %327 : vector<8x32xf32>
    %400 = arith.mulf %396, %395 : vector<8x32xf32>
    %401 = arith.addf %399, %400 : vector<8x32xf32>
    %402 = math.tanh %401 : vector<8x32xf32>
    %403 = arith.mulf %398, %402 : vector<8x32xf32>
    %404 = tpu.concatenate %327, %401 in 1 : vector<8x32xf32>, vector<8x32xf32> -> vector<8x64xf32>
    %c104_177 = arith.constant 104 : index
    %c0_178 = arith.constant 0 : index
    %405 = vector.load %arg1[%c104_177, %c0_178] : memref<504x128xf32, #tpu.memory_space<vmem>>, vector<64x32xf32>
    %cst_179 = arith.constant dense<0.000000e+00> : vector<8x32xf32>
    %406 = tpu.matmul %404, %405, %cst_179 {dimension_numbers = #tpu.dot_dimension_numbers<[1], [0], [0], [1], [0, 0, 1, 1], [], []>} : vector<8x64xf32>, vector<64x32xf32>, vector<8x32xf32> -> vector<8x32xf32>
    %c168_180 = arith.constant 168 : index
    %c0_181 = arith.constant 0 : index
    %407 = vector.load %arg1[%c168_180, %c0_181] : memref<504x128xf32, #tpu.memory_space<vmem>>, vector<1x32xf32>
    %408 = vector.broadcast %407 : vector<1x32xf32> to vector<8x32xf32>
    %409 = arith.addf %406, %408 : vector<8x32xf32>
    %cst_182 = arith.constant 0.000000e+00 : f32
    %410 = vector.broadcast %cst_182 : f32 to vector<8x32xf32>
    %411 = arith.maximumf %409, %410 : vector<8x32xf32>
    %c176_183 = arith.constant 176 : index
    %c0_184 = arith.constant 0 : index
    %412 = vector.load %arg1[%c176_183, %c0_184] : memref<504x128xf32, #tpu.memory_space<vmem>>, vector<32x64xf32>
    %cst_185 = arith.constant dense<0.000000e+00> : vector<8x64xf32>
    %413 = tpu.matmul %411, %412, %cst_185 {dimension_numbers = #tpu.dot_dimension_numbers<[1], [0], [0], [1], [0, 0, 1, 1], [], []>} : vector<8x32xf32>, vector<32x64xf32>, vector<8x64xf32> -> vector<8x64xf32>
    %c208_186 = arith.constant 208 : index
    %c0_187 = arith.constant 0 : index
    %414 = vector.load %arg1[%c208_186, %c0_187] : memref<504x128xf32, #tpu.memory_space<vmem>>, vector<1x64xf32>
    %415 = vector.broadcast %414 : vector<1x64xf32> to vector<8x64xf32>
    %416 = arith.addf %413, %415 : vector<8x64xf32>
    %cst_188 = arith.constant dense<0xFF800000> : vector<8xf32>
    %417 = vector.multi_reduction <maximumf>, %416, %cst_188 [1] : vector<8x64xf32> to vector<8xf32>
    %418 = vector.shape_cast %417 : vector<8xf32> to vector<8x1xf32>
    %419 = vector.broadcast %418 : vector<8x1xf32> to vector<8x64xf32>
    %420 = arith.subf %416, %419 : vector<8x64xf32>
    %421 = math.exp %420 : vector<8x64xf32>
    %cst_189 = arith.constant dense<0.000000e+00> : vector<8xf32>
    %422 = vector.multi_reduction <add>, %421, %cst_189 [1] : vector<8x64xf32> to vector<8xf32>
    %423 = vector.shape_cast %422 : vector<8xf32> to vector<8x1xf32>
    %424 = tpu.reciprocal %423 {approx = true} : vector<8x1xf32> -> vector<8x1xf32>
    %425 = vector.broadcast %424 : vector<8x1xf32> to vector<8x64xf32>
    %426 = arith.mulf %421, %425 : vector<8x64xf32>
    %427 = arith.mulf %426, %404 : vector<8x64xf32>
    %c216_190 = arith.constant 216 : index
    %c0_191 = arith.constant 0 : index
    %428 = vector.load %arg1[%c216_190, %c0_191] : memref<504x128xf32, #tpu.memory_space<vmem>>, vector<64x96xf32>
    %cst_192 = arith.constant dense<0.000000e+00> : vector<8x96xf32>
    %429 = tpu.matmul %427, %428, %cst_192 {dimension_numbers = #tpu.dot_dimension_numbers<[1], [0], [0], [1], [0, 0, 1, 1], [], []>} : vector<8x64xf32>, vector<64x96xf32>, vector<8x96xf32> -> vector<8x96xf32>
    %c280_193 = arith.constant 280 : index
    %c0_194 = arith.constant 0 : index
    %430 = vector.load %arg1[%c280_193, %c0_194] : memref<504x128xf32, #tpu.memory_space<vmem>>, vector<16x96xf32>
    %cst_195 = arith.constant dense<0.000000e+00> : vector<8x96xf32>
    %431 = tpu.matmul %381, %430, %cst_195 {dimension_numbers = #tpu.dot_dimension_numbers<[1], [0], [0], [1], [0, 0, 1, 1], [], []>} : vector<8x16xf32>, vector<16x96xf32>, vector<8x96xf32> -> vector<8x96xf32>
    %432 = arith.addf %429, %431 : vector<8x96xf32>
    %c296_196 = arith.constant 296 : index
    %c0_197 = arith.constant 0 : index
    %433 = vector.load %arg1[%c296_196, %c0_197] : memref<504x128xf32, #tpu.memory_space<vmem>>, vector<1x96xf32>
    %434 = vector.broadcast %433 : vector<1x96xf32> to vector<8x96xf32>
    %435 = arith.addf %432, %434 : vector<8x96xf32>
    %cst_198 = arith.constant 0.000000e+00 : f32
    %436 = vector.broadcast %cst_198 : f32 to vector<8x96xf32>
    %437 = arith.maximumf %435, %436 : vector<8x96xf32>
    %c304_199 = arith.constant 304 : index
    %c0_200 = arith.constant 0 : index
    %438 = vector.load %arg1[%c304_199, %c0_200] : memref<504x128xf32, #tpu.memory_space<vmem>>, vector<96x48xf32>
    %cst_201 = arith.constant dense<0.000000e+00> : vector<8x48xf32>
    %439 = tpu.matmul %437, %438, %cst_201 {dimension_numbers = #tpu.dot_dimension_numbers<[1], [0], [0], [1], [0, 0, 1, 1], [], []>} : vector<8x96xf32>, vector<96x48xf32>, vector<8x48xf32> -> vector<8x48xf32>
    %c400_202 = arith.constant 400 : index
    %c0_203 = arith.constant 0 : index
    %440 = vector.load %arg1[%c400_202, %c0_203] : memref<504x128xf32, #tpu.memory_space<vmem>>, vector<1x48xf32>
    %441 = vector.broadcast %440 : vector<1x48xf32> to vector<8x48xf32>
    %442 = arith.addf %439, %441 : vector<8x48xf32>
    %443 = vector.extract_strided_slice %442 {offsets = [0, 0], sizes = [8, 16], strides = [1, 1]} : vector<8x48xf32> to vector<8x16xf32>
    %444 = math.tanh %443 : vector<8x16xf32>
    %445 = vector.extract_strided_slice %442 {offsets = [0, 16], sizes = [8, 32], strides = [1, 1]} : vector<8x48xf32> to vector<8x32xf32>
    %446 = arith.negf %445 : vector<8x32xf32>
    %447 = math.exp %446 : vector<8x32xf32>
    %cst_204 = arith.constant 1.000000e+00 : f32
    %448 = vector.broadcast %cst_204 : f32 to vector<8x32xf32>
    %449 = arith.addf %448, %447 : vector<8x32xf32>
    %450 = arith.divf %448, %449 : vector<8x32xf32>
    %451 = vector.extract_strided_slice %450 {offsets = [0, 0], sizes = [8, 16], strides = [1, 1]} : vector<8x32xf32> to vector<8x16xf32>
    %452 = arith.mulf %451, %381 : vector<8x16xf32>
    %453 = vector.extract_strided_slice %450 {offsets = [0, 16], sizes = [8, 16], strides = [1, 1]} : vector<8x32xf32> to vector<8x16xf32>
    %454 = arith.mulf %453, %444 : vector<8x16xf32>
    %455 = arith.addf %452, %454 : vector<8x16xf32>
    %c6_i32 = arith.constant 6 : i32
    %456 = arith.index_cast %c6_i32 : i32 to index
    %c0_205 = arith.constant 0 : index
    %c0_206 = arith.constant 0 : index
    %457 = vector.load %arg3[%456, %c0_205, %c0_206] : memref<8x8x128xf32, #tpu.memory_space<vmem>>, vector<1x8x128xf32>
    %458 = vector.shape_cast %457 : vector<1x8x128xf32> to vector<8x128xf32>
    %c64_207 = arith.constant 64 : index
    %c0_208 = arith.constant 0 : index
    %459 = vector.load %arg1[%c64_207, %c0_208] : memref<504x128xf32, #tpu.memory_space<vmem>>, vector<32x128xf32>
    %cst_209 = arith.constant dense<0.000000e+00> : vector<8x128xf32>
    %460 = tpu.matmul %403, %459, %cst_209 {dimension_numbers = #tpu.dot_dimension_numbers<[1], [0], [0], [1], [0, 0, 1, 1], [], []>} : vector<8x32xf32>, vector<32x128xf32>, vector<8x128xf32> -> vector<8x128xf32>
    %461 = arith.addf %458, %460 : vector<8x128xf32>
    %462 = vector.extract_strided_slice %461 {offsets = [0, 0], sizes = [8, 96], strides = [1, 1]} : vector<8x128xf32> to vector<8x96xf32>
    %463 = arith.negf %462 : vector<8x96xf32>
    %464 = math.exp %463 : vector<8x96xf32>
    %cst_210 = arith.constant 1.000000e+00 : f32
    %465 = vector.broadcast %cst_210 : f32 to vector<8x96xf32>
    %466 = arith.addf %465, %464 : vector<8x96xf32>
    %467 = arith.divf %465, %466 : vector<8x96xf32>
    %468 = vector.extract_strided_slice %461 {offsets = [0, 96], sizes = [8, 32], strides = [1, 1]} : vector<8x128xf32> to vector<8x32xf32>
    %469 = math.tanh %468 : vector<8x32xf32>
    %470 = vector.extract_strided_slice %467 {offsets = [0, 0], sizes = [8, 32], strides = [1, 1]} : vector<8x96xf32> to vector<8x32xf32>
    %471 = vector.extract_strided_slice %467 {offsets = [0, 32], sizes = [8, 32], strides = [1, 1]} : vector<8x96xf32> to vector<8x32xf32>
    %472 = vector.extract_strided_slice %467 {offsets = [0, 64], sizes = [8, 32], strides = [1, 1]} : vector<8x96xf32> to vector<8x32xf32>
    %473 = arith.mulf %471, %401 : vector<8x32xf32>
    %474 = arith.mulf %470, %469 : vector<8x32xf32>
    %475 = arith.addf %473, %474 : vector<8x32xf32>
    %476 = math.tanh %475 : vector<8x32xf32>
    %477 = arith.mulf %472, %476 : vector<8x32xf32>
    %478 = tpu.concatenate %401, %475 in 1 : vector<8x32xf32>, vector<8x32xf32> -> vector<8x64xf32>
    %c104_211 = arith.constant 104 : index
    %c0_212 = arith.constant 0 : index
    %479 = vector.load %arg1[%c104_211, %c0_212] : memref<504x128xf32, #tpu.memory_space<vmem>>, vector<64x32xf32>
    %cst_213 = arith.constant dense<0.000000e+00> : vector<8x32xf32>
    %480 = tpu.matmul %478, %479, %cst_213 {dimension_numbers = #tpu.dot_dimension_numbers<[1], [0], [0], [1], [0, 0, 1, 1], [], []>} : vector<8x64xf32>, vector<64x32xf32>, vector<8x32xf32> -> vector<8x32xf32>
    %c168_214 = arith.constant 168 : index
    %c0_215 = arith.constant 0 : index
    %481 = vector.load %arg1[%c168_214, %c0_215] : memref<504x128xf32, #tpu.memory_space<vmem>>, vector<1x32xf32>
    %482 = vector.broadcast %481 : vector<1x32xf32> to vector<8x32xf32>
    %483 = arith.addf %480, %482 : vector<8x32xf32>
    %cst_216 = arith.constant 0.000000e+00 : f32
    %484 = vector.broadcast %cst_216 : f32 to vector<8x32xf32>
    %485 = arith.maximumf %483, %484 : vector<8x32xf32>
    %c176_217 = arith.constant 176 : index
    %c0_218 = arith.constant 0 : index
    %486 = vector.load %arg1[%c176_217, %c0_218] : memref<504x128xf32, #tpu.memory_space<vmem>>, vector<32x64xf32>
    %cst_219 = arith.constant dense<0.000000e+00> : vector<8x64xf32>
    %487 = tpu.matmul %485, %486, %cst_219 {dimension_numbers = #tpu.dot_dimension_numbers<[1], [0], [0], [1], [0, 0, 1, 1], [], []>} : vector<8x32xf32>, vector<32x64xf32>, vector<8x64xf32> -> vector<8x64xf32>
    %c208_220 = arith.constant 208 : index
    %c0_221 = arith.constant 0 : index
    %488 = vector.load %arg1[%c208_220, %c0_221] : memref<504x128xf32, #tpu.memory_space<vmem>>, vector<1x64xf32>
    %489 = vector.broadcast %488 : vector<1x64xf32> to vector<8x64xf32>
    %490 = arith.addf %487, %489 : vector<8x64xf32>
    %cst_222 = arith.constant dense<0xFF800000> : vector<8xf32>
    %491 = vector.multi_reduction <maximumf>, %490, %cst_222 [1] : vector<8x64xf32> to vector<8xf32>
    %492 = vector.shape_cast %491 : vector<8xf32> to vector<8x1xf32>
    %493 = vector.broadcast %492 : vector<8x1xf32> to vector<8x64xf32>
    %494 = arith.subf %490, %493 : vector<8x64xf32>
    %495 = math.exp %494 : vector<8x64xf32>
    %cst_223 = arith.constant dense<0.000000e+00> : vector<8xf32>
    %496 = vector.multi_reduction <add>, %495, %cst_223 [1] : vector<8x64xf32> to vector<8xf32>
    %497 = vector.shape_cast %496 : vector<8xf32> to vector<8x1xf32>
    %498 = tpu.reciprocal %497 {approx = true} : vector<8x1xf32> -> vector<8x1xf32>
    %499 = vector.broadcast %498 : vector<8x1xf32> to vector<8x64xf32>
    %500 = arith.mulf %495, %499 : vector<8x64xf32>
    %501 = arith.mulf %500, %478 : vector<8x64xf32>
    %c216_224 = arith.constant 216 : index
    %c0_225 = arith.constant 0 : index
    %502 = vector.load %arg1[%c216_224, %c0_225] : memref<504x128xf32, #tpu.memory_space<vmem>>, vector<64x96xf32>
    %cst_226 = arith.constant dense<0.000000e+00> : vector<8x96xf32>
    %503 = tpu.matmul %501, %502, %cst_226 {dimension_numbers = #tpu.dot_dimension_numbers<[1], [0], [0], [1], [0, 0, 1, 1], [], []>} : vector<8x64xf32>, vector<64x96xf32>, vector<8x96xf32> -> vector<8x96xf32>
    %c280_227 = arith.constant 280 : index
    %c0_228 = arith.constant 0 : index
    %504 = vector.load %arg1[%c280_227, %c0_228] : memref<504x128xf32, #tpu.memory_space<vmem>>, vector<16x96xf32>
    %cst_229 = arith.constant dense<0.000000e+00> : vector<8x96xf32>
    %505 = tpu.matmul %455, %504, %cst_229 {dimension_numbers = #tpu.dot_dimension_numbers<[1], [0], [0], [1], [0, 0, 1, 1], [], []>} : vector<8x16xf32>, vector<16x96xf32>, vector<8x96xf32> -> vector<8x96xf32>
    %506 = arith.addf %503, %505 : vector<8x96xf32>
    %c296_230 = arith.constant 296 : index
    %c0_231 = arith.constant 0 : index
    %507 = vector.load %arg1[%c296_230, %c0_231] : memref<504x128xf32, #tpu.memory_space<vmem>>, vector<1x96xf32>
    %508 = vector.broadcast %507 : vector<1x96xf32> to vector<8x96xf32>
    %509 = arith.addf %506, %508 : vector<8x96xf32>
    %cst_232 = arith.constant 0.000000e+00 : f32
    %510 = vector.broadcast %cst_232 : f32 to vector<8x96xf32>
    %511 = arith.maximumf %509, %510 : vector<8x96xf32>
    %c304_233 = arith.constant 304 : index
    %c0_234 = arith.constant 0 : index
    %512 = vector.load %arg1[%c304_233, %c0_234] : memref<504x128xf32, #tpu.memory_space<vmem>>, vector<96x48xf32>
    %cst_235 = arith.constant dense<0.000000e+00> : vector<8x48xf32>
    %513 = tpu.matmul %511, %512, %cst_235 {dimension_numbers = #tpu.dot_dimension_numbers<[1], [0], [0], [1], [0, 0, 1, 1], [], []>} : vector<8x96xf32>, vector<96x48xf32>, vector<8x48xf32> -> vector<8x48xf32>
    %c400_236 = arith.constant 400 : index
    %c0_237 = arith.constant 0 : index
    %514 = vector.load %arg1[%c400_236, %c0_237] : memref<504x128xf32, #tpu.memory_space<vmem>>, vector<1x48xf32>
    %515 = vector.broadcast %514 : vector<1x48xf32> to vector<8x48xf32>
    %516 = arith.addf %513, %515 : vector<8x48xf32>
    %517 = vector.extract_strided_slice %516 {offsets = [0, 0], sizes = [8, 16], strides = [1, 1]} : vector<8x48xf32> to vector<8x16xf32>
    %518 = math.tanh %517 : vector<8x16xf32>
    %519 = vector.extract_strided_slice %516 {offsets = [0, 16], sizes = [8, 32], strides = [1, 1]} : vector<8x48xf32> to vector<8x32xf32>
    %520 = arith.negf %519 : vector<8x32xf32>
    %521 = math.exp %520 : vector<8x32xf32>
    %cst_238 = arith.constant 1.000000e+00 : f32
    %522 = vector.broadcast %cst_238 : f32 to vector<8x32xf32>
    %523 = arith.addf %522, %521 : vector<8x32xf32>
    %524 = arith.divf %522, %523 : vector<8x32xf32>
    %525 = vector.extract_strided_slice %524 {offsets = [0, 0], sizes = [8, 16], strides = [1, 1]} : vector<8x32xf32> to vector<8x16xf32>
    %526 = arith.mulf %525, %455 : vector<8x16xf32>
    %527 = vector.extract_strided_slice %524 {offsets = [0, 16], sizes = [8, 16], strides = [1, 1]} : vector<8x32xf32> to vector<8x16xf32>
    %528 = arith.mulf %527, %518 : vector<8x16xf32>
    %529 = arith.addf %526, %528 : vector<8x16xf32>
    %c7_i32 = arith.constant 7 : i32
    %530 = arith.index_cast %c7_i32 : i32 to index
    %c0_239 = arith.constant 0 : index
    %c0_240 = arith.constant 0 : index
    %531 = vector.load %arg3[%530, %c0_239, %c0_240] : memref<8x8x128xf32, #tpu.memory_space<vmem>>, vector<1x8x128xf32>
    %532 = vector.shape_cast %531 : vector<1x8x128xf32> to vector<8x128xf32>
    %c64_241 = arith.constant 64 : index
    %c0_242 = arith.constant 0 : index
    %533 = vector.load %arg1[%c64_241, %c0_242] : memref<504x128xf32, #tpu.memory_space<vmem>>, vector<32x128xf32>
    %cst_243 = arith.constant dense<0.000000e+00> : vector<8x128xf32>
    %534 = tpu.matmul %477, %533, %cst_243 {dimension_numbers = #tpu.dot_dimension_numbers<[1], [0], [0], [1], [0, 0, 1, 1], [], []>} : vector<8x32xf32>, vector<32x128xf32>, vector<8x128xf32> -> vector<8x128xf32>
    %535 = arith.addf %532, %534 : vector<8x128xf32>
    %536 = vector.extract_strided_slice %535 {offsets = [0, 0], sizes = [8, 96], strides = [1, 1]} : vector<8x128xf32> to vector<8x96xf32>
    %537 = arith.negf %536 : vector<8x96xf32>
    %538 = math.exp %537 : vector<8x96xf32>
    %cst_244 = arith.constant 1.000000e+00 : f32
    %539 = vector.broadcast %cst_244 : f32 to vector<8x96xf32>
    %540 = arith.addf %539, %538 : vector<8x96xf32>
    %541 = arith.divf %539, %540 : vector<8x96xf32>
    %542 = vector.extract_strided_slice %535 {offsets = [0, 96], sizes = [8, 32], strides = [1, 1]} : vector<8x128xf32> to vector<8x32xf32>
    %543 = math.tanh %542 : vector<8x32xf32>
    %544 = vector.extract_strided_slice %541 {offsets = [0, 0], sizes = [8, 32], strides = [1, 1]} : vector<8x96xf32> to vector<8x32xf32>
    %545 = vector.extract_strided_slice %541 {offsets = [0, 32], sizes = [8, 32], strides = [1, 1]} : vector<8x96xf32> to vector<8x32xf32>
    %546 = vector.extract_strided_slice %541 {offsets = [0, 64], sizes = [8, 32], strides = [1, 1]} : vector<8x96xf32> to vector<8x32xf32>
    %547 = arith.mulf %545, %475 : vector<8x32xf32>
    %548 = arith.mulf %544, %543 : vector<8x32xf32>
    %549 = arith.addf %547, %548 : vector<8x32xf32>
    %550 = math.tanh %549 : vector<8x32xf32>
    %551 = arith.mulf %546, %550 : vector<8x32xf32>
    %552 = tpu.concatenate %475, %549 in 1 : vector<8x32xf32>, vector<8x32xf32> -> vector<8x64xf32>
    %c104_245 = arith.constant 104 : index
    %c0_246 = arith.constant 0 : index
    %553 = vector.load %arg1[%c104_245, %c0_246] : memref<504x128xf32, #tpu.memory_space<vmem>>, vector<64x32xf32>
    %cst_247 = arith.constant dense<0.000000e+00> : vector<8x32xf32>
    %554 = tpu.matmul %552, %553, %cst_247 {dimension_numbers = #tpu.dot_dimension_numbers<[1], [0], [0], [1], [0, 0, 1, 1], [], []>} : vector<8x64xf32>, vector<64x32xf32>, vector<8x32xf32> -> vector<8x32xf32>
    %c168_248 = arith.constant 168 : index
    %c0_249 = arith.constant 0 : index
    %555 = vector.load %arg1[%c168_248, %c0_249] : memref<504x128xf32, #tpu.memory_space<vmem>>, vector<1x32xf32>
    %556 = vector.broadcast %555 : vector<1x32xf32> to vector<8x32xf32>
    %557 = arith.addf %554, %556 : vector<8x32xf32>
    %cst_250 = arith.constant 0.000000e+00 : f32
    %558 = vector.broadcast %cst_250 : f32 to vector<8x32xf32>
    %559 = arith.maximumf %557, %558 : vector<8x32xf32>
    %c176_251 = arith.constant 176 : index
    %c0_252 = arith.constant 0 : index
    %560 = vector.load %arg1[%c176_251, %c0_252] : memref<504x128xf32, #tpu.memory_space<vmem>>, vector<32x64xf32>
    %cst_253 = arith.constant dense<0.000000e+00> : vector<8x64xf32>
    %561 = tpu.matmul %559, %560, %cst_253 {dimension_numbers = #tpu.dot_dimension_numbers<[1], [0], [0], [1], [0, 0, 1, 1], [], []>} : vector<8x32xf32>, vector<32x64xf32>, vector<8x64xf32> -> vector<8x64xf32>
    %c208_254 = arith.constant 208 : index
    %c0_255 = arith.constant 0 : index
    %562 = vector.load %arg1[%c208_254, %c0_255] : memref<504x128xf32, #tpu.memory_space<vmem>>, vector<1x64xf32>
    %563 = vector.broadcast %562 : vector<1x64xf32> to vector<8x64xf32>
    %564 = arith.addf %561, %563 : vector<8x64xf32>
    %cst_256 = arith.constant dense<0xFF800000> : vector<8xf32>
    %565 = vector.multi_reduction <maximumf>, %564, %cst_256 [1] : vector<8x64xf32> to vector<8xf32>
    %566 = vector.shape_cast %565 : vector<8xf32> to vector<8x1xf32>
    %567 = vector.broadcast %566 : vector<8x1xf32> to vector<8x64xf32>
    %568 = arith.subf %564, %567 : vector<8x64xf32>
    %569 = math.exp %568 : vector<8x64xf32>
    %cst_257 = arith.constant dense<0.000000e+00> : vector<8xf32>
    %570 = vector.multi_reduction <add>, %569, %cst_257 [1] : vector<8x64xf32> to vector<8xf32>
    %571 = vector.shape_cast %570 : vector<8xf32> to vector<8x1xf32>
    %572 = tpu.reciprocal %571 {approx = true} : vector<8x1xf32> -> vector<8x1xf32>
    %573 = vector.broadcast %572 : vector<8x1xf32> to vector<8x64xf32>
    %574 = arith.mulf %569, %573 : vector<8x64xf32>
    %575 = arith.mulf %574, %552 : vector<8x64xf32>
    %c216_258 = arith.constant 216 : index
    %c0_259 = arith.constant 0 : index
    %576 = vector.load %arg1[%c216_258, %c0_259] : memref<504x128xf32, #tpu.memory_space<vmem>>, vector<64x96xf32>
    %cst_260 = arith.constant dense<0.000000e+00> : vector<8x96xf32>
    %577 = tpu.matmul %575, %576, %cst_260 {dimension_numbers = #tpu.dot_dimension_numbers<[1], [0], [0], [1], [0, 0, 1, 1], [], []>} : vector<8x64xf32>, vector<64x96xf32>, vector<8x96xf32> -> vector<8x96xf32>
    %c280_261 = arith.constant 280 : index
    %c0_262 = arith.constant 0 : index
    %578 = vector.load %arg1[%c280_261, %c0_262] : memref<504x128xf32, #tpu.memory_space<vmem>>, vector<16x96xf32>
    %cst_263 = arith.constant dense<0.000000e+00> : vector<8x96xf32>
    %579 = tpu.matmul %529, %578, %cst_263 {dimension_numbers = #tpu.dot_dimension_numbers<[1], [0], [0], [1], [0, 0, 1, 1], [], []>} : vector<8x16xf32>, vector<16x96xf32>, vector<8x96xf32> -> vector<8x96xf32>
    %580 = arith.addf %577, %579 : vector<8x96xf32>
    %c296_264 = arith.constant 296 : index
    %c0_265 = arith.constant 0 : index
    %581 = vector.load %arg1[%c296_264, %c0_265] : memref<504x128xf32, #tpu.memory_space<vmem>>, vector<1x96xf32>
    %582 = vector.broadcast %581 : vector<1x96xf32> to vector<8x96xf32>
    %583 = arith.addf %580, %582 : vector<8x96xf32>
    %cst_266 = arith.constant 0.000000e+00 : f32
    %584 = vector.broadcast %cst_266 : f32 to vector<8x96xf32>
    %585 = arith.maximumf %583, %584 : vector<8x96xf32>
    %c304_267 = arith.constant 304 : index
    %c0_268 = arith.constant 0 : index
    %586 = vector.load %arg1[%c304_267, %c0_268] : memref<504x128xf32, #tpu.memory_space<vmem>>, vector<96x48xf32>
    %cst_269 = arith.constant dense<0.000000e+00> : vector<8x48xf32>
    %587 = tpu.matmul %585, %586, %cst_269 {dimension_numbers = #tpu.dot_dimension_numbers<[1], [0], [0], [1], [0, 0, 1, 1], [], []>} : vector<8x96xf32>, vector<96x48xf32>, vector<8x48xf32> -> vector<8x48xf32>
    %c400_270 = arith.constant 400 : index
    %c0_271 = arith.constant 0 : index
    %588 = vector.load %arg1[%c400_270, %c0_271] : memref<504x128xf32, #tpu.memory_space<vmem>>, vector<1x48xf32>
    %589 = vector.broadcast %588 : vector<1x48xf32> to vector<8x48xf32>
    %590 = arith.addf %587, %589 : vector<8x48xf32>
    %591 = vector.extract_strided_slice %590 {offsets = [0, 0], sizes = [8, 16], strides = [1, 1]} : vector<8x48xf32> to vector<8x16xf32>
    %592 = math.tanh %591 : vector<8x16xf32>
    %593 = vector.extract_strided_slice %590 {offsets = [0, 16], sizes = [8, 32], strides = [1, 1]} : vector<8x48xf32> to vector<8x32xf32>
    %594 = arith.negf %593 : vector<8x32xf32>
    %595 = math.exp %594 : vector<8x32xf32>
    %cst_272 = arith.constant 1.000000e+00 : f32
    %596 = vector.broadcast %cst_272 : f32 to vector<8x32xf32>
    %597 = arith.addf %596, %595 : vector<8x32xf32>
    %598 = arith.divf %596, %597 : vector<8x32xf32>
    %599 = vector.extract_strided_slice %598 {offsets = [0, 0], sizes = [8, 16], strides = [1, 1]} : vector<8x32xf32> to vector<8x16xf32>
    %600 = arith.mulf %599, %529 : vector<8x16xf32>
    %601 = vector.extract_strided_slice %598 {offsets = [0, 16], sizes = [8, 16], strides = [1, 1]} : vector<8x32xf32> to vector<8x16xf32>
    %602 = arith.mulf %601, %592 : vector<8x16xf32>
    %603 = arith.addf %600, %602 : vector<8x16xf32>
    %c8_i32 = arith.constant 8 : i32
    %604 = tpu.concatenate %551, %603 in 1 : vector<8x32xf32>, vector<8x16xf32> -> vector<8x48xf32>
    %c408 = arith.constant 408 : index
    %c0_273 = arith.constant 0 : index
    %605 = vector.load %arg1[%c408, %c0_273] : memref<504x128xf32, #tpu.memory_space<vmem>>, vector<48x32xf32>
    %cst_274 = arith.constant dense<0.000000e+00> : vector<8x32xf32>
    %606 = tpu.matmul %604, %605, %cst_274 {dimension_numbers = #tpu.dot_dimension_numbers<[1], [0], [0], [1], [0, 0, 1, 1], [], []>} : vector<8x48xf32>, vector<48x32xf32>, vector<8x32xf32> -> vector<8x32xf32>
    %c456 = arith.constant 456 : index
    %c0_275 = arith.constant 0 : index
    %607 = vector.load %arg1[%c456, %c0_275] : memref<504x128xf32, #tpu.memory_space<vmem>>, vector<1x32xf32>
    %608 = vector.broadcast %607 : vector<1x32xf32> to vector<8x32xf32>
    %609 = arith.addf %606, %608 : vector<8x32xf32>
    %cst_276 = arith.constant 0.000000e+00 : f32
    %610 = vector.broadcast %cst_276 : f32 to vector<8x32xf32>
    %611 = arith.maximumf %609, %610 : vector<8x32xf32>
    %c464 = arith.constant 464 : index
    %c0_277 = arith.constant 0 : index
    %612 = vector.load %arg1[%c464, %c0_277] : memref<504x128xf32, #tpu.memory_space<vmem>>, vector<32x1xf32>
    %cst_278 = arith.constant dense<0.000000e+00> : vector<8x1xf32>
    %613 = tpu.matmul %611, %612, %cst_278 {dimension_numbers = #tpu.dot_dimension_numbers<[1], [0], [0], [1], [0, 0, 1, 1], [], []>} : vector<8x32xf32>, vector<32x1xf32>, vector<8x1xf32> -> vector<8x1xf32>
    %c496 = arith.constant 496 : index
    %c0_279 = arith.constant 0 : index
    %614 = vector.load %arg1[%c496, %c0_279] : memref<504x128xf32, #tpu.memory_space<vmem>>, vector<1x1xf32>
    %615 = vector.broadcast %614 : vector<1x1xf32> to vector<8x1xf32>
    %616 = arith.addf %613, %615 : vector<8x1xf32>
    %c0_280 = arith.constant 0 : index
    %c0_281 = arith.constant 0 : index
    %617 = vector.load %arg2[%c0_280, %c0_281] : memref<8x1xf32, #tpu.memory_space<vmem>>, vector<8x1xf32>
    tpu.vector_store %arg2[%c0_280, %c0_281], %616 {strides = array<i32>} : memref<8x1xf32, #tpu.memory_space<vmem>>, vector<8x1xf32>,
    return
  }
}

</mosaic_0001>

<bundles_post_ra>
// kernel: tpu_custom_call.1
= control target key start
LH: loop header
LB: loop body
LE: loop exit
PB: predicated region body
PF: predicated region fallthrough
CT: control target
= control target key end

     0   :  { %7 = vsyncpa [#allocation4], 0  ;;  %s7264_s0 = inlined_call_operand.hbm [shape: f32[8,8,64], index: 0, kind: input, shape index: {}]   ;;  %s7265_s1 = inlined_call_operand.hbm [shape: f32[504,128], index: 1, kind: input, shape index: {}]   ;;  %s7266_s2 = inlined_call_operand.vmem [shape: f32[8,1], index: 2, kind: output, shape index: {}]  }
   0x1   :  { %8 = vsyncpa [#allocation6], 0  ;;  %s6023_s9 = smov [#allocation3]  }
   0x2   :  { %s14_s10 = sshll.u32 %s6023_s9, 4  ;;  %s15_s10 = int_to_ptr.vmem [resolvable:$true] %s14_s10 }
   0x3   :  { %s5987_s11 = scalar_lea.vmem %s15_s10, 1024  ;;  %p5992_p1 = scmp.lt.s32.totalorder %s15_s10, %s15_s10 }
   0x4   :  { %p5988_p0 = scmp.ne.s32.totalorder %s15_s10, %s5987_s11  ;;  %p5993_p2 = scmp.lt.s32.totalorder %s5987_s11, %s5987_s11 }
   0x6   :  { %p5994_p3 = por %p5993_p2, %p5992_p1 }
   0x8   :  { %p5995_p4 = pnand %p5994_p3, %p5988_p0 }
   0xa   :  { %5998 = shalt.err (!%p5995_p4)
}
   0xb   :  { %s6024_s12 = smov 128   ;;  %s6025_s13 = smov 8  }
   0xc   :  { %20 = dma.hbm_to_vmem [thread:$0]  %s7264_s0, 1024, %s15_s10, [#allocation4], %s6024_s12, %s6024_s12, %s6025_s13  }
   0xd   :  { %s6026_s16 = smov [#allocation5]  }
   0xe   :  { %s26_s17 = sshll.u32 %s6026_s16, 4  ;;  %s27_s17 = int_to_ptr.vmem [resolvable:$true] %s26_s17 }
   0xf   :  { %s6007_s18 = scalar_lea.vmem %s27_s17, 8064  ;;  %p6012_p6 = scmp.lt.s32.totalorder %s27_s17, %s27_s17 }
  0x10   :  { %p6008_p5 = scmp.ne.s32.totalorder %s27_s17, %s6007_s18  ;;  %p6013_p7 = scmp.lt.s32.totalorder %s6007_s18, %s6007_s18 }
  0x12   :  { %p6014_p8 = por %p6013_p7, %p6012_p6 }
  0x14   :  { %p6015_p9 = pnand %p6014_p8, %p6008_p5 }
  0x16   :  { %6018 = shalt.err (!%p6015_p9)
}
  0x17   :  { %32 = dma.hbm_to_vmem [thread:$0]  %s7265_s1, 8064, %s27_s17, [#allocation6], %s6024_s12, %s6024_s12, %s6025_s13  }
  0x18   :  { %6019 = dma.done.wait [#allocation4], 1024  }
  0x19   :  { %6020 = vsyncadd [#allocation4], 4294966272 }
  0x1a   :  { %6021 = dma.done.wait [#allocation6], 8064  }
  0x1b   :  { %6022 = vsyncadd [#allocation6], 4294959232  ;;  %v7267_v0 = vmov 0.0   ;;  %vm6028_vm0 = vmmov 0   ;;  %v54_v1 = vld [vmem:[#allocation5 + $0x38] sm:$0xff]  ;;  %v53_v2 = vld [vmem:[#allocation5 + $0x30] sm:$0xff] }
  0x1c   :  { %4977 = vmatprep.subr.mxu1 %v7267_v0  ;;  %4985 = vmatprep.mubr.msk.f32.mxu1 %vm6028_vm0, %v7267_v0  ;;  %v52_v3 = vld [vmem:[#allocation5 + $0x28] sm:$0xff]  ;;  %v6058_v4 = vld [vmem:[#allocation5 + $0x58] sm:$0xff]  ;;  %v6060_v5 = vld [vmem:[#allocation5 + $0x50] sm:$0xff]  ;;  %vm60_vm1 = vcmask 523264   ;;  %s6029_s0 = smov 32   ;;  %vm203_vm2 = vcmask 261120  }
  0x1d   :  { %4949 = vmatprep.subr.mxu0 %v54_v1  ;;  %4978 = vmatpush3.msra.mxu1 %v6058_v4  ;;  %v51_v6 = vld [vmem:[#allocation5 + $0x20] sm:$0xff]  ;;  %v6065_v8 = vld [vmem:[#allocation5 + $0x48] sm:$0xff]  ;;  %v50_v9 = vld [vmem:[#allocation5 + $0x18] sm:$0xff]  ;;  %s6030_s1 = smov 64   ;;  %vm664_vm3 = vcmask 785408   ;;  %s6031_s21 = smov 96  }
  0x1e   :  { %4950 = vmatpush3.msra.mxu0 %v54_v1  ;;  %4979 = vmatprep.subr.mxu1 %v7267_v0  ;;  %v39_v7 = vld [vmem:[#allocation3] sm:$0xff]  ;;  %v49_v11 = vld [vmem:[#allocation5 + $0x10] sm:$0xff]  ;;  %v48_v12 = vld [vmem:[#allocation5 + $0x8] sm:$0xff]  ;;  %s6032_s22 = smov 112   ;;  %vm494_vm4 = vcmask 130048   ;;  %s6033_s23 = smov 16  }
  0x1f   :  { %4951 = vmatprep.subr.mxu0 %v53_v2  ;;  %4980 = vmatpush3.msra.mxu1 %v6060_v5  ;;  %v6069_v10 = vld [vmem:[#allocation5 + $0x40] sm:$0xff]  ;;  %v40_v14 = vld [vmem:[#allocation3 + $0x8] sm:$0xff]  ;;  %v6087_v23 = vld [vmem:[#allocation5 + $0x98] sm:$0xff]  ;;  %vm4325_vm5 = vcmask 392192   ;;  %vm4482_vm6 = vcmask 7168  }
  0x20   :  { %4952 = vmatpush3.msra.mxu0 %v53_v2  ;;  %4981 = vmatprep.subr.mxu1 %v7267_v0  ;;  %v47_v13 = vld [vmem:[#allocation5] sm:$0xff]  ;;  %v6091_v24 = vld [vmem:[#allocation5 + $0x90] sm:$0xff]  ;;  %v6095_v25 = vld [vmem:[#allocation5 + $0x88] sm:$0xff] }
  0x21   :  { %4953 = vmatprep.subr.mxu0 %v52_v3  ;;  %4965 = vmatprep.mubr.msk.f32.mxu0 %vm60_vm1, %v39_v7  ;;  %v6082_v18 = vld [vmem:[#allocation5 + $0x60] ss:$0 sm:$0xff]  ;;  %v6103_v27 = vld [vmem:[#allocation5 + $0x78] sm:$0xff]  ;;  %v6110_v32 = vld [vmem:[#allocation5 + $0x70] sm:$0xff] }
  0x22   :  { %4954 = vmatpush3.msra.mxu0 %v52_v3  ;;  %4982 = vmatpush3.msra.mxu1 %v6065_v8  ;;  %v6085_v22 = vld [vmem:[#allocation5 + $0xa0] sm:$0xff]  ;;  %v6114_v33 = vld [vmem:[#allocation5 + $0x68] sm:$0xff]  ;;  %v41_v35 = vld [vmem:[#allocation3 + $0x10] sm:$0xff] }
  0x23   :  { %4955 = vmatprep.subr.mxu0 %v51_v6  ;;  %4983 = vmatprep.subr.mxu1 %v7267_v0  ;;  %v6099_v26 = vld [vmem:[#allocation5 + $0x80] sm:$0xff]  ;;  %v6117_v34 = vld [vmem:[#allocation5 + $0xc8] sm:$0xff]  ;;  %v42_v36 = vld [vmem:[#allocation3 + $0x18] sm:$0xff] }
  0x24   :  { %4956 = vmatpush3.msra.mxu0 %v51_v6  ;;  %4984 = vmatpush3.msra.mxu1 %v6069_v10  ;;  %v6122_v37 = vld [vmem:[#allocation5 + $0xc0] sm:$0xff]  ;;  %v6126_v39 = vld [vmem:[#allocation5 + $0xb8] sm:$0xff]  ;;  %v44_v40 = vld [vmem:[#allocation3 + $0x28] sm:$0xff] }
  0x25   :  { %4957 = vmatprep.subr.mxu0 %v50_v9  ;;  %4986 = vmatmul.mubr.f32.vlgmr.msra.gmra.mxu1 %v7267_v0  ;;  %v43_v38 = vld [vmem:[#allocation3 + $0x20] sm:$0xff]  ;;  %v45_v41 = vld [vmem:[#allocation3 + $0x30] sm:$0xff]  ;;  %v46_v44 = vld [vmem:[#allocation3 + $0x38] sm:$0xff] }
  0x26   :  { %4958 = vmatpush3.msra.mxu0 %v50_v9  ;;  %4988 = vmatprep.subr.mxu1 %v7267_v0  ;;  %v6149_v50 = vld [vmem:[#allocation5 + $0xb0] sm:$0xff]  ;;  %v6153_v51 = vld [vmem:[#allocation5 + $0xa8] ss:$0 sm:$0xff]  ;;  %v6177_v7 = vld [vmem:[#allocation5 + $0x120] sm:$0xff] }
  0x27   :  { %4959 = vmatprep.subr.mxu0 %v49_v11  ;;  %5004 = vmatprep.mubr.msk.f32.mxu1 %vm6028_vm0, %v7267_v0  ;;  %v6171_v62 = vld [vmem:[#allocation5 + $0xd0] ss:$0 sm:$0xff]  ;;  %v6179_v9 = vld [vmem:[#allocation5 + $0x118] sm:$0xff] }
  0x28   :  { %4960 = vmatpush3.msra.mxu0 %v49_v11  ;;  %4989 = vmatpush3.msra.mxu1 %v6085_v22 }
  0x29   :  { %4961 = vmatprep.subr.mxu0 %v48_v12  ;;  %4990 = vmatprep.subr.mxu1 %v7267_v0 }
  0x2a   :  { %4962 = vmatpush3.msra.mxu0 %v48_v12  ;;  %4991 = vmatpush3.msra.mxu1 %v6087_v23 }
  0x2b   :  { %4963 = vmatprep.subr.mxu0 %v47_v13  ;;  %4992 = vmatprep.subr.mxu1 %v7267_v0 }
  0x2c   :  { %4964 = vmatpush3.msra.mxu0 %v47_v13  ;;  %4993 = vmatpush3.msra.mxu1 %v6091_v24 }
  0x2d   :  { %4966 = vmatmul.mubr.msk.f32.vlgmr.msra.gmra.mxu0 %vm60_vm1, %v40_v14  ;;  %5007 = vmatprep.subr.mxu0 %v7267_v0 }
  0x2e   :  { %4994 = vmatprep.subr.mxu1 %v7267_v0  ;;  %5008 = vmatpush3.msra.mxu0 %v6117_v34 }
  0x2f   :  { %4995 = vmatpush3.msra.mxu1 %v6095_v25  ;;  %4968 = vmatprep.mubr.msk.f32.mxu0 %vm60_vm1, %v41_v35  ;;  %v6212_v35 = vld [vmem:[#allocation5 + $0xe0] sm:$0xff] }
  0x30   :  { %4996 = vmatprep.subr.mxu1 %v7267_v0  ;;  %5009 = vmatprep.subr.mxu0 %v7267_v0 }
  0x31   :  { %4997 = vmatpush3.msra.mxu1 %v6099_v26  ;;  %4969 = vmatmul.mubr.msk.f32.gmra.mxu0 %vm60_vm1, %v42_v36  ;;  %v6216_v36 = vld [vmem:[#allocation5 + $0xd8] sm:$0xff] }
  0x32   :  { %4998 = vmatprep.subr.mxu1 %v7267_v0  ;;  %5010 = vmatpush3.msra.mxu0 %v6122_v37 }
  0x33   :  { %4999 = vmatpush3.msra.mxu1 %v6103_v27  ;;  %4971 = vmatprep.mubr.msk.f32.mxu0 %vm60_vm1, %v43_v38  ;;  %v6222_v38 = vld [vmem:[#allocation5 + $0x188] sm:$0xff] }
  0x34   :  { %5000 = vmatprep.subr.mxu1 %v7267_v0  ;;  %5011 = vmatprep.subr.mxu0 %v7267_v0 }
  0x35   :  { %5001 = vmatpush3.msra.mxu1 %v6110_v32  ;;  %5012 = vmatpush3.msra.mxu0 %v6126_v39 }
  0x36   :  { %5002 = vmatprep.subr.mxu1 %v7267_v0  ;;  %4972 = vmatmul.mubr.msk.f32.gmra.mxu0 %vm60_vm1, %v44_v40  ;;  %v6224_v40 = vld [vmem:[#allocation5 + $0x180] sm:$0xff] }
  0x37   :  { %5003 = vmatpush3.msra.mxu1 %v6114_v33  ;;  %5013 = vmatprep.subr.mxu0 %v7267_v0 }
  0x38   :  { %5018 = vmatprep.subr.mxu1 %v7267_v0  ;;  %4974 = vmatprep.mubr.msk.f32.mxu0 %vm60_vm1, %v45_v41  ;;  %v6228_v41 = vld [vmem:[#allocation5 + $0x178] sm:$0xff] }
  0x39   :  { %5014 = vmatpush3.msra.mxu0 %v6149_v50 }
  0x3a   :  { %4975 = vmatmul.mubr.msk.f32.gmra.mxu0 %vm60_vm1, %v46_v44  ;;  %5044 = vmatprep.subr.mxu0 %v7267_v0  ;;  %v6240_v44 = vld [vmem:[#allocation5 + $0x160] sm:$0xff] }
  0x3b   :  { %5015 = vmatprep.mubr.msk.f32.mxu0 %vm6028_vm0, %v7267_v0 }
  0xe5   :  { %v273_v15 = vpop.f32.mrf.mxu1 }
  0xe7   :  { %v4987_v16 = vpop.f32.mrf.mxu1 }
  0xed   :  { %v6080_v17 = vpop.f32.mrf.mxu0 }
  0xef   :  { %v151_v19 = vpop.f32.mrf.mxu0 }
  0xf0   :  { %v152_v20 = vadd.f32 %v6082_v18, %v151_v19 }
  0xf1   :  { %v6159_v56 = vpop.f32.mrf.mxu0 }
  0xf2   :  { %v277_v21 = vadd.f32 %v273_v15, %v152_v20  ;;  %v6190_v20 = vld [vmem:[#allocation5 + $0x110] sm:$0xff] }
  0xf3   :  { %v6161_v57 = vpop.f32.mrf.mxu0 }
  0xf4   :  { %5766 = vtanh.f32 %v277_v21  ;;  %v4499_v29 = vmul.f32 -1.442695, %v277_v21  ;;  %v6192_v21 = vld [vmem:[#allocation5 + $0x108] sm:$0xff] }
  0xf6   :  { %5768 = vpow2.f32 %v4499_v29  ;;  %v6163_v58 = vpop.f32.mrf.mxu0  ;;  %v6200_v29 = vld [vmem:[#allocation5 + $0xf8] sm:$0xff] }
  0xf8   :  { %v6165_v59 = vpop.f32.mrf.mxu0 }
  0xfa   :  { %v6167_v60 = vpop.f32.mrf.mxu0 }
  0xfc   :  { %v6169_v61 = vpop.f32.mrf.mxu0 }
 0x101   :  { %v5767_v28 = vpop.eup %5766 }
 0x102   :  { %287 = vrot.lane.b32.xlu0 %v5767_v28, %s6029_s0  ;;  %v6196_v28 = vld [vmem:[#allocation5 + $0x100] sm:$0xff] }
 0x103   :  { %v5769_v30 = vpop.eup %5768 }
 0x104   :  { %v281_v31 = vadd.f32 1.0, %v5769_v30  ;;  %v6204_v30 = vld [vmem:[#allocation5 + $0xf0] sm:$0xff] }
 0x106   :  { %5770 = vrcp.f32 %v281_v31  ;;  %v6208_v31 = vld [vmem:[#allocation5 + $0xe8] sm:$0xff] }
 0x113   :  { %v5771_v42 = vpop.eup %5770 }
 0x114   :  { %v285_v46 = vmul.f32 0.0, %v5771_v42 }
 0x174   :  { %v288_v43 = vpop.permute.xlu0 %287 }
 0x175   :  { %v290_v45 = vmul.f32 %v5771_v42, %v288_v43  ;;  %v6236_v43 = vld [vmem:[#allocation5 + $0x168] sm:$0xff] }
 0x177   :  { %292 = vrot.lane.b32.xlu0 %v290_v45, %s6029_s0  ;;  %v6244_v45 = vld [vmem:[#allocation5 + $0x158] sm:$0xff] }
 0x1e9   :  { %v293_v47 = vpop.permute.xlu0 %292 }
 0x1ea   :  { %v6139_v48 = vadd.f32 %v293_v47, %v285_v46  ;;  %v6248_v46 = vld [vmem:[#allocation5 + $0x150] sm:$0xff] }
 0x1ec   :  { %v6143_v49 = vsel %vm203_vm2, 0.0, %v6139_v48  ;;  %5772 = vtanh.f32 %v6139_v48 }
 0x1ed   :  { %5005 = vmatmul.mubr.msk.f32.vlgmr.msra.gmra.mxu1 %vm60_vm1, %v6143_v49 }
 0x1ee   :  { %5022 = vmatprep.mubr.msk.f32.mxu1 %vm6028_vm0, %v7267_v0  ;;  %5019 = vmatpush3.msra.mxu1 %v6177_v7 }
 0x1ef   :  { %5020 = vmatprep.subr.mxu1 %v7267_v0 }
 0x1f0   :  { %5021 = vmatpush3.msra.mxu1 %v6179_v9 }
 0x1f1   :  { %5023 = vmatmul.mubr.f32.vlgmr.msra.gmra.mxu1 %v7267_v0  ;;  %5025 = vmatprep.subr.mxu1 %v7267_v0 }
 0x1f2   :  { %5041 = vmatprep.mubr.msk.f32.mxu1 %vm6028_vm0, %v7267_v0  ;;  %5026 = vmatpush3.msra.mxu1 %v6190_v20 }
 0x1f3   :  { %5027 = vmatprep.subr.mxu1 %v7267_v0 }
 0x1f4   :  { %5028 = vmatpush3.msra.mxu1 %v6192_v21 }
 0x1f5   :  { %5029 = vmatprep.subr.mxu1 %v7267_v0 }
 0x1f6   :  { %5030 = vmatpush3.msra.mxu1 %v6196_v28 }
 0x1f7   :  { %5031 = vmatprep.subr.mxu1 %v7267_v0 }
 0x1f8   :  { %5032 = vmatpush3.msra.mxu1 %v6200_v29 }
 0x1f9   :  { %v5773_v6 = vpop.eup %5772  ;;  %5033 = vmatprep.subr.mxu1 %v7267_v0 }
 0x1fa   :  { %5034 = vmatpush3.msra.mxu1 %v6204_v30 }
 0x1fb   :  { %5035 = vmatprep.subr.mxu1 %v7267_v0 }
 0x1fc   :  { %5036 = vmatpush3.msra.mxu1 %v6208_v31 }
 0x1fd   :  { %5037 = vmatprep.subr.mxu1 %v7267_v0 }
 0x1fe   :  { %5038 = vmatpush3.msra.mxu1 %v6212_v35 }
 0x1ff   :  { %5039 = vmatprep.subr.mxu1 %v7267_v0 }
 0x200   :  { %5040 = vmatpush3.msra.mxu1 %v6216_v36 }
 0x201   :  { %5071 = vmatprep.subr.mxu1 %v7267_v0 }
 0x2ad   :  { %v385_v52 = vpop.f32.mrf.mxu1 }
 0x2ae   :  { %v386_v53 = vadd.f32 %v6153_v51, %v385_v52 }
 0x2af   :  { %v5006_v54 = vpop.f32.mrf.mxu1 }
 0x2b0   :  { %v389_v55 = vmax.f32 %v386_v53, 0.0 }
 0x2b2   :  { %5016 = vmatmul.mubr.msk.f32.vlgmr.msra.gmra.mxu0 %vm203_vm2, %v389_v55 }
 0x2b3   :  { %5068 = vmatprep.mubr.msk.f32.mxu0 %vm6028_vm0, %v7267_v0  ;;  %5045 = vmatpush3.msra.mxu0 %v6222_v38 }
 0x2b4   :  { %5046 = vmatprep.subr.mxu0 %v7267_v0 }
 0x2b5   :  { %5047 = vmatpush3.msra.mxu0 %v6224_v40 }
 0x2b6   :  { %5048 = vmatprep.subr.mxu0 %v7267_v0 }
 0x2b7   :  { %5049 = vmatpush3.msra.mxu0 %v6228_v41 }
 0x2b8   :  { %5050 = vmatprep.subr.mxu0 %v7267_v0 }
 0x372   :  { %v468_v63 = vpop.f32.mrf.mxu0 }
 0x373   :  { %v469_v1 = vadd.f32 %v6171_v62, %v468_v63 }
 0x374   :  { %v5017_v2 = vpop.f32.mrf.mxu0 }
 0x375   :  { %v472_v3 = vsel %vm60_vm1, %v469_v1, -inf  ;;  %v6289_v2 = vld [vmem:[#allocation5 + $0x140] sm:$0xff] }
 0x376   :  { %473 = vmax.xlane.f32.xlu1 %v472_v3  ;;  %v6293_v3 = vld [vmem:[#allocation5 + $0x138] sm:$0xff] }
 0x387   :  { %298 = vrot.lane.b32.xlu1 %v5773_v6, %s6029_s0  ;;  %v6296_v6 = vld [vmem:[#allocation5 + $0x130] sm:$0xff] }
 0x3ff   :  { %v474_v11 = vpop.xlane.xlu1 %473 }
 0x400   :  { %v475_v12 = vsub.f32 %v469_v1, %v474_v11  ;;  %v6285_v1 = vld [vmem:[#allocation5 + $0x148] sm:$0xff] }
 0x402   :  { %v476_v13 = vmul.f32 1.442695, %v475_v12  ;;  %v6301_v12 = vld [vmem:[#allocation5 + $0x128] ss:$0 sm:$0xff] }
 0x403   :  { %v299_v14 = vpop.permute.xlu1 %298 }
 0x404   :  { %5774 = vpow2.f32 %v476_v13  ;;  %v301_v15 = vmul.f32 %v5771_v42, %v299_v14  ;;  %v6232_v42 = vld [vmem:[#allocation5 + $0x170] sm:$0xff] }
 0x405   :  { %5051 = vmatpush3.msra.mxu0 %v6232_v42 }
 0x406   :  { %759 = vrot.lane.b32.xlu1 %v301_v15, %s6030_s1  ;;  %5052 = vmatprep.subr.mxu0 %v7267_v0 }
 0x407   :  { %5053 = vmatpush3.msra.mxu0 %v6236_v43 }
 0x408   :  { %5054 = vmatprep.subr.mxu0 %v7267_v0 }
 0x409   :  { %5055 = vmatpush3.msra.mxu0 %v6240_v44 }
 0x40a   :  { %5056 = vmatprep.subr.mxu0 %v7267_v0 }
 0x40b   :  { %5057 = vmatpush3.msra.mxu0 %v6244_v45 }
 0x40c   :  { %5058 = vmatprep.subr.mxu0 %v7267_v0 }
 0x40d   :  { %5059 = vmatpush3.msra.mxu0 %v6248_v46 }
 0x40e   :  { %5060 = vmatprep.subr.mxu0 %v7267_v0 }
 0x40f   :  { %5061 = vmatpush3.msra.mxu0 %v6285_v1 }
 0x410   :  { %5062 = vmatprep.subr.mxu0 %v7267_v0 }
 0x411   :  { %v5775_v16 = vpop.eup %5774  ;;  %5063 = vmatpush3.msra.mxu0 %v6289_v2 }
 0x412   :  { %v478_v19 = vsel %vm60_vm1, %v5775_v16, 0.0  ;;  %5064 = vmatprep.subr.mxu0 %v7267_v0 }
 0x413   :  { %479 = vadd.xlane.f32.xlu0 %v478_v19  ;;  %5065 = vmatpush3.msra.mxu0 %v6293_v3  ;;  %v157_v19 = vadd.f32 %v6080_v17, %v6082_v18 }
 0x414   :  { %5066 = vmatprep.subr.mxu0 %v7267_v0 }
 0x415   :  { %5067 = vmatpush3.msra.mxu0 %v6296_v6 }
 0x416   :  { %5101 = vmatprep.subr.mxu0 %v7267_v0 }
 0x478   :  { %v760_v55 = vpop.permute.xlu1 %759 }
 0x49c   :  { %v480_v47 = vpop.xlane.xlu0 %479 }
 0x49d   :  { %5776 = vrcp.f32 %v480_v47 }
 0x4aa   :  { %v5777_v52 = vpop.eup %5776 }
 0x4ab   :  { %v482_v53 = vmul.f32 %v5777_v52, %v5775_v16 }
 0x4ad   :  { %v483_v54 = vmul.f32 %v482_v53, %v6143_v49  ;;  %v563_v49 = vpop.f32.mrf.mxu1 }
 0x4af   :  { %5042 = vmatmul.mubr.msk.f32.vlgmr.msra.gmra.mxu1 %vm60_vm1, %v483_v54  ;;  %v5024_v63 = vpop.f32.mrf.mxu1 }
 0x4b0   :  { %5072 = vmatpush3.msra.mxu1 %v6058_v4  ;;  %5079 = vmatprep.mubr.msk.f32.mxu1 %vm6028_vm0, %v7267_v0 }
 0x4b1   :  { %5073 = vmatprep.subr.mxu1 %v7267_v0 }
 0x4b2   :  { %5074 = vmatpush3.msra.mxu1 %v6060_v5 }
 0x4b3   :  { %5075 = vmatprep.subr.mxu1 %v7267_v0 }
 0x4b4   :  { %5076 = vmatpush3.msra.mxu1 %v6065_v8 }
 0x4b5   :  { %5077 = vmatprep.subr.mxu1 %v7267_v0 }
 0x4b6   :  { %5078 = vmatpush3.msra.mxu1 %v6069_v10 }
 0x4b7   :  { %5080 = vmatmul.mubr.msk.f32.vlgmr.msra.gmra.mxu1 %vm203_vm2, %v760_v55  ;;  %5082 = vmatprep.subr.mxu1 %v7267_v0 }
 0x4b8   :  { %5083 = vmatpush3.msra.mxu1 %v6085_v22  ;;  %5098 = vmatprep.mubr.msk.f32.mxu1 %vm6028_vm0, %v7267_v0 }
 0x4b9   :  { %5084 = vmatprep.subr.mxu1 %v7267_v0 }
 0x4ba   :  { %5085 = vmatpush3.msra.mxu1 %v6087_v23 }
 0x4bb   :  { %5086 = vmatprep.subr.mxu1 %v7267_v0 }
 0x4bc   :  { %5087 = vmatpush3.msra.mxu1 %v6091_v24 }
 0x4bd   :  { %5088 = vmatprep.subr.mxu1 %v7267_v0 }
 0x4be   :  { %5089 = vmatpush3.msra.mxu1 %v6095_v25 }
 0x4bf   :  { %5090 = vmatprep.subr.mxu1 %v7267_v0 }
 0x4c0   :  { %5091 = vmatpush3.msra.mxu1 %v6099_v26 }
 0x4c1   :  { %5092 = vmatprep.subr.mxu1 %v7267_v0 }
 0x4c2   :  { %5093 = vmatpush3.msra.mxu1 %v6103_v27 }
 0x4c3   :  { %5094 = vmatprep.subr.mxu1 %v7267_v0 }
 0x4c4   :  { %5095 = vmatpush3.msra.mxu1 %v6110_v32 }
 0x4c5   :  { %5096 = vmatprep.subr.mxu1 %v7267_v0 }
 0x4c6   :  { %5097 = vmatpush3.msra.mxu1 %v6114_v33 }
 0x4c7   :  { %5138 = vmatprep.subr.mxu1 %v7267_v0 }
 0x56f   :  { %v636_v11 = vpop.f32.mrf.mxu1 }
 0x570   :  { %v637_v13 = vadd.f32 %v636_v11, %v563_v49 }
 0x571   :  { %v5043_v14 = vpop.f32.mrf.mxu1 }
 0x572   :  { %v645_v15 = vadd.f32 %v6301_v12, %v637_v13  ;;  %v6324_v14 = vld [vmem:[#allocation5 + $0x190] ss:$0 sm:$0xff] }
 0x574   :  { %v646_v16 = vmax.f32 %v645_v15, 0.0 }
 0x576   :  { %5069 = vmatmul.mubr.msk.f32.vlgmr.msra.gmra.mxu0 %vm664_vm3, %v646_v16 }
 0x577   :  { %v829_v47 = vpop.f32.mrf.mxu1  ;;  %5102 = vmatpush3.msra.mxu0 %v6117_v34  ;;  %5109 = vmatprep.mubr.msk.f32.mxu0 %vm6028_vm0, %v7267_v0 }
 0x578   :  { %v833_v52 = vadd.f32 %v829_v47, %v157_v19  ;;  %5103 = vmatprep.subr.mxu0 %v7267_v0 }
 0x579   :  { %v5081_v53 = vpop.f32.mrf.mxu1  ;;  %5104 = vmatpush3.msra.mxu0 %v6122_v37 }
 0x57a   :  { %5778 = vtanh.f32 %v833_v52  ;;  %5105 = vmatprep.subr.mxu0 %v7267_v0  ;;  %v4510_v54 = vmul.f32 -1.442695, %v833_v52 }
 0x57b   :  { %5106 = vmatpush3.msra.mxu0 %v6126_v39 }
 0x57c   :  { %5107 = vmatprep.subr.mxu0 %v7267_v0  ;;  %5780 = vpow2.f32 %v4510_v54 }
 0x57d   :  { %5108 = vmatpush3.msra.mxu0 %v6149_v50 }
 0x57e   :  { %5112 = vmatprep.subr.mxu0 %v7267_v0 }
 0x587   :  { %v5779_v17 = vpop.eup %5778 }
 0x588   :  { %843 = vrot.lane.b32.xlu1 %v5779_v17, %s6029_s0 }
 0x589   :  { %v5781_v55 = vpop.eup %5780 }
 0x58a   :  { %v837_v49 = vadd.f32 1.0, %v5781_v55 }
 0x58c   :  { %5782 = vrcp.f32 %v837_v49 }
 0x599   :  { %v6318_v63 = vpop.eup %5782 }
 0x59a   :  { %v841_v53 = vmul.f32 %v6318_v63, %v6139_v48 }
 0x5fa   :  { %v844_v11 = vpop.permute.xlu1 %843 }
 0x5fb   :  { %v846_v13 = vmul.f32 %v6318_v63, %v844_v11 }
 0x5fd   :  { %848 = vrot.lane.b32.xlu1 %v846_v13, %s6029_s0 }
 0x601   :  { %859 = vrot.lane.b32.xlu1 %v6139_v48, %s6031_s21 }
 0x636   :  { %v734_v15 = vpop.f32.mrf.mxu0 }
 0x637   :  { %v735_v16 = vadd.f32 %v6324_v14, %v734_v15 }
 0x638   :  { %v5070_v19 = vpop.f32.mrf.mxu0 }
 0x639   :  { %5784 = vtanh.f32 %v735_v16  ;;  %v4508_v48 = vmul.f32 -1.442695, %v735_v16 }
 0x63b   :  { %5786 = vpow2.f32 %v4508_v48 }
 0x646   :  { %v5785_v47 = vpop.eup %5784 }
 0x647   :  { %747 = vrot.lane.b32.xlu1 %v5785_v47, %s6029_s0 }
 0x648   :  { %v5787_v49 = vpop.eup %5786 }
 0x649   :  { %v742_v11 = vadd.f32 1.0, %v5787_v49 }
 0x64b   :  { %5788 = vrcp.f32 %v742_v11 }
 0x658   :  { %v5789_v13 = vpop.eup %5788 }
 0x66f   :  { %v849_v52 = vpop.permute.xlu1 %848 }
 0x670   :  { %v6330_v17 = vadd.f32 %v849_v52, %v841_v53 }
 0x672   :  { %5790 = vtanh.f32 %v6330_v17 }
 0x673   :  { %v860_v54 = vpop.permute.xlu1 %859 }
 0x674   :  { %v6334_v55 = vsel %vm203_vm2, %v860_v54, %v6330_v17 }
 0x675   :  { %5099 = vmatmul.mubr.msk.f32.vlgmr.msra.gmra.mxu1 %vm60_vm1, %v6334_v55 }
 0x676   :  { %5139 = vmatpush3.msra.mxu1 %v6222_v38  ;;  %5162 = vmatprep.mubr.msk.f32.mxu1 %vm6028_vm0, %v7267_v0 }
 0x677   :  { %5140 = vmatprep.subr.mxu1 %v7267_v0 }
 0x678   :  { %5141 = vmatpush3.msra.mxu1 %v6224_v40 }
 0x679   :  { %5142 = vmatprep.subr.mxu1 %v7267_v0 }
 0x67a   :  { %5143 = vmatpush3.msra.mxu1 %v6228_v41 }
 0x67b   :  { %5144 = vmatprep.subr.mxu1 %v7267_v0 }
 0x67c   :  { %5145 = vmatpush3.msra.mxu1 %v6232_v42 }
 0x67d   :  { %5146 = vmatprep.subr.mxu1 %v7267_v0 }
 0x67e   :  { %5147 = vmatpush3.msra.mxu1 %v6236_v43 }
 0x67f   :  { %5148 = vmatprep.subr.mxu1 %v7267_v0 }
 0x680   :  { %5149 = vmatpush3.msra.mxu1 %v6240_v44 }
 0x681   :  { %5150 = vmatprep.subr.mxu1 %v7267_v0 }
 0x682   :  { %5151 = vmatpush3.msra.mxu1 %v6244_v45 }
 0x683   :  { %5152 = vmatprep.subr.mxu1 %v7267_v0 }
 0x684   :  { %5153 = vmatpush3.msra.mxu1 %v6248_v46 }
 0x685   :  { %5154 = vmatprep.subr.mxu1 %v7267_v0 }
 0x686   :  { %5155 = vmatpush3.msra.mxu1 %v6285_v1 }
 0x687   :  { %5156 = vmatprep.subr.mxu1 %v7267_v0 }
 0x688   :  { %5157 = vmatpush3.msra.mxu1 %v6289_v2 }
 0x689   :  { %5158 = vmatprep.subr.mxu1 %v7267_v0 }
 0x68a   :  { %5159 = vmatpush3.msra.mxu1 %v6293_v3 }
 0x68b   :  { %5160 = vmatprep.subr.mxu1 %v7267_v0 }
 0x68c   :  { %5161 = vmatpush3.msra.mxu1 %v6296_v6 }
 0x68d   :  { %5195 = vmatprep.subr.mxu1 %v7267_v0 }
 0x6b9   :  { %v748_v15 = vpop.permute.xlu1 %747 }
 0x6ba   :  { %v750_v19 = vmul.f32 %v5789_v13, %v748_v15  ;;  %v5791_v15 = vpop.eup %5790 }
 0x6bc   :  { %752 = vrot.lane.b32.xlu1 %v750_v19, %s6032_s22 }
 0x72e   :  { %v753_v19 = vpop.permute.xlu1 %752 }
 0x735   :  { %v932_v47 = vpop.f32.mrf.mxu1 }
 0x736   :  { %v933_v52 = vadd.f32 %v6153_v51, %v932_v47  ;;  %v745_v47 = vmul.f32 0.0, %v5789_v13  ;;  %v7269_v13 = vmov 0.0  }
 0x737   :  { %v5100_v53 = vpop.f32.mrf.mxu1 }
 0x738   :  { %v936_v54 = vmax.f32 %v933_v52, 0.0  ;;  %v6377_v52 = vadd.f32 %v753_v19, %v745_v47 }
 0x73a   :  { %5110 = vmatmul.mubr.msk.f32.vlgmr.msra.gmra.mxu0 %vm203_vm2, %v936_v54 }
 0x73b   :  { %5113 = vmatpush3.msra.mxu0 %v6177_v7  ;;  %5116 = vmatprep.mubr.msk.f32.mxu0 %vm6028_vm0, %v7267_v0 }
 0x73c   :  { %5114 = vmatprep.subr.mxu0 %v7267_v0 }
 0x73d   :  { %5115 = vmatpush3.msra.mxu0 %v6179_v9 }
 0x73e   :  { %5119 = vmatprep.subr.mxu0 %v7267_v0 }
 0x7fa   :  { %v1006_v16 = vpop.f32.mrf.mxu0 }
 0x7fb   :  { %v1007_v48 = vadd.f32 %v6171_v62, %v1006_v16 }
 0x7fc   :  { %v5111_v49 = vpop.f32.mrf.mxu0 }
 0x7fd   :  { %v1010_v11 = vsel %vm60_vm1, %v1007_v48, -inf }
 0x7fe   :  { %1011 = vmax.xlane.f32.xlu0 %v1010_v11 }
 0x814   :  { %854 = vrot.lane.b32.xlu0 %v5791_v15, %s6029_s0 }
 0x818   :  { %1023 = vrot.lane.b32.xlu0 %v6377_v52, %s6032_s22 }
 0x887   :  { %v1012_v53 = vpop.xlane.xlu0 %1011 }
 0x888   :  { %v1013_v54 = vsub.f32 %v1007_v48, %v1012_v53 }
 0x88a   :  { %v1014_v0 = vmul.f32 1.442695, %v1013_v54 }
 0x88b   :  { %v855_v16 = vpop.permute.xlu0 %854 }
 0x88c   :  { %5792 = vpow2.f32 %v1014_v0  ;;  %v857_v49 = vmul.f32 %v6318_v63, %v855_v16 }
 0x88e   :  { %1266 = vrot.lane.b32.xlu0 %v857_v49, %s6030_s1 }
 0x88f   :  { %v1024_v11 = vpop.permute.xlu0 %1023 }
 0x890   :  { %5117 = vmatmul.mubr.msk.f32.vlgmr.msra.gmra.mxu0 %vm494_vm4, %v1024_v11 }
 0x891   :  { %5120 = vmatpush3.msra.mxu0 %v6190_v20  ;;  %5135 = vmatprep.mubr.msk.f32.mxu0 %vm6028_vm0, %v7269_v13 }
 0x892   :  { %5121 = vmatprep.subr.mxu0 %v7269_v13 }
 0x893   :  { %5122 = vmatpush3.msra.mxu0 %v6192_v21 }
 0x894   :  { %5123 = vmatprep.subr.mxu0 %v7269_v13 }
 0x895   :  { %5124 = vmatpush3.msra.mxu0 %v6196_v28 }
 0x896   :  { %5125 = vmatprep.subr.mxu0 %v7269_v13 }
 0x897   :  { %5126 = vmatpush3.msra.mxu0 %v6200_v29 }
 0x898   :  { %5127 = vmatprep.subr.mxu0 %v7269_v13 }
 0x899   :  { %v5793_v0 = vpop.eup %5792  ;;  %5128 = vmatpush3.msra.mxu0 %v6204_v30 }
 0x89a   :  { %v1016_v63 = vsel %vm60_vm1, %v5793_v0, 0.0  ;;  %5129 = vmatprep.subr.mxu0 %v7269_v13 }
 0x89b   :  { %1017 = vadd.xlane.f32.xlu1 %v1016_v63  ;;  %5130 = vmatpush3.msra.mxu0 %v6208_v31 }
 0x89c   :  { %5131 = vmatprep.subr.mxu0 %v7269_v13 }
 0x89d   :  { %5132 = vmatpush3.msra.mxu0 %v6212_v35 }
 0x89e   :  { %5133 = vmatprep.subr.mxu0 %v7269_v13 }
 0x89f   :  { %5134 = vmatpush3.msra.mxu0 %v6216_v36 }
 0x8a0   :  { %5165 = vmatprep.subr.mxu0 %v7269_v13 }
 0x900   :  { %v1267_v53 = vpop.permute.xlu0 %1266 }
 0x924   :  { %v1018_v48 = vpop.xlane.xlu1 %1017 }
 0x925   :  { %5794 = vrcp.f32 %v1018_v48 }
 0x932   :  { %v5795_v15 = vpop.eup %5794 }
 0x933   :  { %v1020_v19 = vmul.f32 %v5795_v15, %v5793_v0 }
 0x935   :  { %v1021_v47 = vmul.f32 %v1020_v19, %v6334_v55 }
 0x937   :  { %5136 = vmatmul.mubr.msk.f32.vlgmr.msra.gmra.mxu0 %vm60_vm1, %v1021_v47 }
 0x938   :  { %5166 = vmatpush3.msra.mxu0 %v6058_v4  ;;  %5173 = vmatprep.mubr.msk.f32.mxu0 %vm6028_vm0, %v7269_v13 }
 0x939   :  { %5167 = vmatprep.subr.mxu0 %v7269_v13 }
 0x93a   :  { %5168 = vmatpush3.msra.mxu0 %v6060_v5 }
 0x93b   :  { %5169 = vmatprep.subr.mxu0 %v7269_v13 }
 0x93c   :  { %5170 = vmatpush3.msra.mxu0 %v6065_v8 }
 0x93d   :  { %5171 = vmatprep.subr.mxu0 %v7269_v13 }
 0x93e   :  { %5172 = vmatpush3.msra.mxu0 %v6069_v10 }
 0x93f   :  { %5174 = vmatmul.mubr.msk.f32.vlgmr.msra.gmra.mxu0 %vm203_vm2, %v1267_v53  ;;  %5176 = vmatprep.subr.mxu0 %v7269_v13 }
 0x940   :  { %5177 = vmatpush3.msra.mxu0 %v6085_v22  ;;  %5192 = vmatprep.mubr.msk.f32.mxu0 %vm6028_vm0, %v7269_v13 }
 0x941   :  { %5178 = vmatprep.subr.mxu0 %v7269_v13 }
 0x942   :  { %5179 = vmatpush3.msra.mxu0 %v6087_v23 }
 0x943   :  { %5180 = vmatprep.subr.mxu0 %v7269_v13 }
 0x944   :  { %5181 = vmatpush3.msra.mxu0 %v6091_v24 }
 0x945   :  { %5182 = vmatprep.subr.mxu0 %v7269_v13 }
 0x946   :  { %5183 = vmatpush3.msra.mxu0 %v6095_v25  ;;  %v162_v25 = vadd.f32 %v6082_v18, %v6161_v57 }
 0x947   :  { %5184 = vmatprep.subr.mxu0 %v7269_v13 }
 0x948   :  { %5185 = vmatpush3.msra.mxu0 %v6099_v26 }
 0x949   :  { %5186 = vmatprep.subr.mxu0 %v7269_v13 }
 0x94a   :  { %5187 = vmatpush3.msra.mxu0 %v6103_v27 }
 0x94b   :  { %5188 = vmatprep.subr.mxu0 %v7269_v13 }
 0x94c   :  { %5189 = vmatpush3.msra.mxu0 %v6110_v32 }
 0x94d   :  { %5190 = vmatprep.subr.mxu0 %v7269_v13 }
 0x94e   :  { %5191 = vmatpush3.msra.mxu0 %v6114_v33 }
 0x94f   :  { %5232 = vmatprep.subr.mxu0 %v7269_v13 }
 0x950   :  { %v1093_v4 = vpop.f32.mrf.mxu0 }
 0x952   :  { %v5118_v5 = vpop.f32.mrf.mxu0 }
 0x9f7   :  { %v1166_v8 = vpop.f32.mrf.mxu0 }
 0x9f8   :  { %v1167_v10 = vadd.f32 %v1166_v8, %v1093_v4 }
 0x9f9   :  { %v5137_v22 = vpop.f32.mrf.mxu0 }
 0x9fa   :  { %v1170_v23 = vadd.f32 %v6301_v12, %v1167_v10 }
 0x9fc   :  { %v1171_v24 = vmax.f32 %v1170_v23, 0.0 }
 0x9fe   :  { %5163 = vmatmul.mubr.msk.f32.vlgmr.msra.gmra.mxu1 %vm664_vm3, %v1171_v24 }
 0x9ff   :  { %v1336_v26 = vpop.f32.mrf.mxu0  ;;  %5196 = vmatpush3.msra.mxu1 %v6117_v34  ;;  %5203 = vmatprep.mubr.msk.f32.mxu1 %vm6028_vm0, %v7269_v13 }
 0xa00   :  { %v1340_v27 = vadd.f32 %v1336_v26, %v162_v25  ;;  %5197 = vmatprep.subr.mxu1 %v7269_v13 }
 0xa01   :  { %v5175_v55 = vpop.f32.mrf.mxu0  ;;  %5198 = vmatpush3.msra.mxu1 %v6122_v37 }
 0xa02   :  { %5796 = vtanh.f32 %v1340_v27  ;;  %5199 = vmatprep.subr.mxu1 %v7269_v13  ;;  %v4518_v34 = vmul.f32 -1.442695, %v1340_v27 }
 0xa03   :  { %5200 = vmatpush3.msra.mxu1 %v6126_v39 }
 0xa04   :  { %5201 = vmatprep.subr.mxu1 %v7269_v13  ;;  %5798 = vpow2.f32 %v4518_v34 }
 0xa05   :  { %5202 = vmatpush3.msra.mxu1 %v6149_v50 }
 0xa06   :  { %5206 = vmatprep.subr.mxu1 %v7269_v13 }
 0xa0f   :  { %v5797_v18 = vpop.eup %5796 }
 0xa10   :  { %1350 = vrot.lane.b32.xlu0 %v5797_v18, %s6029_s0 }
 0xa11   :  { %v5799_v57 = vpop.eup %5798 }
 0xa12   :  { %v1344_v54 = vadd.f32 1.0, %v5799_v57 }
 0xa14   :  { %5800 = vrcp.f32 %v1344_v54 }
 0xa21   :  { %v6449_v37 = vpop.eup %5800 }
 0xa22   :  { %v1348_v15 = vmul.f32 %v6449_v37, %v6330_v17 }
 0xa82   :  { %v1351_v16 = vpop.permute.xlu0 %1350 }
 0xa83   :  { %v1353_v49 = vmul.f32 %v6449_v37, %v1351_v16 }
 0xa85   :  { %1355 = vrot.lane.b32.xlu0 %v1353_v49, %s6029_s0 }
 0xa89   :  { %1366 = vrot.lane.b32.xlu0 %v6330_v17, %s6031_s21 }
 0xabe   :  { %v1241_v39 = vpop.f32.mrf.mxu1 }
 0xabf   :  { %v1242_v11 = vadd.f32 %v6324_v14, %v1241_v39 }
 0xac0   :  { %v5164_v0 = vpop.f32.mrf.mxu1 }
 0xac1   :  { %5802 = vtanh.f32 %v1242_v11  ;;  %v4516_v17 = vmul.f32 -1.442695, %v1242_v11  ;;  %v6549_v0 = vld [vmem:[#allocation5 + $0x40] sm:$0xff] }
 0xac3   :  { %5804 = vpow2.f32 %v4516_v17  ;;  %v6576_v17 = vld [vmem:[#allocation5 + $0x78] sm:$0xff] }
 0xace   :  { %v5803_v63 = vpop.eup %5802 }
 0xacf   :  { %1254 = vrot.lane.b32.xlu1 %v5803_v63, %s6029_s0  ;;  %v6554_v63 = vld [vmem:[#allocation5 + $0xa0] sm:$0xff] }
 0xad0   :  { %v5805_v4 = vpop.eup %5804 }
 0xad1   :  { %v1249_v5 = vadd.f32 1.0, %v5805_v4 }
 0xad3   :  { %5806 = vrcp.f32 %v1249_v5 }
 0xae0   :  { %v5807_v8 = vpop.eup %5806 }
 0xae1   :  { %v1252_v54 = vmul.f32 %v5807_v8, %v6377_v52  ;;  %v6535_v52 = vld [vmem:[#allocation5 + $0x58] sm:$0xff] }
 0xaf7   :  { %v1356_v48 = vpop.permute.xlu0 %1355 }
 0xaf8   :  { %v6459_v19 = vadd.f32 %v1356_v48, %v1348_v15  ;;  %v6560_v48 = vld [vmem:[#allocation5 + $0x98] sm:$0xff]  ;;  %v6564_v15 = vld [vmem:[#allocation5 + $0x90] sm:$0xff] }
 0xafa   :  { %5808 = vtanh.f32 %v6459_v19 }
 0xafb   :  { %v1367_v47 = vpop.permute.xlu0 %1366 }
 0xafc   :  { %v6463_v53 = vsel %vm203_vm2, %v1367_v47, %v6459_v19  ;;  %v6568_v47 = vld [vmem:[#allocation5 + $0x88] sm:$0xff] }
 0xafd   :  { %5193 = vmatmul.mubr.msk.f32.vlgmr.msra.gmra.mxu0 %vm60_vm1, %v6463_v53 }
 0xafe   :  { %5233 = vmatpush3.msra.mxu0 %v6222_v38  ;;  %5256 = vmatprep.mubr.msk.f32.mxu0 %vm6028_vm0, %v7269_v13 }
 0xaff   :  { %5234 = vmatprep.subr.mxu0 %v7269_v13 }
 0xb00   :  { %5235 = vmatpush3.msra.mxu0 %v6224_v40 }
 0xb01   :  { %5236 = vmatprep.subr.mxu0 %v7269_v13 }
 0xb02   :  { %5237 = vmatpush3.msra.mxu0 %v6228_v41 }
 0xb03   :  { %5238 = vmatprep.subr.mxu0 %v7269_v13 }
 0xb04   :  { %5239 = vmatpush3.msra.mxu0 %v6232_v42 }
 0xb05   :  { %5240 = vmatprep.subr.mxu0 %v7269_v13 }
 0xb06   :  { %5241 = vmatpush3.msra.mxu0 %v6236_v43 }
 0xb07   :  { %5242 = vmatprep.subr.mxu0 %v7269_v13  ;;  %v5809_v23 = vpop.eup %5808 }
 0xb08   :  { %5243 = vmatpush3.msra.mxu0 %v6240_v44 }
 0xb09   :  { %5244 = vmatprep.subr.mxu0 %v7269_v13 }
 0xb0a   :  { %5245 = vmatpush3.msra.mxu0 %v6244_v45 }
 0xb0b   :  { %5246 = vmatprep.subr.mxu0 %v7269_v13 }
 0xb0c   :  { %5247 = vmatpush3.msra.mxu0 %v6248_v46 }
 0xb0d   :  { %5248 = vmatprep.subr.mxu0 %v7269_v13 }
 0xb0e   :  { %5249 = vmatpush3.msra.mxu0 %v6285_v1 }
 0xb0f   :  { %5250 = vmatprep.subr.mxu0 %v7269_v13 }
 0xb10   :  { %5251 = vmatpush3.msra.mxu0 %v6289_v2 }
 0xb11   :  { %5252 = vmatprep.subr.mxu0 %v7269_v13 }
 0xb12   :  { %5253 = vmatpush3.msra.mxu0 %v6293_v3 }
 0xb13   :  { %5254 = vmatprep.subr.mxu0 %v7269_v13 }
 0xb14   :  { %5255 = vmatpush3.msra.mxu0 %v6296_v6 }
 0xb15   :  { %5289 = vmatprep.subr.mxu0 %v7269_v13 }
 0xb41   :  { %v1255_v10 = vpop.permute.xlu1 %1254 }
 0xb42   :  { %v1257_v22 = vmul.f32 %v5807_v8, %v1255_v10 }
 0xb44   :  { %1259 = vrot.lane.b32.xlu1 %v1257_v22, %s6032_s22 }
 0xb48   :  { %1361 = vrot.lane.b32.xlu1 %v5809_v23, %s6029_s0 }
 0xbb6   :  { %v1260_v57 = vpop.permute.xlu1 %1259 }
 0xbba   :  { %v1362_v16 = vpop.permute.xlu1 %1361 }
 0xbbd   :  { %v1439_v24 = vpop.f32.mrf.mxu0 }
 0xbbe   :  { %v1440_v25 = vadd.f32 %v6153_v51, %v1439_v24 }
 0xbbf   :  { %v5194_v26 = vpop.f32.mrf.mxu0 }
 0xbc0   :  { %v1443_v27 = vmax.f32 %v1440_v25, 0.0  ;;  %v6585_v25 = vld [vmem:[#allocation5 + $0x60] ss:$0 sm:$0xff] }
 0xbc1   :  { %v167_v26 = vadd.f32 %v6585_v25, %v6159_v56  ;;  %v6600_v56 = vld [vmem:[#allocation5 + $0xb8] sm:$0xff] }
 0xbc2   :  { %5204 = vmatmul.mubr.msk.f32.vlgmr.msra.gmra.mxu1 %vm203_vm2, %v1443_v27  ;;  %v6590_v27 = vld [vmem:[#allocation5 + $0xc8] sm:$0xff] }
 0xbc3   :  { %5207 = vmatpush3.msra.mxu1 %v6177_v7  ;;  %5210 = vmatprep.mubr.msk.f32.mxu1 %vm6028_vm0, %v7269_v13  ;;  %v6507_v7 = vadd.f32 %v1260_v57, %v1252_v54 }
 0xbc4   :  { %5208 = vmatprep.subr.mxu1 %v7269_v13 }
 0xbc5   :  { %5209 = vmatpush3.msra.mxu1 %v6179_v9  ;;  %v1364_v9 = vmul.f32 %v6449_v37, %v1362_v16 }
 0xbc6   :  { %5213 = vmatprep.subr.mxu1 %v7269_v13 }
 0xc82   :  { %v1513_v55 = vpop.f32.mrf.mxu1 }
 0xc83   :  { %v1514_v18 = vadd.f32 %v6171_v62, %v1513_v55 }
 0xc84   :  { %v5205_v34 = vpop.f32.mrf.mxu1 }
 0xc85   :  { %v1517_v51 = vsel %vm60_vm1, %v1514_v18, -inf }
 0xc86   :  { %1518 = vmax.xlane.f32.xlu0 %v1517_v51 }
 0xc9c   :  { %1530 = vrot.lane.b32.xlu0 %v6507_v7, %s6032_s22 }
 0xca0   :  { %1773 = vrot.lane.b32.xlu0 %v1364_v9, %s6030_s1 }
 0xd0f   :  { %v1519_v49 = vpop.xlane.xlu0 %1518 }
 0xd10   :  { %v1520_v39 = vsub.f32 %v1514_v18, %v1519_v49  ;;  %v6596_v18 = vld [vmem:[#allocation5 + $0xc0] sm:$0xff] }
 0xd12   :  { %v1521_v62 = vmul.f32 1.442695, %v1520_v39 }
 0xd13   :  { %v1531_v11 = vpop.permute.xlu0 %1530 }
 0xd14   :  { %5810 = vpow2.f32 %v1521_v62  ;;  %5211 = vmatmul.mubr.msk.f32.vlgmr.msra.gmra.mxu1 %vm494_vm4, %v1531_v11 }
 0xd15   :  { %5214 = vmatpush3.msra.mxu1 %v6190_v20  ;;  %5229 = vmatprep.mubr.msk.f32.mxu1 %vm6028_vm0, %v7269_v13 }
 0xd16   :  { %5215 = vmatprep.subr.mxu1 %v7269_v13 }
 0xd17   :  { %5216 = vmatpush3.msra.mxu1 %v6192_v21  ;;  %v1774_v37 = vpop.permute.xlu0 %1773 }
 0xd18   :  { %5217 = vmatprep.subr.mxu1 %v7269_v13 }
 0xd19   :  { %5218 = vmatpush3.msra.mxu1 %v6196_v28 }
 0xd1a   :  { %5219 = vmatprep.subr.mxu1 %v7269_v13 }
 0xd1b   :  { %5220 = vmatpush3.msra.mxu1 %v6200_v29 }
 0xd1c   :  { %5221 = vmatprep.subr.mxu1 %v7269_v13 }
 0xd1d   :  { %5222 = vmatpush3.msra.mxu1 %v6204_v30 }
 0xd1e   :  { %5223 = vmatprep.subr.mxu1 %v7269_v13 }
 0xd1f   :  { %5224 = vmatpush3.msra.mxu1 %v6208_v31 }
 0xd20   :  { %5225 = vmatprep.subr.mxu1 %v7269_v13 }
 0xd21   :  { %v5811_v20 = vpop.eup %5810  ;;  %5226 = vmatpush3.msra.mxu1 %v6212_v35  ;;  %v6541_v35 = vld [vmem:[#allocation5 + $0x50] sm:$0xff] }
 0xd22   :  { %v1523_v21 = vsel %vm60_vm1, %v5811_v20, 0.0  ;;  %5227 = vmatprep.subr.mxu1 %v7269_v13 }
 0xd23   :  { %1524 = vadd.xlane.f32.xlu1 %v1523_v21  ;;  %5228 = vmatpush3.msra.mxu1 %v6216_v36  ;;  %v6545_v36 = vld [vmem:[#allocation5 + $0x48] sm:$0xff] }
 0xd24   :  { %5259 = vmatprep.subr.mxu1 %v7269_v13 }
 0xdac   :  { %v1525_v28 = vpop.xlane.xlu1 %1524 }
 0xdad   :  { %5812 = vrcp.f32 %v1525_v28 }
 0xdba   :  { %v5813_v29 = vpop.eup %5812 }
 0xdbb   :  { %v1527_v30 = vmul.f32 %v5813_v29, %v5811_v20 }
 0xdbd   :  { %v1528_v31 = vmul.f32 %v1527_v30, %v6463_v53  ;;  %v6572_v53 = vld [vmem:[#allocation5 + $0x80] sm:$0xff] }
 0xdbf   :  { %5230 = vmatmul.mubr.msk.f32.vlgmr.msra.gmra.mxu1 %vm60_vm1, %v1528_v31  ;;  %v6664_v31 = vld [vmem:[#allocation5 + $0x118] sm:$0xff] }
 0xdc0   :  { %5260 = vmatpush3.msra.mxu1 %v6535_v52  ;;  %5267 = vmatprep.mubr.msk.f32.mxu1 %vm6028_vm0, %v7269_v13 }
 0xdc1   :  { %5261 = vmatprep.subr.mxu1 %v7269_v13 }
 0xdc2   :  { %5262 = vmatpush3.msra.mxu1 %v6541_v35 }
 0xdc3   :  { %5263 = vmatprep.subr.mxu1 %v7269_v13 }
 0xdc4   :  { %5264 = vmatpush3.msra.mxu1 %v6545_v36 }
 0xdc5   :  { %5265 = vmatprep.subr.mxu1 %v7269_v13 }
 0xdc6   :  { %5266 = vmatpush3.msra.mxu1 %v6549_v0 }
 0xdc7   :  { %5268 = vmatmul.mubr.msk.f32.vlgmr.msra.gmra.mxu1 %vm203_vm2, %v1774_v37  ;;  %5270 = vmatprep.subr.mxu1 %v7269_v13 }
 0xdc8   :  { %5271 = vmatpush3.msra.mxu1 %v6554_v63  ;;  %5286 = vmatprep.mubr.msk.f32.mxu1 %vm6028_vm0, %v7269_v13 }
 0xdc9   :  { %5272 = vmatprep.subr.mxu1 %v7269_v13 }
 0xdca   :  { %5273 = vmatpush3.msra.mxu1 %v6560_v48 }
 0xdcb   :  { %5274 = vmatprep.subr.mxu1 %v7269_v13 }
 0xdcc   :  { %5275 = vmatpush3.msra.mxu1 %v6564_v15 }
 0xdcd   :  { %5276 = vmatprep.subr.mxu1 %v7269_v13 }
 0xdce   :  { %5277 = vmatpush3.msra.mxu1 %v6568_v47 }
 0xdcf   :  { %5278 = vmatprep.subr.mxu1 %v7269_v13 }
 0xdd0   :  { %5279 = vmatpush3.msra.mxu1 %v6572_v53 }
 0xdd1   :  { %5280 = vmatprep.subr.mxu1 %v7269_v13 }
 0xdd2   :  { %5281 = vmatpush3.msra.mxu1 %v6576_v17 }
 0xdd3   :  { %5282 = vmatprep.subr.mxu1 %v7269_v13 }
 0xdd4   :  { %v1600_v4 = vpop.f32.mrf.mxu1  ;;  %5283 = vmatpush3.msra.mxu1 %v6110_v32 }
 0xdd5   :  { %5284 = vmatprep.subr.mxu1 %v7269_v13 }
 0xdd6   :  { %v5212_v5 = vpop.f32.mrf.mxu1  ;;  %5285 = vmatpush3.msra.mxu1 %v6114_v33 }
 0xdd7   :  { %5326 = vmatprep.subr.mxu1 %v7269_v13 }
 0xe7f   :  { %v1673_v8 = vpop.f32.mrf.mxu1 }
 0xe80   :  { %v1674_v10 = vadd.f32 %v1673_v8, %v1600_v4  ;;  %v6668_v4 = vld [vmem:[#allocation5 + $0xd0] ss:$0 sm:$0xff] }
 0xe81   :  { %v5231_v22 = vpop.f32.mrf.mxu1 }
 0xe82   :  { %v1677_v23 = vadd.f32 %v6301_v12, %v1674_v10 }
 0xe84   :  { %v1678_v24 = vmax.f32 %v1677_v23, 0.0 }
 0xe86   :  { %5257 = vmatmul.mubr.msk.f32.vlgmr.msra.gmra.mxu0 %vm664_vm3, %v1678_v24 }
 0xe87   :  { %v1843_v32 = vpop.f32.mrf.mxu1  ;;  %5290 = vmatpush3.msra.mxu0 %v6590_v27  ;;  %5297 = vmatprep.mubr.msk.f32.mxu0 %vm6028_vm0, %v7269_v13 }
 0xe88   :  { %v1847_v33 = vadd.f32 %v1843_v32, %v167_v26  ;;  %5291 = vmatprep.subr.mxu0 %v7269_v13 }
 0xe89   :  { %v5269_v55 = vpop.f32.mrf.mxu1  ;;  %5292 = vmatpush3.msra.mxu0 %v6596_v18 }
 0xe8a   :  { %5814 = vtanh.f32 %v1847_v33  ;;  %5293 = vmatprep.subr.mxu0 %v7269_v13  ;;  %v4526_v51 = vmul.f32 -1.442695, %v1847_v33 }
 0xe8b   :  { %5294 = vmatpush3.msra.mxu0 %v6600_v56 }
 0xe8c   :  { %5295 = vmatprep.subr.mxu0 %v7269_v13  ;;  %5816 = vpow2.f32 %v4526_v51  ;;  %v6688_v51 = vld [vmem:[#allocation5 + $0x100] sm:$0xff] }
 0xe8d   :  { %5296 = vmatpush3.msra.mxu0 %v6149_v50 }
 0xe8e   :  { %5300 = vmatprep.subr.mxu0 %v7269_v13 }
 0xe97   :  { %v5815_v34 = vpop.eup %5814 }
 0xe98   :  { %1857 = vrot.lane.b32.xlu0 %v5815_v34, %s6029_s0  ;;  %v6678_v34 = vld [vmem:[#allocation5 + $0x110] sm:$0xff] }
 0xe99   :  { %v5817_v57 = vpop.eup %5816 }
 0xe9a   :  { %v1851_v54 = vadd.f32 1.0, %v5817_v57  ;;  %v6692_v57 = vld [vmem:[#allocation5 + $0xf8] sm:$0xff] }
 0xe9c   :  { %1873 = vrot.lane.b32.xlu0 %v6459_v19, %s6031_s21  ;;  %5818 = vrcp.f32 %v1851_v54  ;;  %v6696_v54 = vld [vmem:[#allocation5 + $0xf0] sm:$0xff] }
 0xea9   :  { %v6609_v16 = vpop.eup %5818 }
 0xeaa   :  { %v1855_v20 = vmul.f32 %v6609_v16, %v6459_v19  ;;  %v6658_v19 = vld [vmem:[#allocation5 + $0x120] sm:$0xff] }
 0xf0a   :  { %v1858_v9 = vpop.permute.xlu0 %1857 }
 0xf0b   :  { %v1860_v49 = vmul.f32 %v6609_v16, %v1858_v9  ;;  %v6700_v9 = vld [vmem:[#allocation5 + $0xe8] sm:$0xff] }
 0xf0d   :  { %1862 = vrot.lane.b32.xlu1 %v1860_v49, %s6029_s0 }
 0xf0e   :  { %v1874_v29 = vpop.permute.xlu0 %1873 }
 0xf46   :  { %v1748_v50 = vpop.f32.mrf.mxu0 }
 0xf47   :  { %v1749_v39 = vadd.f32 %v6324_v14, %v1748_v50  ;;  %v6704_v50 = vld [vmem:[#allocation5 + $0xe0] sm:$0xff] }
 0xf48   :  { %v5258_v62 = vpop.f32.mrf.mxu0 }
 0xf49   :  { %5820 = vtanh.f32 %v1749_v39  ;;  %v6709_v62 = vld [vmem:[#allocation5 + $0xd8] sm:$0xff] }
 0xf56   :  { %v5821_v11 = vpop.eup %5820 }
 0xf57   :  { %1761 = vrot.lane.b32.xlu0 %v5821_v11, %s6029_s0 }
 0xf7f   :  { %v1863_v21 = vpop.permute.xlu1 %1862 }
 0xf80   :  { %v6617_v28 = vadd.f32 %v1863_v21, %v1855_v20 }
 0xf82   :  { %v6621_v30 = vsel %vm203_vm2, %v1874_v29, %v6617_v28 }
 0xf83   :  { %5287 = vmatmul.mubr.msk.f32.vlgmr.msra.gmra.mxu1 %vm60_vm1, %v6621_v30 }
 0xf84   :  { %5327 = vmatpush3.msra.mxu1 %v6222_v38  ;;  %5350 = vmatprep.mubr.msk.f32.mxu1 %vm6028_vm0, %v7269_v13  ;;  %v4524_v38 = vmul.f32 -1.442695, %v1749_v39 }
 0xf85   :  { %5328 = vmatprep.subr.mxu1 %v7269_v13 }
 0xf86   :  { %5329 = vmatpush3.msra.mxu1 %v6224_v40  ;;  %5822 = vpow2.f32 %v4524_v38 }
 0xf87   :  { %5330 = vmatprep.subr.mxu1 %v7269_v13 }
 0xf88   :  { %5331 = vmatpush3.msra.mxu1 %v6228_v41 }
 0xf89   :  { %5332 = vmatprep.subr.mxu1 %v7269_v13 }
 0xf8a   :  { %5333 = vmatpush3.msra.mxu1 %v6232_v42 }
 0xf8b   :  { %5334 = vmatprep.subr.mxu1 %v7269_v13 }
 0xf8c   :  { %5335 = vmatpush3.msra.mxu1 %v6236_v43 }
 0xf8d   :  { %5336 = vmatprep.subr.mxu1 %v7269_v13 }
 0xf8e   :  { %5337 = vmatpush3.msra.mxu1 %v6240_v44 }
 0xf8f   :  { %5338 = vmatprep.subr.mxu1 %v7269_v13 }
 0xf90   :  { %5339 = vmatpush3.msra.mxu1 %v6244_v45 }
 0xf91   :  { %5340 = vmatprep.subr.mxu1 %v7269_v13 }
 0xf92   :  { %5341 = vmatpush3.msra.mxu1 %v6248_v46 }
 0xf93   :  { %5342 = vmatprep.subr.mxu1 %v7269_v13  ;;  %v5823_v40 = vpop.eup %5822 }
 0xf94   :  { %5343 = vmatpush3.msra.mxu1 %v6285_v1  ;;  %v1756_v41 = vadd.f32 1.0, %v5823_v40  ;;  %v6654_v1 = vld [vmem:[#allocation5 + $0xa8] ss:$0 sm:$0xff] }
 0xf95   :  { %5344 = vmatprep.subr.mxu1 %v7269_v13 }
 0xf96   :  { %5345 = vmatpush3.msra.mxu1 %v6289_v2  ;;  %5824 = vrcp.f32 %v1756_v41  ;;  %v6742_v41 = vld [vmem:[#allocation5 + $0x70] sm:$0xff] }
 0xf97   :  { %5346 = vmatprep.subr.mxu1 %v7269_v13  ;;  %5826 = vtanh.f32 %v6617_v28 }
 0xf98   :  { %5347 = vmatpush3.msra.mxu1 %v6293_v3 }
 0xf99   :  { %5348 = vmatprep.subr.mxu1 %v7269_v13 }
 0xf9a   :  { %5349 = vmatpush3.msra.mxu1 %v6296_v6 }
 0xf9b   :  { %5383 = vmatprep.subr.mxu1 %v7269_v13 }
 0xfa3   :  { %v5825_v42 = vpop.eup %5824 }
 0xfa4   :  { %v5827_v45 = vpop.eup %5826  ;;  %v1759_v23 = vmul.f32 %v5825_v42, %v6507_v7  ;;  %v6684_v7 = vld [vmem:[#allocation5 + $0x108] sm:$0xff] }
 0xfc9   :  { %v1762_v43 = vpop.permute.xlu0 %1761 }
 0xfca   :  { %v1764_v44 = vmul.f32 %v5825_v42, %v1762_v43  ;;  %v6746_v43 = vld [vmem:[#allocation5 + $0x68] sm:$0xff] }
 0xfcc   :  { %1766 = vrot.lane.b32.xlu1 %v1764_v44, %s6032_s22 }
 0xfd0   :  { %1868 = vrot.lane.b32.xlu1 %v5827_v45, %s6029_s0 }
0x103e   :  { %v1767_v22 = vpop.permute.xlu1 %1766 }
0x103f   :  { %v6673_v24 = vadd.f32 %v1767_v22, %v1759_v23 }
0x1042   :  { %v1869_v11 = vpop.permute.xlu1 %1868 }
0x1043   :  { %v1946_v46 = vpop.f32.mrf.mxu1  ;;  %v1871_v20 = vmul.f32 %v6609_v16, %v1869_v11 }
0x1044   :  { %v1947_v2 = vadd.f32 %v6654_v1, %v1946_v46 }
0x1045   :  { %v5288_v3 = vpop.f32.mrf.mxu1 }
0x1046   :  { %v1950_v6 = vmax.f32 %v1947_v2, 0.0 }
0x1048   :  { %5298 = vmatmul.mubr.msk.f32.vlgmr.msra.gmra.mxu0 %vm203_vm2, %v1950_v6  ;;  %v172_v6 = vadd.f32 %v6585_v25, %v6165_v59  ;;  %v6762_v59 = vld [vmem:[#allocation5 + $0xb0] sm:$0xff] }
0x1049   :  { %5301 = vmatpush3.msra.mxu0 %v6658_v19  ;;  %5304 = vmatprep.mubr.msk.f32.mxu0 %vm6028_vm0, %v7269_v13 }
0x104a   :  { %5302 = vmatprep.subr.mxu0 %v7269_v13 }
0x104b   :  { %5303 = vmatpush3.msra.mxu0 %v6664_v31 }
0x104c   :  { %5307 = vmatprep.subr.mxu0 %v7269_v13 }
0x1108   :  { %v2020_v37 = vpop.f32.mrf.mxu0 }
0x1109   :  { %v2021_v5 = vadd.f32 %v6668_v4, %v2020_v37 }
0x110a   :  { %v5299_v8 = vpop.f32.mrf.mxu0 }
0x110b   :  { %v2024_v10 = vsel %vm60_vm1, %v2021_v5, -inf }
0x110c   :  { %2025 = vmax.xlane.f32.xlu0 %v2024_v10 }
0x1122   :  { %2037 = vrot.lane.b32.xlu0 %v6673_v24, %s6032_s22 }
0x1195   :  { %v2026_v26 = vpop.xlane.xlu0 %2025 }
0x1196   :  { %v2027_v32 = vsub.f32 %v2021_v5, %v2026_v26 }
0x1198   :  { %v2028_v33 = vmul.f32 1.442695, %v2027_v32 }
0x1199   :  { %v2038_v55 = vpop.permute.xlu0 %2037 }
0x119a   :  { %5828 = vpow2.f32 %v2028_v33  ;;  %5305 = vmatmul.mubr.msk.f32.vlgmr.msra.gmra.mxu0 %vm494_vm4, %v2038_v55 }
0x119b   :  { %5308 = vmatpush3.msra.mxu0 %v6678_v34  ;;  %5323 = vmatprep.mubr.msk.f32.mxu0 %vm6028_vm0, %v7269_v13 }
0x119c   :  { %5309 = vmatprep.subr.mxu0 %v7269_v13 }
0x119d   :  { %5310 = vmatpush3.msra.mxu0 %v6684_v7 }
0x119e   :  { %5311 = vmatprep.subr.mxu0 %v7269_v13 }
0x119f   :  { %5312 = vmatpush3.msra.mxu0 %v6688_v51 }
0x11a0   :  { %5313 = vmatprep.subr.mxu0 %v7269_v13 }
0x11a1   :  { %5314 = vmatpush3.msra.mxu0 %v6692_v57 }
0x11a2   :  { %5315 = vmatprep.subr.mxu0 %v7269_v13 }
0x11a3   :  { %5316 = vmatpush3.msra.mxu0 %v6696_v54 }
0x11a4   :  { %5317 = vmatprep.subr.mxu0 %v7269_v13 }
0x11a5   :  { %5318 = vmatpush3.msra.mxu0 %v6700_v9 }
0x11a6   :  { %5319 = vmatprep.subr.mxu0 %v7269_v13 }
0x11a7   :  { %v5829_v49 = vpop.eup %5828  ;;  %5320 = vmatpush3.msra.mxu0 %v6704_v50 }
0x11a8   :  { %v2030_v39 = vsel %vm60_vm1, %v5829_v49, 0.0  ;;  %5321 = vmatprep.subr.mxu0 %v7269_v13 }
0x11a9   :  { %2031 = vadd.xlane.f32.xlu1 %v2030_v39  ;;  %5322 = vmatpush3.msra.mxu0 %v6709_v62 }
0x11aa   :  { %5353 = vmatprep.subr.mxu0 %v7269_v13 }
0x11ba   :  { %2280 = vrot.lane.b32.xlu1 %v1871_v20, %s6030_s1 }
0x1232   :  { %v2032_v21 = vpop.xlane.xlu1 %2031 }
0x1233   :  { %5830 = vrcp.f32 %v2032_v21 }
0x1236   :  { %v2281_v16 = vpop.permute.xlu1 %2280 }
0x1240   :  { %v5831_v29 = vpop.eup %5830 }
0x1241   :  { %v2034_v38 = vmul.f32 %v5831_v29, %v5829_v49 }
0x1243   :  { %v2035_v40 = vmul.f32 %v2034_v38, %v6621_v30 }
0x1245   :  { %5324 = vmatmul.mubr.msk.f32.vlgmr.msra.gmra.mxu0 %vm60_vm1, %v2035_v40 }
0x1246   :  { %5354 = vmatpush3.msra.mxu0 %v6535_v52  ;;  %5361 = vmatprep.mubr.msk.f32.mxu0 %vm6028_vm0, %v7269_v13 }
0x1247   :  { %5355 = vmatprep.subr.mxu0 %v7269_v13 }
0x1248   :  { %5356 = vmatpush3.msra.mxu0 %v6541_v35 }
0x1249   :  { %5357 = vmatprep.subr.mxu0 %v7269_v13 }
0x124a   :  { %5358 = vmatpush3.msra.mxu0 %v6545_v36 }
0x124b   :  { %5359 = vmatprep.subr.mxu0 %v7269_v13 }
0x124c   :  { %5360 = vmatpush3.msra.mxu0 %v6549_v0 }
0x124d   :  { %5362 = vmatmul.mubr.msk.f32.vlgmr.msra.gmra.mxu0 %vm203_vm2, %v2281_v16  ;;  %5364 = vmatprep.subr.mxu0 %v7269_v13  ;;  %v6795_v16 = vld [vmem:[#allocation5 + $0x178] sm:$0xff] }
0x124e   :  { %5365 = vmatpush3.msra.mxu0 %v6554_v63  ;;  %5380 = vmatprep.mubr.msk.f32.mxu0 %vm6028_vm0, %v7269_v13 }
0x124f   :  { %5366 = vmatprep.subr.mxu0 %v7269_v13 }
0x1250   :  { %5367 = vmatpush3.msra.mxu0 %v6560_v48 }
0x1251   :  { %5368 = vmatprep.subr.mxu0 %v7269_v13 }
0x1252   :  { %5369 = vmatpush3.msra.mxu0 %v6564_v15 }
0x1253   :  { %5370 = vmatprep.subr.mxu0 %v7269_v13 }
0x1254   :  { %5371 = vmatpush3.msra.mxu0 %v6568_v47 }
0x1255   :  { %5372 = vmatprep.subr.mxu0 %v7269_v13 }
0x1256   :  { %5373 = vmatpush3.msra.mxu0 %v6572_v53 }
0x1257   :  { %5374 = vmatprep.subr.mxu0 %v7269_v13 }
0x1258   :  { %5375 = vmatpush3.msra.mxu0 %v6576_v17 }
0x1259   :  { %5376 = vmatprep.subr.mxu0 %v7269_v13 }
0x125a   :  { %v2107_v30 = vpop.f32.mrf.mxu0  ;;  %5377 = vmatpush3.msra.mxu0 %v6742_v41 }
0x125b   :  { %5378 = vmatprep.subr.mxu0 %v7269_v13 }
0x125c   :  { %v5306_v42 = vpop.f32.mrf.mxu0  ;;  %5379 = vmatpush3.msra.mxu0 %v6746_v43 }
0x125d   :  { %5420 = vmatprep.subr.mxu0 %v7269_v13  ;;  %v6803_v42 = vld [vmem:[#allocation5 + $0x168] sm:$0xff] }
0x1305   :  { %v2180_v44 = vpop.f32.mrf.mxu0 }
0x1306   :  { %v2181_v45 = vadd.f32 %v2180_v44, %v2107_v30  ;;  %v6799_v30 = vld [vmem:[#allocation5 + $0x170] sm:$0xff]  ;;  %v6807_v44 = vld [vmem:[#allocation5 + $0x160] sm:$0xff] }
0x1307   :  { %v5325_v46 = vpop.f32.mrf.mxu0 }
0x1308   :  { %v2184_v2 = vadd.f32 %v6301_v12, %v2181_v45  ;;  %v6811_v45 = vld [vmem:[#allocation5 + $0x158] sm:$0xff]  ;;  %v6815_v46 = vld [vmem:[#allocation5 + $0x150] sm:$0xff] }
0x130a   :  { %v2185_v3 = vmax.f32 %v2184_v2, 0.0  ;;  %v6819_v2 = vld [vmem:[#allocation5 + $0x148] sm:$0xff] }
0x130c   :  { %5351 = vmatmul.mubr.msk.f32.vlgmr.msra.gmra.mxu1 %vm664_vm3, %v2185_v3  ;;  %v6823_v3 = vld [vmem:[#allocation5 + $0x140] sm:$0xff] }
0x130d   :  { %v2350_v37 = vpop.f32.mrf.mxu0  ;;  %5384 = vmatpush3.msra.mxu1 %v6590_v27  ;;  %5391 = vmatprep.mubr.msk.f32.mxu1 %vm6028_vm0, %v7269_v13 }
0x130e   :  { %v2354_v5 = vadd.f32 %v2350_v37, %v172_v6  ;;  %5385 = vmatprep.subr.mxu1 %v7269_v13  ;;  %v6827_v6 = vld [vmem:[#allocation5 + $0x138] sm:$0xff]  ;;  %v6831_v37 = vld [vmem:[#allocation5 + $0x130] sm:$0xff] }
0x130f   :  { %v5363_v8 = vpop.f32.mrf.mxu0  ;;  %5386 = vmatpush3.msra.mxu1 %v6596_v18 }
0x1310   :  { %5832 = vtanh.f32 %v2354_v5  ;;  %5387 = vmatprep.subr.mxu1 %v7269_v13  ;;  %v4534_v10 = vmul.f32 -1.442695, %v2354_v5 }
0x1311   :  { %5388 = vmatpush3.msra.mxu1 %v6600_v56 }
0x1312   :  { %5389 = vmatprep.subr.mxu1 %v7269_v13  ;;  %5834 = vpow2.f32 %v4534_v10 }
0x1313   :  { %5390 = vmatpush3.msra.mxu1 %v6762_v59 }
0x1314   :  { %5394 = vmatprep.subr.mxu1 %v7269_v13 }
0x131d   :  { %v5833_v12 = vpop.eup %5832 }
0x131e   :  { %2364 = vrot.lane.b32.xlu0 %v5833_v12, %s6029_s0 }
0x131f   :  { %v5835_v22 = vpop.eup %5834 }
0x1320   :  { %v2358_v23 = vadd.f32 1.0, %v5835_v22 }
0x1322   :  { %5836 = vrcp.f32 %v2358_v23 }
0x132f   :  { %v6767_v26 = vpop.eup %5836 }
0x1330   :  { %v2362_v21 = vmul.f32 %v6767_v26, %v6617_v28 }
0x1390   :  { %v2365_v32 = vpop.permute.xlu0 %2364 }
0x1391   :  { %v2367_v33 = vmul.f32 %v6767_v26, %v2365_v32 }
0x1393   :  { %2369 = vrot.lane.b32.xlu0 %v2367_v33, %s6029_s0 }
0x1397   :  { %2380 = vrot.lane.b32.xlu0 %v6617_v28, %s6031_s21  ;;  %v6791_v28 = vld [vmem:[#allocation5 + $0x180] sm:$0xff] }
0x13cc   :  { %v2255_v55 = vpop.f32.mrf.mxu1 }
0x13cd   :  { %v2256_v49 = vadd.f32 %v6324_v14, %v2255_v55  ;;  %v6785_v14 = vld [vmem:[#allocation5 + $0x188] sm:$0xff] }
0x13ce   :  { %v5352_v39 = vpop.f32.mrf.mxu1 }
0x13cf   :  { %5838 = vtanh.f32 %v2256_v49  ;;  %v4532_v5 = vmul.f32 -1.442695, %v2256_v49 }
0x13d1   :  { %5840 = vpow2.f32 %v4532_v5 }
0x13dc   :  { %v5839_v11 = vpop.eup %5838 }
0x13dd   :  { %2268 = vrot.lane.b32.xlu0 %v5839_v11, %s6029_s0 }
0x13de   :  { %v5841_v8 = vpop.eup %5840 }
0x13df   :  { %v2263_v12 = vadd.f32 1.0, %v5841_v8 }
0x13e1   :  { %5842 = vrcp.f32 %v2263_v12 }
0x13ee   :  { %v5843_v10 = vpop.eup %5842 }
0x13ef   :  { %v2266_v8 = vmul.f32 %v5843_v10, %v6673_v24 }
0x1405   :  { %v2370_v20 = vpop.permute.xlu0 %2369 }
0x1406   :  { %v6777_v29 = vadd.f32 %v2370_v20, %v2362_v21 }
0x1408   :  { %5844 = vtanh.f32 %v6777_v29 }
0x1409   :  { %v2381_v38 = vpop.permute.xlu0 %2380 }
0x140a   :  { %v6781_v40 = vsel %vm203_vm2, %v2381_v38, %v6777_v29 }
0x140b   :  { %5381 = vmatmul.mubr.msk.f32.vlgmr.msra.gmra.mxu0 %vm60_vm1, %v6781_v40 }
0x140c   :  { %5421 = vmatpush3.msra.mxu0 %v6785_v14  ;;  %5444 = vmatprep.mubr.msk.f32.mxu0 %vm6028_vm0, %v7269_v13 }
0x140d   :  { %5422 = vmatprep.subr.mxu0 %v7269_v13 }
0x140e   :  { %5423 = vmatpush3.msra.mxu0 %v6791_v28 }
0x140f   :  { %5424 = vmatprep.subr.mxu0 %v7269_v13 }
0x1410   :  { %5425 = vmatpush3.msra.mxu0 %v6795_v16 }
0x1411   :  { %5426 = vmatprep.subr.mxu0 %v7269_v13 }
0x1412   :  { %5427 = vmatpush3.msra.mxu0 %v6799_v30 }
0x1413   :  { %5428 = vmatprep.subr.mxu0 %v7269_v13 }
0x1414   :  { %5429 = vmatpush3.msra.mxu0 %v6803_v42 }
0x1415   :  { %5430 = vmatprep.subr.mxu0 %v7269_v13  ;;  %v5845_v32 = vpop.eup %5844 }
0x1416   :  { %5431 = vmatpush3.msra.mxu0 %v6807_v44 }
0x1417   :  { %5432 = vmatprep.subr.mxu0 %v7269_v13 }
0x1418   :  { %5433 = vmatpush3.msra.mxu0 %v6811_v45 }
0x1419   :  { %5434 = vmatprep.subr.mxu0 %v7269_v13 }
0x141a   :  { %5435 = vmatpush3.msra.mxu0 %v6815_v46 }
0x141b   :  { %5436 = vmatprep.subr.mxu0 %v7269_v13 }
0x141c   :  { %5437 = vmatpush3.msra.mxu0 %v6819_v2 }
0x141d   :  { %5438 = vmatprep.subr.mxu0 %v7269_v13 }
0x141e   :  { %5439 = vmatpush3.msra.mxu0 %v6823_v3 }
0x141f   :  { %5440 = vmatprep.subr.mxu0 %v7269_v13 }
0x1420   :  { %5441 = vmatpush3.msra.mxu0 %v6827_v6 }
0x1421   :  { %5442 = vmatprep.subr.mxu0 %v7269_v13 }
0x1422   :  { %5443 = vmatpush3.msra.mxu0 %v6831_v37 }
0x1423   :  { %5477 = vmatprep.subr.mxu0 %v7269_v13 }
0x144f   :  { %v2269_v22 = vpop.permute.xlu0 %2268 }
0x1450   :  { %v2271_v23 = vmul.f32 %v5843_v10, %v2269_v22 }
0x1452   :  { %2273 = vrot.lane.b32.xlu0 %v2271_v23, %s6032_s22 }
0x1456   :  { %2375 = vrot.lane.b32.xlu0 %v5845_v32, %s6029_s0 }
0x14c4   :  { %v2274_v5 = vpop.permute.xlu0 %2273 }
0x14c5   :  { %v6849_v12 = vadd.f32 %v2274_v5, %v2266_v8 }
0x14cb   :  { %v2453_v33 = vpop.f32.mrf.mxu0 }
0x14cc   :  { %v2454_v55 = vadd.f32 %v6654_v1, %v2453_v33 }
0x14cd   :  { %v5382_v39 = vpop.f32.mrf.mxu0 }
0x14ce   :  { %v2457_v11 = vmax.f32 %v2454_v55, 0.0  ;;  %v2376_v55 = vpop.permute.xlu0 %2375 }
0x14cf   :  { %v2378_v39 = vmul.f32 %v6767_v26, %v2376_v55 }
0x14d0   :  { %5392 = vmatmul.mubr.msk.f32.vlgmr.msra.gmra.mxu1 %vm203_vm2, %v2457_v11 }
0x14d1   :  { %5395 = vmatpush3.msra.mxu1 %v6658_v19  ;;  %5398 = vmatprep.mubr.msk.f32.mxu1 %vm6028_vm0, %v7269_v13 }
0x14d2   :  { %5396 = vmatprep.subr.mxu1 %v7269_v13 }
0x14d3   :  { %5397 = vmatpush3.msra.mxu1 %v6664_v31 }
0x14d4   :  { %5401 = vmatprep.subr.mxu1 %v7269_v13 }
0x1590   :  { %v2527_v49 = vpop.f32.mrf.mxu1 }
0x1591   :  { %v2528_v20 = vadd.f32 %v6668_v4, %v2527_v49 }
0x1592   :  { %v5393_v21 = vpop.f32.mrf.mxu1 }
0x1593   :  { %v2531_v38 = vsel %vm60_vm1, %v2528_v20, -inf }
0x1594   :  { %2532 = vmax.xlane.f32.xlu1 %v2531_v38 }
0x15a5   :  { %2544 = vrot.lane.b32.xlu1 %v6849_v12, %s6032_s22 }
0x161d   :  { %v2533_v22 = vpop.xlane.xlu1 %2532 }
0x161e   :  { %v2534_v23 = vsub.f32 %v2528_v20, %v2533_v22 }
0x1620   :  { %v2535_v32 = vmul.f32 1.442695, %v2534_v23  ;;  %v6906_v23 = vld [vmem:[#allocation5 + $0x128] ss:$0 sm:$0xff] }
0x1621   :  { %v2545_v33 = vpop.permute.xlu1 %2544 }
0x1622   :  { %5846 = vpow2.f32 %v2535_v32  ;;  %5399 = vmatmul.mubr.msk.f32.vlgmr.msra.gmra.mxu1 %vm494_vm4, %v2545_v33 }
0x1623   :  { %5402 = vmatpush3.msra.mxu1 %v6678_v34  ;;  %5417 = vmatprep.mubr.msk.f32.mxu1 %vm6028_vm0, %v7269_v13 }
0x1624   :  { %5403 = vmatprep.subr.mxu1 %v7269_v13 }
0x1625   :  { %5404 = vmatpush3.msra.mxu1 %v6684_v7 }
0x1626   :  { %5405 = vmatprep.subr.mxu1 %v7269_v13 }
0x1627   :  { %5406 = vmatpush3.msra.mxu1 %v6688_v51 }
0x1628   :  { %5407 = vmatprep.subr.mxu1 %v7269_v13 }
0x1629   :  { %5408 = vmatpush3.msra.mxu1 %v6692_v57 }
0x162a   :  { %5409 = vmatprep.subr.mxu1 %v7269_v13 }
0x162b   :  { %5410 = vmatpush3.msra.mxu1 %v6696_v54 }
0x162c   :  { %5411 = vmatprep.subr.mxu1 %v7269_v13 }
0x162d   :  { %5412 = vmatpush3.msra.mxu1 %v6700_v9 }
0x162e   :  { %5413 = vmatprep.subr.mxu1 %v7269_v13 }
0x162f   :  { %v5847_v24 = vpop.eup %5846  ;;  %5414 = vmatpush3.msra.mxu1 %v6704_v50 }
0x1630   :  { %v2537_v10 = vsel %vm60_vm1, %v5847_v24, 0.0  ;;  %5415 = vmatprep.subr.mxu1 %v7269_v13 }
0x1631   :  { %2538 = vadd.xlane.f32.xlu0 %v2537_v10  ;;  %5416 = vmatpush3.msra.mxu1 %v6709_v62 }
0x1632   :  { %5447 = vmatprep.subr.mxu1 %v7269_v13 }
0x1647   :  { %2787 = vrot.lane.b32.xlu0 %v2378_v39, %s6030_s1 }
0x16ba   :  { %v2539_v11 = vpop.xlane.xlu0 %2538 }
0x16bb   :  { %5848 = vrcp.f32 %v2539_v11 }
0x16be   :  { %v2788_v26 = vpop.permute.xlu0 %2787 }
0x16c8   :  { %v5849_v49 = vpop.eup %5848 }
0x16c9   :  { %v2541_v20 = vmul.f32 %v5849_v49, %v5847_v24  ;;  %v177_v24 = vadd.f32 %v6585_v25, %v6163_v58 }
0x16cb   :  { %v2542_v21 = vmul.f32 %v2541_v20, %v6781_v40 }
0x16cd   :  { %5418 = vmatmul.mubr.msk.f32.vlgmr.msra.gmra.mxu1 %vm60_vm1, %v2542_v21 }
0x16ce   :  { %5448 = vmatpush3.msra.mxu1 %v6535_v52  ;;  %5455 = vmatprep.mubr.msk.f32.mxu1 %vm6028_vm0, %v7269_v13 }
0x16cf   :  { %5449 = vmatprep.subr.mxu1 %v7269_v13 }
0x16d0   :  { %5450 = vmatpush3.msra.mxu1 %v6541_v35 }
0x16d1   :  { %5451 = vmatprep.subr.mxu1 %v7269_v13 }
0x16d2   :  { %5452 = vmatpush3.msra.mxu1 %v6545_v36 }
0x16d3   :  { %5453 = vmatprep.subr.mxu1 %v7269_v13 }
0x16d4   :  { %5454 = vmatpush3.msra.mxu1 %v6549_v0 }
0x16d5   :  { %5456 = vmatmul.mubr.msk.f32.vlgmr.msra.gmra.mxu1 %vm203_vm2, %v2788_v26  ;;  %5458 = vmatprep.subr.mxu1 %v7269_v13 }
0x16d6   :  { %5459 = vmatpush3.msra.mxu1 %v6554_v63  ;;  %5474 = vmatprep.mubr.msk.f32.mxu1 %vm6028_vm0, %v7269_v13 }
0x16d7   :  { %5460 = vmatprep.subr.mxu1 %v7269_v13 }
0x16d8   :  { %5461 = vmatpush3.msra.mxu1 %v6560_v48 }
0x16d9   :  { %5462 = vmatprep.subr.mxu1 %v7269_v13 }
0x16da   :  { %5463 = vmatpush3.msra.mxu1 %v6564_v15 }
0x16db   :  { %5464 = vmatprep.subr.mxu1 %v7269_v13 }
0x16dc   :  { %5465 = vmatpush3.msra.mxu1 %v6568_v47 }
0x16dd   :  { %5466 = vmatprep.subr.mxu1 %v7269_v13 }
0x16de   :  { %5467 = vmatpush3.msra.mxu1 %v6572_v53 }
0x16df   :  { %5468 = vmatprep.subr.mxu1 %v7269_v13 }
0x16e0   :  { %5469 = vmatpush3.msra.mxu1 %v6576_v17 }
0x16e1   :  { %5470 = vmatprep.subr.mxu1 %v7269_v13 }
0x16e2   :  { %v2614_v40 = vpop.f32.mrf.mxu1  ;;  %5471 = vmatpush3.msra.mxu1 %v6742_v41 }
0x16e3   :  { %5472 = vmatprep.subr.mxu1 %v7269_v13 }
0x16e4   :  { %v5400_v38 = vpop.f32.mrf.mxu1  ;;  %5473 = vmatpush3.msra.mxu1 %v6746_v43 }
0x16e5   :  { %5514 = vmatprep.subr.mxu1 %v7269_v13 }
0x178d   :  { %v2687_v5 = vpop.f32.mrf.mxu1 }
0x178e   :  { %v2688_v8 = vadd.f32 %v2687_v5, %v2614_v40  ;;  %v6929_v5 = vld [vmem:[#allocation5 + $0x190] ss:$0 sm:$0xff] }
0x178f   :  { %v5419_v22 = vpop.f32.mrf.mxu1 }
0x1790   :  { %v2691_v32 = vadd.f32 %v6906_v23, %v2688_v8 }
0x1792   :  { %v2692_v33 = vmax.f32 %v2691_v32, 0.0 }
0x1794   :  { %5445 = vmatmul.mubr.msk.f32.vlgmr.msra.gmra.mxu0 %vm664_vm3, %v2692_v33 }
0x1795   :  { %v2857_v10 = vpop.f32.mrf.mxu1  ;;  %5478 = vmatpush3.msra.mxu0 %v6590_v27  ;;  %5485 = vmatprep.mubr.msk.f32.mxu0 %vm6028_vm0, %v7269_v13 }
0x1796   :  { %v2861_v55 = vadd.f32 %v2857_v10, %v177_v24  ;;  %5479 = vmatprep.subr.mxu0 %v7269_v13 }
0x1797   :  { %v5457_v39 = vpop.f32.mrf.mxu1  ;;  %5480 = vmatpush3.msra.mxu0 %v6596_v18 }
0x1798   :  { %5850 = vtanh.f32 %v2861_v55  ;;  %5481 = vmatprep.subr.mxu0 %v7269_v13  ;;  %v4542_v11 = vmul.f32 -1.442695, %v2861_v55 }
0x1799   :  { %5482 = vmatpush3.msra.mxu0 %v6600_v56 }
0x179a   :  { %5483 = vmatprep.subr.mxu0 %v7269_v13  ;;  %5852 = vpow2.f32 %v4542_v11 }
0x179b   :  { %5484 = vmatpush3.msra.mxu0 %v6762_v59 }
0x179c   :  { %5488 = vmatprep.subr.mxu0 %v7269_v13 }
0x17a5   :  { %v5851_v58 = vpop.eup %5850 }
0x17a6   :  { %2871 = vrot.lane.b32.xlu1 %v5851_v58, %s6029_s0 }
0x17a7   :  { %v5853_v49 = vpop.eup %5852 }
0x17a8   :  { %v2865_v20 = vadd.f32 1.0, %v5853_v49 }
0x17aa   :  { %5854 = vrcp.f32 %v2865_v20 }
0x17b7   :  { %v6923_v21 = vpop.eup %5854 }
0x17b8   :  { %v2869_v24 = vmul.f32 %v6923_v21, %v6777_v29 }
0x1818   :  { %v2872_v26 = vpop.permute.xlu1 %2871 }
0x1819   :  { %v2874_v40 = vmul.f32 %v6923_v21, %v2872_v26 }
0x181b   :  { %2876 = vrot.lane.b32.xlu1 %v2874_v40, %s6029_s0 }
0x181f   :  { %2887 = vrot.lane.b32.xlu1 %v6777_v29, %s6031_s21 }
0x1854   :  { %v2762_v38 = vpop.f32.mrf.mxu0 }
0x1855   :  { %v2763_v8 = vadd.f32 %v6929_v5, %v2762_v38 }
0x1856   :  { %v5446_v22 = vpop.f32.mrf.mxu0 }
0x1857   :  { %5856 = vtanh.f32 %v2763_v8  ;;  %v4540_v29 = vmul.f32 -1.442695, %v2763_v8 }
0x1859   :  { %5858 = vpow2.f32 %v4540_v29 }
0x1864   :  { %v5857_v32 = vpop.eup %5856 }
0x1865   :  { %2775 = vrot.lane.b32.xlu0 %v5857_v32, %s6029_s0 }
0x1866   :  { %v5859_v58 = vpop.eup %5858 }
0x1867   :  { %v2770_v11 = vadd.f32 1.0, %v5859_v58 }
0x1869   :  { %5860 = vrcp.f32 %v2770_v11 }
0x1876   :  { %v5861_v49 = vpop.eup %5860 }
0x1877   :  { %v2773_v11 = vmul.f32 %v5861_v49, %v6849_v12 }
0x188d   :  { %v2877_v33 = vpop.permute.xlu1 %2876 }
0x188e   :  { %v6935_v10 = vadd.f32 %v2877_v33, %v2869_v24 }
0x1890   :  { %5862 = vtanh.f32 %v6935_v10 }
0x1891   :  { %v2888_v55 = vpop.permute.xlu1 %2887 }
0x1892   :  { %v6939_v39 = vsel %vm203_vm2, %v2888_v55, %v6935_v10 }
0x1893   :  { %5475 = vmatmul.mubr.msk.f32.vlgmr.msra.gmra.mxu1 %vm60_vm1, %v6939_v39 }
0x1894   :  { %5515 = vmatpush3.msra.mxu1 %v6785_v14  ;;  %5538 = vmatprep.mubr.msk.f32.mxu1 %vm6028_vm0, %v7269_v13 }
0x1895   :  { %5516 = vmatprep.subr.mxu1 %v7269_v13 }
0x1896   :  { %5517 = vmatpush3.msra.mxu1 %v6791_v28 }
0x1897   :  { %5518 = vmatprep.subr.mxu1 %v7269_v13 }
0x1898   :  { %5519 = vmatpush3.msra.mxu1 %v6795_v16 }
0x1899   :  { %5520 = vmatprep.subr.mxu1 %v7269_v13 }
0x189a   :  { %5521 = vmatpush3.msra.mxu1 %v6799_v30 }
0x189b   :  { %5522 = vmatprep.subr.mxu1 %v7269_v13 }
0x189c   :  { %5523 = vmatpush3.msra.mxu1 %v6803_v42 }
0x189d   :  { %5524 = vmatprep.subr.mxu1 %v7269_v13  ;;  %v5863_v40 = vpop.eup %5862 }
0x189e   :  { %5525 = vmatpush3.msra.mxu1 %v6807_v44 }
0x189f   :  { %5526 = vmatprep.subr.mxu1 %v7269_v13 }
0x18a0   :  { %5527 = vmatpush3.msra.mxu1 %v6811_v45 }
0x18a1   :  { %5528 = vmatprep.subr.mxu1 %v7269_v13 }
0x18a2   :  { %5529 = vmatpush3.msra.mxu1 %v6815_v46 }
0x18a3   :  { %5530 = vmatprep.subr.mxu1 %v7269_v13 }
0x18a4   :  { %5531 = vmatpush3.msra.mxu1 %v6819_v2 }
0x18a5   :  { %5532 = vmatprep.subr.mxu1 %v7269_v13 }
0x18a6   :  { %5533 = vmatpush3.msra.mxu1 %v6823_v3 }
0x18a7   :  { %5534 = vmatprep.subr.mxu1 %v7269_v13 }
0x18a8   :  { %5535 = vmatpush3.msra.mxu1 %v6827_v6 }
0x18a9   :  { %5536 = vmatprep.subr.mxu1 %v7269_v13 }
0x18aa   :  { %5537 = vmatpush3.msra.mxu1 %v6831_v37 }
0x18ab   :  { %5571 = vmatprep.subr.mxu1 %v7269_v13 }
0x18d7   :  { %v2776_v20 = vpop.permute.xlu0 %2775 }
0x18d8   :  { %v2778_v26 = vmul.f32 %v5861_v49, %v2776_v20 }
0x18da   :  { %2780 = vrot.lane.b32.xlu0 %v2778_v26, %s6032_s22 }
0x18de   :  { %2882 = vrot.lane.b32.xlu0 %v5863_v40, %s6029_s0 }
0x194c   :  { %v2781_v58 = vpop.permute.xlu0 %2780 }
0x194d   :  { %v6983_v20 = vadd.f32 %v2781_v58, %v2773_v11 }
0x1953   :  { %v2960_v38 = vpop.f32.mrf.mxu1 }
0x1954   :  { %v2961_v22 = vadd.f32 %v6654_v1, %v2960_v38 }
0x1955   :  { %v5476_v32 = vpop.f32.mrf.mxu1 }
0x1956   :  { %v2964_v33 = vmax.f32 %v2961_v22, 0.0  ;;  %v2883_v32 = vpop.permute.xlu0 %2882 }
0x1958   :  { %5486 = vmatmul.mubr.msk.f32.vlgmr.msra.gmra.mxu0 %vm203_vm2, %v2964_v33  ;;  %v2885_v33 = vmul.f32 %v6923_v21, %v2883_v32 }
0x1959   :  { %5489 = vmatpush3.msra.mxu0 %v6658_v19  ;;  %5492 = vmatprep.mubr.msk.f32.mxu0 %vm6028_vm0, %v7269_v13 }
0x195a   :  { %5490 = vmatprep.subr.mxu0 %v7269_v13 }
0x195b   :  { %5491 = vmatpush3.msra.mxu0 %v6664_v31 }
0x195c   :  { %5495 = vmatprep.subr.mxu0 %v7269_v13 }
0x1a18   :  { %v3034_v8 = vpop.f32.mrf.mxu0 }
0x1a19   :  { %v3035_v24 = vadd.f32 %v6668_v4, %v3034_v8 }
0x1a1a   :  { %v5487_v55 = vpop.f32.mrf.mxu0 }
0x1a1b   :  { %v3038_v29 = vsel %vm60_vm1, %v3035_v24, -inf }
0x1a1c   :  { %3039 = vmax.xlane.f32.xlu1 %v3038_v29 }
0x1a2d   :  { %3051 = vrot.lane.b32.xlu1 %v6983_v20, %s6032_s22 }
0x1aa5   :  { %v3040_v26 = vpop.xlane.xlu1 %3039 }
0x1aa6   :  { %v3041_v40 = vsub.f32 %v3035_v24, %v3040_v26 }
0x1aa8   :  { %v3042_v38 = vmul.f32 1.442695, %v3041_v40 }
0x1aa9   :  { %v3052_v22 = vpop.permute.xlu1 %3051 }
0x1aaa   :  { %5864 = vpow2.f32 %v3042_v38  ;;  %5493 = vmatmul.mubr.msk.f32.vlgmr.msra.gmra.mxu0 %vm494_vm4, %v3052_v22 }
0x1aab   :  { %5496 = vmatpush3.msra.mxu0 %v6678_v34  ;;  %5511 = vmatprep.mubr.msk.f32.mxu0 %vm6028_vm0, %v7269_v13 }
0x1aac   :  { %5497 = vmatprep.subr.mxu0 %v7269_v13 }
0x1aad   :  { %5498 = vmatpush3.msra.mxu0 %v6684_v7 }
0x1aae   :  { %5499 = vmatprep.subr.mxu0 %v7269_v13 }
0x1aaf   :  { %5500 = vmatpush3.msra.mxu0 %v6688_v51 }
0x1ab0   :  { %5501 = vmatprep.subr.mxu0 %v7269_v13 }
0x1ab1   :  { %5502 = vmatpush3.msra.mxu0 %v6692_v57 }
0x1ab2   :  { %5503 = vmatprep.subr.mxu0 %v7269_v13 }
0x1ab3   :  { %5504 = vmatpush3.msra.mxu0 %v6696_v54 }
0x1ab4   :  { %5505 = vmatprep.subr.mxu0 %v7269_v13 }
0x1ab5   :  { %5506 = vmatpush3.msra.mxu0 %v6700_v9 }
0x1ab6   :  { %5507 = vmatprep.subr.mxu0 %v7269_v13 }
0x1ab7   :  { %v5865_v12 = vpop.eup %5864  ;;  %5508 = vmatpush3.msra.mxu0 %v6704_v50 }
0x1ab8   :  { %v3044_v49 = vsel %vm60_vm1, %v5865_v12, 0.0  ;;  %5509 = vmatprep.subr.mxu0 %v7269_v13 }
0x1ab9   :  { %3045 = vadd.xlane.f32.xlu0 %v3044_v49  ;;  %5510 = vmatpush3.msra.mxu0 %v6709_v62 }
0x1aba   :  { %5541 = vmatprep.subr.mxu0 %v7269_v13 }
0x1acf   :  { %3294 = vrot.lane.b32.xlu0 %v2885_v33, %s6030_s1 }
0x1b42   :  { %v3046_v8 = vpop.xlane.xlu0 %3045 }
0x1b43   :  { %5866 = vrcp.f32 %v3046_v8 }
0x1b46   :  { %v3295_v21 = vpop.permute.xlu0 %3294 }
0x1b50   :  { %v5867_v24 = vpop.eup %5866 }
0x1b51   :  { %v3048_v55 = vmul.f32 %v5867_v24, %v5865_v12 }
0x1b53   :  { %v3049_v29 = vmul.f32 %v3048_v55, %v6939_v39 }
0x1b55   :  { %5512 = vmatmul.mubr.msk.f32.vlgmr.msra.gmra.mxu0 %vm60_vm1, %v3049_v29 }
0x1b56   :  { %5542 = vmatpush3.msra.mxu0 %v6535_v52  ;;  %5549 = vmatprep.mubr.msk.f32.mxu0 %vm6028_vm0, %v7269_v13 }
0x1b57   :  { %5543 = vmatprep.subr.mxu0 %v7269_v13 }
0x1b58   :  { %5544 = vmatpush3.msra.mxu0 %v6541_v35 }
0x1b59   :  { %5545 = vmatprep.subr.mxu0 %v7269_v13 }
0x1b5a   :  { %5546 = vmatpush3.msra.mxu0 %v6545_v36 }
0x1b5b   :  { %5547 = vmatprep.subr.mxu0 %v7269_v13 }
0x1b5c   :  { %5548 = vmatpush3.msra.mxu0 %v6549_v0 }
0x1b5d   :  { %5550 = vmatmul.mubr.msk.f32.vlgmr.msra.gmra.mxu0 %vm203_vm2, %v3295_v21  ;;  %5552 = vmatprep.subr.mxu0 %v7269_v13 }
0x1b5e   :  { %5553 = vmatpush3.msra.mxu0 %v6554_v63  ;;  %5568 = vmatprep.mubr.msk.f32.mxu0 %vm6028_vm0, %v7269_v13 }
0x1b5f   :  { %5554 = vmatprep.subr.mxu0 %v7269_v13 }
0x1b60   :  { %5555 = vmatpush3.msra.mxu0 %v6560_v48 }
0x1b61   :  { %5556 = vmatprep.subr.mxu0 %v7269_v13 }
0x1b62   :  { %5557 = vmatpush3.msra.mxu0 %v6564_v15 }
0x1b63   :  { %5558 = vmatprep.subr.mxu0 %v7269_v13 }
0x1b64   :  { %5559 = vmatpush3.msra.mxu0 %v6568_v47  ;;  %v182_v47 = vadd.f32 %v6585_v25, %v6169_v61 }
0x1b65   :  { %5560 = vmatprep.subr.mxu0 %v7269_v13 }
0x1b66   :  { %5561 = vmatpush3.msra.mxu0 %v6572_v53 }
0x1b67   :  { %5562 = vmatprep.subr.mxu0 %v7269_v13 }
0x1b68   :  { %5563 = vmatpush3.msra.mxu0 %v6576_v17 }
0x1b69   :  { %5564 = vmatprep.subr.mxu0 %v7269_v13 }
0x1b6a   :  { %v3121_v52 = vpop.f32.mrf.mxu0  ;;  %5565 = vmatpush3.msra.mxu0 %v6742_v41 }
0x1b6b   :  { %5566 = vmatprep.subr.mxu0 %v7269_v13 }
0x1b6c   :  { %v5494_v35 = vpop.f32.mrf.mxu0  ;;  %5567 = vmatpush3.msra.mxu0 %v6746_v43 }
0x1b6d   :  { %5608 = vmatprep.subr.mxu0 %v7269_v13 }
0x1c15   :  { %v3194_v36 = vpop.f32.mrf.mxu0 }
0x1c16   :  { %v3195_v0 = vadd.f32 %v3194_v36, %v3121_v52 }
0x1c17   :  { %v5513_v63 = vpop.f32.mrf.mxu0 }
0x1c18   :  { %v3198_v48 = vadd.f32 %v6906_v23, %v3195_v0 }
0x1c1a   :  { %v3199_v15 = vmax.f32 %v3198_v48, 0.0 }
0x1c1c   :  { %5539 = vmatmul.mubr.msk.f32.vlgmr.msra.gmra.mxu1 %vm664_vm3, %v3199_v15 }
0x1c1d   :  { %v3364_v53 = vpop.f32.mrf.mxu0  ;;  %5572 = vmatpush3.msra.mxu1 %v6590_v27  ;;  %5579 = vmatprep.mubr.msk.f32.mxu1 %vm6028_vm0, %v7269_v13 }
0x1c1e   :  { %v3368_v17 = vadd.f32 %v3364_v53, %v182_v47  ;;  %5573 = vmatprep.subr.mxu1 %v7269_v13 }
0x1c1f   :  { %v5551_v39 = vpop.f32.mrf.mxu0  ;;  %5574 = vmatpush3.msra.mxu1 %v6596_v18 }
0x1c20   :  { %5868 = vtanh.f32 %v3368_v17  ;;  %5575 = vmatprep.subr.mxu1 %v7269_v13  ;;  %v4550_v25 = vmul.f32 -1.442695, %v3368_v17 }
0x1c21   :  { %5576 = vmatpush3.msra.mxu1 %v6600_v56 }
0x1c22   :  { %5577 = vmatprep.subr.mxu1 %v7269_v13  ;;  %5870 = vpow2.f32 %v4550_v25 }
0x1c23   :  { %5578 = vmatpush3.msra.mxu1 %v6762_v59 }
0x1c24   :  { %5582 = vmatprep.subr.mxu1 %v7269_v13 }
0x1c2d   :  { %v5869_v61 = vpop.eup %5868 }
0x1c2e   :  { %3378 = vrot.lane.b32.xlu1 %v5869_v61, %s6029_s0 }
0x1c2f   :  { %v5871_v27 = vpop.eup %5870 }
0x1c30   :  { %v3372_v58 = vadd.f32 1.0, %v5871_v27 }
0x1c32   :  { %5872 = vrcp.f32 %v3372_v58  ;;  %v5955_v58 = vld [vmem:[#allocation5 + $0x48] sm:$0xff] }
0x1c3f   :  { %v7055_v18 = vpop.eup %5872 }
0x1c40   :  { %v3376_v49 = vmul.f32 %v7055_v18, %v6935_v10 }
0x1ca0   :  { %v3379_v11 = vpop.permute.xlu1 %3378 }
0x1ca1   :  { %v3381_v26 = vmul.f32 %v7055_v18, %v3379_v11  ;;  %v5956_v11 = vld [vmem:[#allocation5 + $0x40] sm:$0xff] }
0x1ca3   :  { %3383 = vrot.lane.b32.xlu1 %v3381_v26, %s6029_s0  ;;  %v5957_v26 = vld [vmem:[#allocation5 + $0xa0] sm:$0xff] }
0x1ca7   :  { %3394 = vrot.lane.b32.xlu1 %v6935_v10, %s6031_s21 }
0x1cdc   :  { %v3269_v56 = vpop.f32.mrf.mxu1 }
0x1cdd   :  { %v3270_v40 = vadd.f32 %v6929_v5, %v3269_v56  ;;  %v5958_v56 = vld [vmem:[#allocation5 + $0x98] sm:$0xff] }
0x1cde   :  { %v5540_v38 = vpop.f32.mrf.mxu1 }
0x1cdf   :  { %5874 = vtanh.f32 %v3270_v40  ;;  %v4548_v10 = vmul.f32 -1.442695, %v3270_v40  ;;  %v5959_v40 = vld [vmem:[#allocation5 + $0x90] sm:$0xff]  ;;  %v5960_v38 = vld [vmem:[#allocation5 + $0x88] sm:$0xff] }
0x1ce1   :  { %5876 = vpow2.f32 %v4548_v10 }
0x1cec   :  { %v5875_v22 = vpop.eup %5874 }
0x1ced   :  { %3282 = vrot.lane.b32.xlu0 %v5875_v22, %s6029_s0  ;;  %v5961_v22 = vld [vmem:[#allocation5 + $0x80] sm:$0xff] }
0x1cee   :  { %v5877_v24 = vpop.eup %5876 }
0x1cef   :  { %v3277_v55 = vadd.f32 1.0, %v5877_v24 }
0x1cf1   :  { %5878 = vrcp.f32 %v3277_v55 }
0x1cfe   :  { %v5879_v29 = vpop.eup %5878 }
0x1cff   :  { %v3280_v39 = vmul.f32 %v5879_v29, %v6983_v20  ;;  %v5953_v20 = vld [vmem:[#allocation5 + $0x58] sm:$0xff] }
0x1d15   :  { %v3384_v12 = vpop.permute.xlu1 %3383 }
0x1d16   :  { %v7065_v32 = vadd.f32 %v3384_v12, %v3376_v49  ;;  %v5962_v12 = vld [vmem:[#allocation5 + $0x78] sm:$0xff] }
0x1d18   :  { %5880 = vtanh.f32 %v7065_v32 }
0x1d19   :  { %v3395_v33 = vpop.permute.xlu1 %3394 }
0x1d1a   :  { %v7069_v8 = vsel %vm203_vm2, %v3395_v33, %v7065_v32 }
0x1d1b   :  { %5569 = vmatmul.mubr.msk.f32.vlgmr.msra.gmra.mxu0 %vm60_vm1, %v7069_v8 }
0x1d1c   :  { %5609 = vmatpush3.msra.mxu0 %v6785_v14  ;;  %5632 = vmatprep.mubr.msk.f32.mxu0 %vm6028_vm0, %v7269_v13 }
0x1d1d   :  { %5610 = vmatprep.subr.mxu0 %v7269_v13 }
0x1d1e   :  { %5611 = vmatpush3.msra.mxu0 %v6791_v28 }
0x1d1f   :  { %5612 = vmatprep.subr.mxu0 %v7269_v13 }
0x1d20   :  { %5613 = vmatpush3.msra.mxu0 %v6795_v16 }
0x1d21   :  { %5614 = vmatprep.subr.mxu0 %v7269_v13 }
0x1d22   :  { %5615 = vmatpush3.msra.mxu0 %v6799_v30 }
0x1d23   :  { %5616 = vmatprep.subr.mxu0 %v7269_v13 }
0x1d24   :  { %5617 = vmatpush3.msra.mxu0 %v6803_v42 }
0x1d25   :  { %5618 = vmatprep.subr.mxu0 %v7269_v13  ;;  %v5881_v35 = vpop.eup %5880 }
0x1d26   :  { %5619 = vmatpush3.msra.mxu0 %v6807_v44 }
0x1d27   :  { %5620 = vmatprep.subr.mxu0 %v7269_v13 }
0x1d28   :  { %5621 = vmatpush3.msra.mxu0 %v6811_v45 }
0x1d29   :  { %5622 = vmatprep.subr.mxu0 %v7269_v13 }
0x1d2a   :  { %5623 = vmatpush3.msra.mxu0 %v6815_v46 }
0x1d2b   :  { %5624 = vmatprep.subr.mxu0 %v7269_v13 }
0x1d2c   :  { %5625 = vmatpush3.msra.mxu0 %v6819_v2 }
0x1d2d   :  { %5626 = vmatprep.subr.mxu0 %v7269_v13 }
0x1d2e   :  { %5627 = vmatpush3.msra.mxu0 %v6823_v3 }
0x1d2f   :  { %5628 = vmatprep.subr.mxu0 %v7269_v13 }
0x1d30   :  { %5629 = vmatpush3.msra.mxu0 %v6827_v6 }
0x1d31   :  { %5630 = vmatprep.subr.mxu0 %v7269_v13 }
0x1d32   :  { %5631 = vmatpush3.msra.mxu0 %v6831_v37 }
0x1d33   :  { %5665 = vmatprep.subr.mxu0 %v7269_v13 }
0x1d5f   :  { %v3283_v21 = vpop.permute.xlu0 %3282 }
0x1d60   :  { %v3285_v52 = vmul.f32 %v5879_v29, %v3283_v21  ;;  %v5963_v21 = vld [vmem:[#allocation5 + $0x60] ss:$0 sm:$0xff] }
0x1d62   :  { %3287 = vrot.lane.b32.xlu0 %v3285_v52, %s6032_s22  ;;  %v187_v52 = vadd.f32 %v5963_v21, %v6167_v60 }
0x1d66   :  { %3389 = vrot.lane.b32.xlu0 %v5881_v35, %s6029_s0 }
0x1dd4   :  { %v3288_v17 = vpop.permute.xlu0 %3287 }
0x1ddb   :  { %v3467_v36 = vpop.f32.mrf.mxu0 }
0x1ddc   :  { %v3468_v0 = vadd.f32 %v6654_v1, %v3467_v36 }
0x1ddd   :  { %v5570_v63 = vpop.f32.mrf.mxu0 }
0x1dde   :  { %v3471_v48 = vmax.f32 %v3468_v0, 0.0  ;;  %v5965_v0 = vld [vmem:[#allocation5 + $0xc0] sm:$0xff]  ;;  %v5966_v63 = vld [vmem:[#allocation5 + $0xb8] sm:$0xff] }
0x1de0   :  { %5580 = vmatmul.mubr.msk.f32.vlgmr.msra.gmra.mxu1 %vm203_vm2, %v3471_v48 }
0x1de1   :  { %5583 = vmatpush3.msra.mxu1 %v6658_v19  ;;  %5586 = vmatprep.mubr.msk.f32.mxu1 %vm6028_vm0, %v7269_v13  ;;  %v7113_v19 = vadd.f32 %v3288_v17, %v3280_v39 }
0x1de2   :  { %5584 = vmatprep.subr.mxu1 %v7269_v13 }
0x1de3   :  { %5585 = vmatpush3.msra.mxu1 %v6664_v31 }
0x1de4   :  { %5589 = vmatprep.subr.mxu1 %v7269_v13 }
0x1ea0   :  { %v3541_v15 = vpop.f32.mrf.mxu1 }
0x1ea1   :  { %v3542_v47 = vadd.f32 %v6668_v4, %v3541_v15 }
0x1ea2   :  { %v5581_v53 = vpop.f32.mrf.mxu1 }
0x1ea3   :  { %v3545_v1 = vsel %vm60_vm1, %v3542_v47, -inf }
0x1ea4   :  { %3546 = vmax.xlane.f32.xlu1 %v3545_v1 }
0x1eb5   :  { %3558 = vrot.lane.b32.xlu1 %v7113_v19, %s6032_s22 }
0x1f2d   :  { %v3547_v61 = vpop.xlane.xlu1 %3546 }
0x1f2e   :  { %v3548_v25 = vsub.f32 %v3542_v47, %v3547_v61 }
0x1f30   :  { %v3549_v31 = vmul.f32 1.442695, %v3548_v25 }
0x1f31   :  { %v3559_v27 = vpop.permute.xlu1 %3558 }
0x1f32   :  { %5882 = vpow2.f32 %v3549_v31  ;;  %5587 = vmatmul.mubr.msk.f32.vlgmr.msra.gmra.mxu1 %vm494_vm4, %v3559_v27 }
0x1f33   :  { %5590 = vmatpush3.msra.mxu1 %v6678_v34  ;;  %5605 = vmatprep.mubr.msk.f32.mxu1 %vm6028_vm0, %v7269_v13 }
0x1f34   :  { %5591 = vmatprep.subr.mxu1 %v7269_v13 }
0x1f35   :  { %5592 = vmatpush3.msra.mxu1 %v6684_v7  ;;  %v3390_v7 = vpop.permute.xlu0 %3389 }
0x1f36   :  { %5593 = vmatprep.subr.mxu1 %v7269_v13 }
0x1f37   :  { %5594 = vmatpush3.msra.mxu1 %v6688_v51  ;;  %v3392_v51 = vmul.f32 %v7055_v18, %v3390_v7 }
0x1f38   :  { %5595 = vmatprep.subr.mxu1 %v7269_v13 }
0x1f39   :  { %5596 = vmatpush3.msra.mxu1 %v6692_v57 }
0x1f3a   :  { %5597 = vmatprep.subr.mxu1 %v7269_v13 }
0x1f3b   :  { %5598 = vmatpush3.msra.mxu1 %v6696_v54 }
0x1f3c   :  { %5599 = vmatprep.subr.mxu1 %v7269_v13 }
0x1f3d   :  { %5600 = vmatpush3.msra.mxu1 %v6700_v9 }
0x1f3e   :  { %5601 = vmatprep.subr.mxu1 %v7269_v13 }
0x1f3f   :  { %v5883_v4 = vpop.eup %5882  ;;  %5602 = vmatpush3.msra.mxu1 %v6704_v50 }
0x1f40   :  { %v3551_v34 = vsel %vm60_vm1, %v5883_v4, 0.0  ;;  %5603 = vmatprep.subr.mxu1 %v7269_v13 }
0x1f41   :  { %3552 = vadd.xlane.f32.xlu0 %v3551_v34  ;;  %5604 = vmatpush3.msra.mxu1 %v6709_v62  ;;  %v5954_v62 = vld [vmem:[#allocation5 + $0x50] sm:$0xff] }
0x1f42   :  { %5635 = vmatprep.subr.mxu1 %v7269_v13 }
0x1f57   :  { %3801 = vrot.lane.b32.xlu0 %v3392_v51, %s6030_s1 }
0x1fca   :  { %v3553_v57 = vpop.xlane.xlu0 %3552 }
0x1fcb   :  { %5884 = vrcp.f32 %v3553_v57  ;;  %v5970_v57 = vld [vmem:[#allocation5 + $0xd0] ss:$0 sm:$0xff] }
0x1fce   :  { %v3802_v18 = vpop.permute.xlu0 %3801 }
0x1fd8   :  { %v5885_v54 = vpop.eup %5884 }
0x1fd9   :  { %v3555_v9 = vmul.f32 %v5885_v54, %v5883_v4 }
0x1fdb   :  { %v3556_v50 = vmul.f32 %v3555_v9, %v7069_v8 }
0x1fdd   :  { %5606 = vmatmul.mubr.msk.f32.vlgmr.msra.gmra.mxu1 %vm60_vm1, %v3556_v50 }
0x1fde   :  { %5636 = vmatpush3.msra.mxu1 %v5953_v20  ;;  %5643 = vmatprep.mubr.msk.f32.mxu1 %vm6028_vm0, %v7269_v13 }
0x1fdf   :  { %5637 = vmatprep.subr.mxu1 %v7269_v13 }
0x1fe0   :  { %5638 = vmatpush3.msra.mxu1 %v5954_v62 }
0x1fe1   :  { %5639 = vmatprep.subr.mxu1 %v7269_v13 }
0x1fe2   :  { %5640 = vmatpush3.msra.mxu1 %v5955_v58 }
0x1fe3   :  { %5641 = vmatprep.subr.mxu1 %v7269_v13 }
0x1fe4   :  { %5642 = vmatpush3.msra.mxu1 %v5956_v11 }
0x1fe5   :  { %5644 = vmatmul.mubr.msk.f32.vlgmr.msra.gmra.mxu1 %vm203_vm2, %v3802_v18  ;;  %5646 = vmatprep.subr.mxu1 %v7269_v13 }
0x1fe6   :  { %5647 = vmatpush3.msra.mxu1 %v5957_v26  ;;  %5662 = vmatprep.mubr.msk.f32.mxu1 %vm6028_vm0, %v7269_v13 }
0x1fe7   :  { %5648 = vmatprep.subr.mxu1 %v7269_v13 }
0x1fe8   :  { %5649 = vmatpush3.msra.mxu1 %v5958_v56 }
0x1fe9   :  { %5650 = vmatprep.subr.mxu1 %v7269_v13 }
0x1fea   :  { %5651 = vmatpush3.msra.mxu1 %v5959_v40 }
0x1feb   :  { %5652 = vmatprep.subr.mxu1 %v7269_v13 }
0x1fec   :  { %5653 = vmatpush3.msra.mxu1 %v5960_v38  ;;  %v5971_v38 = vld [vmem:[#allocation5 + $0x110] sm:$0xff] }
0x1fed   :  { %5654 = vmatprep.subr.mxu1 %v7269_v13 }
0x1fee   :  { %5655 = vmatpush3.msra.mxu1 %v5961_v22  ;;  %v5973_v22 = vld [vmem:[#allocation5 + $0x100] sm:$0xff] }
0x1fef   :  { %5656 = vmatprep.subr.mxu1 %v7269_v13 }
0x1ff0   :  { %5657 = vmatpush3.msra.mxu1 %v5962_v12  ;;  %v5974_v12 = vld [vmem:[#allocation5 + $0xf8] sm:$0xff] }
0x1ff1   :  { %5658 = vmatprep.subr.mxu1 %v7269_v13 }
0x1ff2   :  { %v3628_v49 = vpop.f32.mrf.mxu1  ;;  %5659 = vmatpush3.msra.mxu1 %v6742_v41  ;;  %v5964_v41 = vld [vmem:[#allocation5 + $0xc8] sm:$0xff] }
0x1ff3   :  { %5660 = vmatprep.subr.mxu1 %v7269_v13 }
0x1ff4   :  { %v5588_v33 = vpop.f32.mrf.mxu1  ;;  %5661 = vmatpush3.msra.mxu1 %v6746_v43 }
0x1ff5   :  { %5702 = vmatprep.subr.mxu1 %v7269_v13  ;;  %v5976_v33 = vld [vmem:[#allocation5 + $0xe8] sm:$0xff] }
0x209d   :  { %v3701_v8 = vpop.f32.mrf.mxu1 }
0x209e   :  { %v3702_v10 = vadd.f32 %v3701_v8, %v3628_v49  ;;  %v5975_v49 = vld [vmem:[#allocation5 + $0xf0] sm:$0xff] }
0x209f   :  { %v5607_v24 = vpop.f32.mrf.mxu1 }
0x20a0   :  { %v3705_v55 = vadd.f32 %v6906_v23, %v3702_v10  ;;  %v5977_v10 = vld [vmem:[#allocation5 + $0xe0] sm:$0xff] }
0x20a2   :  { %v3706_v29 = vmax.f32 %v3705_v55, 0.0  ;;  %v5978_v55 = vld [vmem:[#allocation5 + $0xd8] sm:$0xff] }
0x20a4   :  { %5633 = vmatmul.mubr.msk.f32.vlgmr.msra.gmra.mxu0 %vm664_vm3, %v3706_v29 }
0x20a5   :  { %v3871_v35 = vpop.f32.mrf.mxu1  ;;  %5666 = vmatpush3.msra.mxu0 %v5964_v41  ;;  %5673 = vmatprep.mubr.msk.f32.mxu0 %vm6028_vm0, %v7269_v13 }
0x20a6   :  { %v3875_v43 = vadd.f32 %v3871_v35, %v187_v52  ;;  %5667 = vmatprep.subr.mxu0 %v7269_v13 }
0x20a7   :  { %v5645_v36 = vpop.f32.mrf.mxu1  ;;  %5668 = vmatpush3.msra.mxu0 %v5965_v0 }
0x20a8   :  { %5886 = vtanh.f32 %v3875_v43  ;;  %5669 = vmatprep.subr.mxu0 %v7269_v13  ;;  %v4558_v48 = vmul.f32 -1.442695, %v3875_v43 }
0x20a9   :  { %5670 = vmatpush3.msra.mxu0 %v5966_v63 }
0x20aa   :  { %5671 = vmatprep.subr.mxu0 %v7269_v13  ;;  %5888 = vpow2.f32 %v4558_v48 }
0x20ab   :  { %5672 = vmatpush3.msra.mxu0 %v6762_v59 }
0x20ac   :  { %5676 = vmatprep.subr.mxu0 %v7269_v13 }
0x20b5   :  { %v5887_v60 = vpop.eup %5886 }
0x20b6   :  { %3885 = vrot.lane.b32.xlu1 %v5887_v60, %s6029_s0 }
0x20b7   :  { %v5889_v15 = vpop.eup %5888 }
0x20b8   :  { %v3879_v47 = vadd.f32 1.0, %v5889_v15 }
0x20ba   :  { %5890 = vrcp.f32 %v3879_v47 }
0x20c7   :  { %v7171_v53 = vpop.eup %5890 }
0x20c8   :  { %v3883_v27 = vmul.f32 %v7171_v53, %v7065_v32 }
0x2128   :  { %v3886_v1 = vpop.permute.xlu1 %3885 }
0x2129   :  { %v3888_v17 = vmul.f32 %v7171_v53, %v3886_v1 }
0x212b   :  { %3890 = vrot.lane.b32.xlu1 %v3888_v17, %s6029_s0 }
0x212f   :  { %3901 = vrot.lane.b32.xlu1 %v7065_v32, %s6031_s21  ;;  %v5969_v32 = vld [vmem:[#allocation5 + $0x118] sm:$0xff] }
0x2164   :  { %v3776_v59 = vpop.f32.mrf.mxu0 }
0x2165   :  { %v3777_v39 = vadd.f32 %v6929_v5, %v3776_v59 }
0x2166   :  { %v5634_v61 = vpop.f32.mrf.mxu0 }
0x2167   :  { %5892 = vtanh.f32 %v3777_v39 }
0x2174   :  { %v5893_v25 = vpop.eup %5892 }
0x2175   :  { %3789 = vrot.lane.b32.xlu0 %v5893_v25, %s6029_s0 }
0x219d   :  { %v3891_v31 = vpop.permute.xlu1 %3890 }
0x219e   :  { %v3893_v4 = vadd.f32 %v3891_v31, %v3883_v27  ;;  %v4319_v31 = vld [vmem:[#allocation5 + $0x1c0] sm:$0xff]  ;;  %v4318_v27 = vld [vmem:[#allocation5 + $0x1b8] sm:$0xff] }
0x21a1   :  { %v3902_v34 = vpop.permute.xlu1 %3901 }
0x21a2   :  { %v7182_v7 = vsel %vm203_vm2, %v3902_v34, %v3893_v4 }
0x21a3   :  { %5663 = vmatmul.mubr.msk.f32.vlgmr.msra.gmra.mxu1 %vm60_vm1, %v7182_v7 }
0x21a4   :  { %5703 = vmatpush3.msra.mxu1 %v6785_v14  ;;  %5726 = vmatprep.mubr.msk.f32.mxu1 %vm6028_vm0, %v7269_v13  ;;  %v4556_v14 = vmul.f32 -1.442695, %v3777_v39 }
0x21a5   :  { %5704 = vmatprep.subr.mxu1 %v7269_v13 }
0x21a6   :  { %5705 = vmatpush3.msra.mxu1 %v6791_v28  ;;  %5894 = vpow2.f32 %v4556_v14 }
0x21a7   :  { %5706 = vmatprep.subr.mxu1 %v7269_v13 }
0x21a8   :  { %5707 = vmatpush3.msra.mxu1 %v6795_v16 }
0x21a9   :  { %5708 = vmatprep.subr.mxu1 %v7269_v13 }
0x21aa   :  { %5709 = vmatpush3.msra.mxu1 %v6799_v30 }
0x21ab   :  { %5710 = vmatprep.subr.mxu1 %v7269_v13 }
0x21ac   :  { %5711 = vmatpush3.msra.mxu1 %v6803_v42 }
0x21ad   :  { %5712 = vmatprep.subr.mxu1 %v7269_v13 }
0x21ae   :  { %5713 = vmatpush3.msra.mxu1 %v6807_v44 }
0x21af   :  { %5714 = vmatprep.subr.mxu1 %v7269_v13 }
0x21b0   :  { %5715 = vmatpush3.msra.mxu1 %v6811_v45 }
0x21b1   :  { %5716 = vmatprep.subr.mxu1 %v7269_v13 }
0x21b2   :  { %5717 = vmatpush3.msra.mxu1 %v6815_v46  ;;  %v5967_v46 = vld [vmem:[#allocation5 + $0xa8] ss:$0 sm:$0xff] }
0x21b3   :  { %5718 = vmatprep.subr.mxu1 %v7269_v13  ;;  %v5895_v28 = vpop.eup %5894 }
0x21b4   :  { %5719 = vmatpush3.msra.mxu1 %v6819_v2  ;;  %v3784_v16 = vadd.f32 1.0, %v5895_v28  ;;  %v4314_v28 = vld [vmem:[#allocation5 + $0x198] sm:$0xff] }
0x21b5   :  { %5720 = vmatprep.subr.mxu1 %v7269_v13 }
0x21b6   :  { %5721 = vmatpush3.msra.mxu1 %v6823_v3  ;;  %5896 = vrcp.f32 %v3784_v16  ;;  %v4403_v16 = vld [vmem:[#allocation5 + $0x1e8] sm:$0xff] }
0x21b7   :  { %5722 = vmatprep.subr.mxu1 %v7269_v13  ;;  %5898 = vtanh.f32 %v3893_v4  ;;  %v4316_v4 = vld [vmem:[#allocation5 + $0x1a8] sm:$0xff] }
0x21b8   :  { %5723 = vmatpush3.msra.mxu1 %v6827_v6 }
0x21b9   :  { %5724 = vmatprep.subr.mxu1 %v7269_v13 }
0x21ba   :  { %5725 = vmatpush3.msra.mxu1 %v6831_v37  ;;  %v5968_v37 = vld [vmem:[#allocation5 + $0x120] sm:$0xff] }
0x21bb   :  { %5744 = vmatprep.subr.mxu1 %v7269_v13 }
0x21c3   :  { %v5897_v30 = vpop.eup %5896 }
0x21c4   :  { %v3787_v62 = vmul.f32 %v5897_v30, %v7113_v19  ;;  %v5899_v18 = vpop.eup %5898  ;;  %v5972_v19 = vld [vmem:[#allocation5 + $0x108] sm:$0xff] }
0x21e7   :  { %v3790_v42 = vpop.permute.xlu0 %3789 }
0x21e8   :  { %v3792_v44 = vmul.f32 %v5897_v30, %v3790_v42 }
0x21ea   :  { %3794 = vrot.lane.b32.xlu0 %v3792_v44, %s6032_s22 }
0x225c   :  { %v3795_v20 = vpop.permute.xlu0 %3794 }
0x225d   :  { %v7220_v58 = vadd.f32 %v3795_v20, %v3787_v62 }
0x2263   :  { %v3974_v45 = vpop.f32.mrf.mxu1 }
0x2264   :  { %v3975_v2 = vadd.f32 %v5967_v46, %v3974_v45 }
0x2265   :  { %v5664_v3 = vpop.f32.mrf.mxu1 }
0x2266   :  { %v3978_v6 = vmax.f32 %v3975_v2, 0.0  ;;  %v4402_v3 = vld [vmem:[#allocation5 + $0x1e0] sm:$0xff] }
0x2268   :  { %5674 = vmatmul.mubr.msk.f32.vlgmr.msra.gmra.mxu0 %vm203_vm2, %v3978_v6  ;;  %v4401_v6 = vld [vmem:[#allocation5 + $0x1d8] sm:$0xff] }
0x2269   :  { %5677 = vmatpush3.msra.mxu0 %v5968_v37  ;;  %5680 = vmatprep.mubr.msk.f32.mxu0 %vm6028_vm0, %v7269_v13  ;;  %v4400_v37 = vld [vmem:[#allocation5 + $0x1d0] sm:$0xff] }
0x226a   :  { %5678 = vmatprep.subr.mxu0 %v7269_v13 }
0x226b   :  { %5679 = vmatpush3.msra.mxu0 %v5969_v32  ;;  %v4565_v32 = vld [vmem:[#allocation5 + $0x1c8] ss:$0 sm:$0xff] }
0x226c   :  { %5683 = vmatprep.subr.mxu0 %v7269_v13 }
0x2328   :  { %v4048_v51 = vpop.f32.mrf.mxu0 }
0x2329   :  { %v4049_v54 = vadd.f32 %v5970_v57, %v4048_v51 }
0x232a   :  { %v5675_v9 = vpop.f32.mrf.mxu0 }
0x232b   :  { %v4052_v50 = vsel %vm60_vm1, %v4049_v54, -inf }
0x232c   :  { %4053 = vmax.xlane.f32.xlu1 %v4052_v50  ;;  %v4567_v50 = vld [vmem:[#allocation5 + $0x1f0] ss:$0 sm:$0xff] }
0x233d   :  { %4065 = vrot.lane.b32.xlu1 %v7220_v58, %s6032_s22 }
0x2341   :  { %3896 = vrot.lane.b32.xlu1 %v5899_v18, %s6029_s0 }
0x23b5   :  { %v4054_v11 = vpop.xlane.xlu1 %4053 }
0x23b6   :  { %v4055_v26 = vsub.f32 %v4049_v54, %v4054_v11 }
0x23b8   :  { %v4056_v56 = vmul.f32 1.442695, %v4055_v26 }
0x23b9   :  { %v4066_v40 = vpop.permute.xlu1 %4065 }
0x23ba   :  { %5900 = vpow2.f32 %v4056_v56  ;;  %5681 = vmatmul.mubr.msk.f32.vlgmr.msra.gmra.mxu0 %vm494_vm4, %v4066_v40 }
0x23bb   :  { %5684 = vmatpush3.msra.mxu0 %v5971_v38  ;;  %5699 = vmatprep.mubr.msk.f32.mxu0 %vm6028_vm0, %v7269_v13 }
0x23bc   :  { %5685 = vmatprep.subr.mxu0 %v7269_v13 }
0x23bd   :  { %5686 = vmatpush3.msra.mxu0 %v5972_v19  ;;  %v3897_v59 = vpop.permute.xlu1 %3896 }
0x23be   :  { %5687 = vmatprep.subr.mxu0 %v7269_v13  ;;  %v3899_v39 = vmul.f32 %v7171_v53, %v3897_v59  ;;  %v4315_v53 = vld [vmem:[#allocation5 + $0x1a0] sm:$0xff] }
0x23bf   :  { %5688 = vmatpush3.msra.mxu0 %v5973_v22 }
0x23c0   :  { %5689 = vmatprep.subr.mxu0 %v7269_v13 }
0x23c1   :  { %5690 = vmatpush3.msra.mxu0 %v5974_v12 }
0x23c2   :  { %5691 = vmatprep.subr.mxu0 %v7269_v13 }
0x23c3   :  { %5692 = vmatpush3.msra.mxu0 %v5975_v49 }
0x23c4   :  { %5693 = vmatprep.subr.mxu0 %v7269_v13 }
0x23c5   :  { %5694 = vmatpush3.msra.mxu0 %v5976_v33 }
0x23c6   :  { %5695 = vmatprep.subr.mxu0 %v7269_v13 }
0x23c7   :  { %v5901_v8 = vpop.eup %5900  ;;  %5696 = vmatpush3.msra.mxu0 %v5977_v10 }
0x23c8   :  { %v4058_v24 = vsel %vm60_vm1, %v5901_v8, 0.0  ;;  %5697 = vmatprep.subr.mxu0 %v7269_v13 }
0x23c9   :  { %4059 = vadd.xlane.f32.xlu0 %v4058_v24  ;;  %5698 = vmatpush3.msra.mxu0 %v5978_v55 }
0x23ca   :  { %5729 = vmatprep.subr.mxu0 %v7269_v13 }
0x2452   :  { %v4060_v29 = vpop.xlane.xlu0 %4059 }
0x2453   :  { %5902 = vrcp.f32 %v4060_v29 }
0x2460   :  { %v5903_v21 = vpop.eup %5902 }
0x2461   :  { %v4062_v52 = vmul.f32 %v5903_v21, %v5901_v8 }
0x2463   :  { %v4063_v35 = vmul.f32 %v4062_v52, %v7182_v7 }
0x2465   :  { %5700 = vmatmul.mubr.msk.f32.vlgmr.msra.gmra.mxu0 %vm60_vm1, %v4063_v35 }
0x2466   :  { %5741 = vmatprep.mubr.msk.f32.mxu0 %vm6028_vm0, %v7269_v13  ;;  %5730 = vmatpush3.msra.mxu0 %v4319_v31 }
0x2467   :  { %5731 = vmatprep.subr.mxu0 %v7269_v13 }
0x2468   :  { %5732 = vmatpush3.msra.mxu0 %v4318_v27 }
0x2469   :  { %5733 = vmatprep.subr.mxu0 %v7269_v13 }
0x247a   :  { %v4135_v41 = vpop.f32.mrf.mxu0 }
0x247c   :  { %v5682_v43 = vpop.f32.mrf.mxu0 }
0x2525   :  { %v4208_v36 = vpop.f32.mrf.mxu0 }
0x2526   :  { %v4209_v0 = vadd.f32 %v4208_v36, %v4135_v41 }
0x2527   :  { %v5701_v63 = vpop.f32.mrf.mxu0 }
0x2528   :  { %v4212_v60 = vadd.f32 %v6906_v23, %v4209_v0 }
0x252a   :  { %v4213_v48 = vmax.f32 %v4212_v60, 0.0 }
0x252c   :  { %5727 = vmatmul.mubr.msk.f32.vlgmr.msra.gmra.mxu1 %vm664_vm3, %v4213_v48 }
0x252d   :  { %5752 = vmatprep.mubr.msk.f32.mxu1 %vm6028_vm0, %v7269_v13  ;;  %5745 = vmatpush3.msra.mxu1 %v4403_v16 }
0x252e   :  { %5746 = vmatprep.subr.mxu1 %v7269_v13 }
0x252f   :  { %5747 = vmatpush3.msra.mxu1 %v4402_v3 }
0x2530   :  { %5748 = vmatprep.subr.mxu1 %v7269_v13 }
0x2531   :  { %5749 = vmatpush3.msra.mxu1 %v4401_v6 }
0x2532   :  { %5750 = vmatprep.subr.mxu1 %v7269_v13 }
0x2533   :  { %5751 = vmatpush3.msra.mxu1 %v4400_v37 }
0x25ec   :  { %v4283_v15 = vpop.f32.mrf.mxu1 }
0x25ed   :  { %v4284_v47 = vadd.f32 %v6929_v5, %v4283_v15  ;;  %v4317_v5 = vld [vmem:[#allocation5 + $0x1b0] sm:$0xff] }
0x25ee   :  { %v5728_v1 = vpop.f32.mrf.mxu1  ;;  %5734 = vmatpush3.msra.mxu0 %v4317_v5 }
0x25ef   :  { %5904 = vtanh.f32 %v4284_v47  ;;  %v4564_v23 = vmul.f32 -1.442695, %v4284_v47  ;;  %5735 = vmatprep.subr.mxu0 %v7269_v13 }
0x25f0   :  { %5736 = vmatpush3.msra.mxu0 %v4316_v4 }
0x25f1   :  { %5906 = vpow2.f32 %v4564_v23  ;;  %5737 = vmatprep.subr.mxu0 %v7269_v13 }
0x25f2   :  { %5738 = vmatpush3.msra.mxu0 %v4315_v53 }
0x25f3   :  { %5739 = vmatprep.subr.mxu0 %v7269_v13 }
0x25f4   :  { %5740 = vmatpush3.msra.mxu0 %v4314_v28 }
0x25fc   :  { %v5905_v17 = vpop.eup %5904 }
0x25fd   :  { %4296 = vrot.lane.b32.xlu0 %v5905_v17, %s6029_s0 }
0x25fe   :  { %v5907_v61 = vpop.eup %5906 }
0x25ff   :  { %v4291_v25 = vadd.f32 1.0, %v5907_v61 }
0x2601   :  { %4306 = vrot.lane.b32.xlu0 %v3899_v39, %s6030_s1  ;;  %5908 = vrcp.f32 %v4291_v25 }
0x260e   :  { %v5909_v34 = vpop.eup %5908 }
0x260f   :  { %v4294_v30 = vmul.f32 %v5909_v34, %v7220_v58 }
0x266f   :  { %v4297_v7 = vpop.permute.xlu0 %4296 }
0x2670   :  { %v4299_v14 = vmul.f32 %v5909_v34, %v4297_v7 }
0x2672   :  { %4301 = vrot.lane.b32.xlu1 %v4299_v14, %s6032_s22 }
0x2673   :  { %v4307_v45 = vpop.permute.xlu0 %4306 }
0x26e4   :  { %v4302_v42 = vpop.permute.xlu1 %4301 }
0x26e5   :  { %v4304_v44 = vadd.f32 %v4302_v42, %v4294_v30 }
0x26e7   :  { %4310 = vrot.lane.b32.xlu1 %v4304_v44, %s6033_s23 }
0x2759   :  { %v4311_v46 = vpop.permute.xlu1 %4310 }
0x275a   :  { %v4313_v2 = vsel %vm203_vm2, %v4307_v45, %v4311_v46 }
0x275b   :  { %5742 = vmatmul.mubr.msk.f32.vlgmr.msra.gmra.mxu0 %vm4325_vm5, %v4313_v2 }
0x281b   :  { %v4395_v51 = vpop.f32.mrf.mxu0 }
0x281c   :  { %v4396_v57 = vadd.f32 %v4565_v32, %v4395_v51 }
0x281d   :  { %v5743_v54 = vpop.f32.mrf.mxu0 }
0x281e   :  { %v4399_v9 = vmax.f32 %v4396_v57, 0.0 }
0x2820   :  { %5753 = vmatmul.mubr.msk.f32.vlgmr.msra.gmra.mxu1 %vm203_vm2, %v4399_v9 }
0x28e0   :  { %v4478_v20 = vpop.f32.mrf.mxu1 }
0x28e1   :  { %v4479_v62 = vadd.f32 %v4567_v50, %v4478_v20 }
0x28e2   :  { %v5754_v58 = vpop.f32.mrf.mxu1 }
0x28e3   :  { %4483 = vst.msk [vmem:[%s7266_s2] sm:$0xff] %vm4482_vm6, %v4479_v62 }
0x28e4   :  { %4488 = vsyncpa [#allocation4], 1 }
0x28e5   :  { %4489 = vsyncpa [#allocation6], 1 }

</bundles_post_ra>
